<compile_context>
chip_gen: v6e
topology: v6e:2x2x1
jax: 0.10.0
libtpu: 0.0.40
codegen_flags: <defaults>
</compile_context>

<pallas_src>
import functools

import jax
import jax.numpy as jnp
from jax.experimental import pallas as pl
from jax.experimental.pallas import tpu as pltpu


CFG = dict(
    image_size=16,
    patch_size=4,
    in_channels=3,
    hidden=32,
    heads=4,
    layers=2,
    mlp_dim=128,
    n_classes=5,
    head_hidden=512,
)

SUBLANE = 8
LANE = 128
EPS = 1e-5
W_DTYPE = jnp.bfloat16      # matmul-weight storage dtype (MXU-native on v6e/v7x)


def _round_up(x, m):
    return ((x + m - 1) // m) * m


def _ln(x, g, b, eps):
    """Row-wise LayerNorm on a [M, D] value (g, b are [1, D]); all math in f32."""
    mean = jnp.mean(x, axis=-1, keepdims=True)
    xc = x - mean
    var = jnp.mean(xc * xc, axis=-1, keepdims=True)
    return xc * jax.lax.rsqrt(var + eps) * g + b


# ----------------------------------------------------------------------------
# Fused kernel: embed prologue -> L encoder layers -> classifier-head epilogue
# ----------------------------------------------------------------------------

def _fused_kernel(patches_ref, mask_ref, patch_w_ref, pos_ref, preg_ref, preb_ref,
                  ln1g, ln1b, qkvw, qkvb, ow, ob, ln2g, ln2b,
                  fc1w, fc1b, fc2w, fc2b,
                  postg, postb, hw1, hb1, hw2, hb2,
                  logits_ref, slab_ref, *, heads, eps):
    layer = pl.program_id(0)
    B, S, D = slab_ref.shape
    HD = D // heads
    scale = 1.0 / float(HD) ** 0.5

    # -------- prologue (layer 0): patch-embed matmul + pos-embed + pre-LayerNorm ----
    @pl.when(layer == 0)
    def _():
        CPP = patches_ref.shape[-1]
        patches = patches_ref[...].reshape(B * S, CPP).astype(jnp.bfloat16)
        emb = jnp.dot(patches, patch_w_ref[...],
                      preferred_element_type=jnp.float32).reshape(B, S, D)
        # CLS token is folded into pos_emb row 0; padded pos_emb rows are zero, so
        # padded token rows stay exactly zero through the pre-LN (LN(0) == 0).
        x0 = emb + pos_ref[...][None, :, :]
        y0 = _ln(x0.reshape(B * S, D), preg_ref[...], preb_ref[...], eps)
        slab_ref[...] = y0.reshape(B, S, D)

    # -------- one encoder layer; token slab stays resident in VMEM scratch ----------
    x2 = slab_ref[...].reshape(B * S, D)                       # f32 activations

    # self-attention block
    h = _ln(x2, ln1g[...], ln1b[...], eps)
    qkv = jnp.dot(h.astype(jnp.bfloat16), qkvw[...],
                  preferred_element_type=jnp.float32) + qkvb[...]
    qkv = qkv.reshape(B, S, 3 * D)
    neg_mask = mask_ref[...]                                   # [1, S_pad], -1e30 on pads

    attn = jnp.zeros((B * S, D), jnp.float32)
    for hh in range(heads):                                    # short static head loop
        qh = qkv[:, :, hh * HD:(hh + 1) * HD].astype(jnp.bfloat16)
        kh = qkv[:, :, D + hh * HD:D + (hh + 1) * HD].astype(jnp.bfloat16)
        vh = qkv[:, :, 2 * D + hh * HD:2 * D + (hh + 1) * HD].astype(jnp.bfloat16)
        sc = jnp.einsum('bqd,bkd->bqk', qh, kh,
                        preferred_element_type=jnp.float32) * scale
        sc = sc + neg_mask                                     # mask padded key columns
        m = jnp.max(sc, axis=-1, keepdims=True)
        p = jnp.exp(sc - m)
        p = p / jnp.sum(p, axis=-1, keepdims=True)             # exact softmax (f32)
        ctx = jnp.einsum('bqk,bkd->bqd', p.astype(jnp.bfloat16), vh,
                         preferred_element_type=jnp.float32)   # [B, S, HD]
        # Per-head o_proj row-block, accumulated: replaces the lane-dim concatenate.
        attn = attn + jnp.dot(ctx.reshape(B * S, HD).astype(jnp.bfloat16), ow[hh],
                              preferred_element_type=jnp.float32)
    x2 = x2 + attn + ob[...]                                   # residual

    # MLP block (quick-GELU, as in CLIP); elementwise kept in f32
    g = _ln(x2, ln2g[...], ln2b[...], eps)
    g = jnp.dot(g.astype(jnp.bfloat16), fc1w[...],
                preferred_element_type=jnp.float32) + fc1b[...]
    g = g * jax.nn.sigmoid(1.702 * g)
    g = jnp.dot(g.astype(jnp.bfloat16), fc2w[...],
                preferred_element_type=jnp.float32) + fc2b[...]
    x2 = x2 + g                                                # residual

    slab_ref[...] = x2.reshape(B, S, D)

    # -------- epilogue (last layer): post-LN(CLS) -> Linear -> ReLU -> Linear -------
    @pl.when(layer == pl.num_programs(0) - 1)
    def _():
        cls = x2.reshape(B, S, D)[:, 0, :]                     # pooler input (CLS token)
        c = _ln(cls, postg[...], postb[...], eps)
        t = jnp.dot(c.astype(jnp.bfloat16), hw1[...],
                    preferred_element_type=jnp.float32) + hb1[...]
        t = jnp.maximum(t, 0.0)
        y = jnp.dot(t.astype(jnp.bfloat16), hw2[...],
                    preferred_element_type=jnp.float32) + hb2[...]
        logits_ref[...] = y.astype(logits_ref.dtype)           # lane-padded logits


# ----------------------------------------------------------------------------
# pallas_call wrapper
# ----------------------------------------------------------------------------

def _fused_forward(patches_p, key_mask, params, heads):
    B, S_pad, CPP = patches_p.shape
    D = params["patch_w"].shape[1]
    enc = params["enc"]
    L = enc["qkv_w"].shape[0]
    MLP = enc["fc1_w"].shape[2]
    HD = D // heads
    H1 = params["head_w1"].shape[1]
    NP = params["head_w2"].shape[1]                            # lane-padded class dim

    def fixed(shp):                                            # resident across layers
        return pl.BlockSpec(shp, lambda l: (0,) * len(shp))

    def per_layer(shp):                                        # stacked over layer axis
        return pl.BlockSpec((None,) + shp, lambda l: (l,) + (0,) * len(shp))

    return pl.pallas_call(
        functools.partial(_fused_kernel, heads=heads, eps=EPS),
        out_shape=jax.ShapeDtypeStruct((B, NP), jnp.float32),
        grid=(L,),
        in_specs=[
            fixed((B, S_pad, CPP)),                            # padded patch slab
            fixed((1, S_pad)),                                 # key-padding mask (hoisted)
            fixed((CPP, D)),                                   # patch-embed weight
            fixed((S_pad, D)),                                 # pos-embed (CLS folded in)
            fixed((1, D)), fixed((1, D)),                      # pre-LN
            per_layer((1, D)), per_layer((1, D)),              # ln1
            per_layer((D, 3 * D)), per_layer((1, 3 * D)),      # fused qkv
            per_layer((heads, HD, D)), per_layer((1, D)),      # o_proj (head-major blocks)
            per_layer((1, D)), per_layer((1, D)),              # ln2
            per_layer((D, MLP)), per_layer((1, MLP)),          # fc1
            per_layer((MLP, D)), per_layer((1, D)),            # fc2
            fixed((1, D)), fixed((1, D)),                      # post-LN
            fixed((D, H1)), fixed((1, H1)),                    # head fc1
            fixed((H1, NP)), fixed((1, NP)),                   # head fc2 (lane-padded)
        ],
        out_specs=fixed((B, NP)),
        scratch_shapes=[pltpu.VMEM((B, S_pad, D), jnp.float32)],   # resident token slab
        compiler_params=pltpu.CompilerParams(
            dimension_semantics=("arbitrary",),                # layer axis is sequential
            vmem_limit_bytes=32 * 1024 * 1024,
        ),
    )(patches_p, key_mask, params["patch_w"], params["pos_emb"],
      params["pre_ln_g"], params["pre_ln_b"],
      enc["ln1_g"], enc["ln1_b"], enc["qkv_w"], enc["qkv_b"],
      enc["o_w"], enc["o_b"], enc["ln2_g"], enc["ln2_b"],
      enc["fc1_w"], enc["fc1_b"], enc["fc2_w"], enc["fc2_b"],
      params["post_ln_g"], params["post_ln_b"],
      params["head_w1"], params["head_b1"],
      params["head_w2"], params["head_b2"])


# ----------------------------------------------------------------------------
# Parameters & forward pass
# ----------------------------------------------------------------------------

def init_params(key, cfg):
    D = cfg["hidden"]
    C = cfg["in_channels"]
    P = cfg["patch_size"]
    L = cfg["layers"]
    MLP = cfg["mlp_dim"]
    H1 = cfg["head_hidden"]
    NC = cfg["n_classes"]
    heads = cfg["heads"]
    HD = D // heads
    N = (cfg["image_size"] // P) ** 2
    S = N + 1
    S_pad = _round_up(S, SUBLANE)
    CPP = C * P * P
    std = 0.02

    keys = iter(jax.random.split(key, 16))

    def nrm(shape, dtype=jnp.float32):
        return (std * jax.random.normal(next(keys), shape, jnp.float32)).astype(dtype)

    # CLS embedding folded into pos_emb row 0 (row 0 of the padded patch slab is zero);
    # padded rows S..S_pad-1 stay exactly zero (LN(0) == 0 invariant for padded tokens).
    class_emb = nrm((D,))
    pos = nrm((S, D))
    pos_emb = jnp.zeros((S_pad, D), jnp.float32).at[:S].set(pos).at[0].add(class_emb)

    head_w2 = jnp.zeros((H1, LANE), jnp.float32).at[:, :NC].set(
        std * jax.random.normal(next(keys), (H1, NC), jnp.float32))

    params = {
        "patch_w": nrm((CPP, D), W_DTYPE),              # conv(stride=P, bias=False) as matmul
        "pos_emb": pos_emb,
        "pre_ln_g": jnp.ones((1, D), jnp.float32),
        "pre_ln_b": jnp.zeros((1, D), jnp.float32),
        "post_ln_g": jnp.ones((1, D), jnp.float32),
        "post_ln_b": jnp.zeros((1, D), jnp.float32),
        "enc": {                                        # stacked over layers, QKV fused
            "ln1_g": jnp.ones((L, 1, D), jnp.float32),
            "ln1_b": jnp.zeros((L, 1, D), jnp.float32),
            "qkv_w": nrm((L, D, 3 * D), W_DTYPE),
            "qkv_b": jnp.zeros((L, 1, 3 * D), jnp.float32),
            "o_w": nrm((L, heads, HD, D), W_DTYPE),     # o_proj row-blocks, head-major
            "o_b": jnp.zeros((L, 1, D), jnp.float32),
            "ln2_g": jnp.ones((L, 1, D), jnp.float32),
            "ln2_b": jnp.zeros((L, 1, D), jnp.float32),
            "fc1_w": nrm((L, D, MLP), W_DTYPE),
            "fc1_b": jnp.zeros((L, 1, MLP), jnp.float32),
            "fc2_w": nrm((L, MLP, D), W_DTYPE),
            "fc2_b": jnp.zeros((L, 1, D), jnp.float32),
        },
        "head_w1": nrm((D, H1), W_DTYPE),
        "head_b1": jnp.zeros((1, H1), jnp.float32),
        "head_w2": head_w2.astype(W_DTYPE),             # zero-padded to 128 classes
        "head_b2": jnp.zeros((1, LANE), jnp.float32),
    }
    return params


def patchify(images, patch):
    """NCHW images -> [B, num_patches, C*patch*patch] (matches conv-weight flatten order)."""
    B, C, H, W = images.shape
    hp, wp = H // patch, W // patch
    x = images.reshape(B, C, hp, patch, wp, patch)
    x = jnp.transpose(x, (0, 2, 4, 1, 3, 5))             # [B, hp, wp, C, p, p]
    return x.reshape(B, hp * wp, C * patch * patch)


def accomm_classifier_forward(params, images, cfg):
    P = cfg["patch_size"]
    NC = cfg["n_classes"]

    patches = patchify(images, P)                         # [B, N, C*P*P]
    B, N, CPP = patches.shape
    S = N + 1
    S_pad = params["pos_emb"].shape[0]

    # Row 0 is reserved for the CLS token, rows S..S_pad-1 are sequence padding (zero).
    patches_p = jnp.pad(patches, ((0, 0), (1, S_pad - S), (0, 0)))
    # Precomputed key-padding mask (hoisted out of the per-layer kernel body).
    key_mask = jnp.where(jnp.arange(S_pad) < S, 0.0, -1e30).astype(jnp.float32)
    key_mask = key_mask.reshape(1, S_pad)

    logits_p = _fused_forward(patches_p, key_mask, params, cfg["heads"])  # [B, 128]
    return logits_p[:, :NC]                               # [B, n_classes]


if __name__ == "__main__":
    key = jax.random.PRNGKey(0)
    k_img, k_param = jax.random.split(key)

    images = jax.random.normal(
        k_img,
        (2, CFG["in_channels"], CFG["image_size"], CFG["image_size"]),
        jnp.float32,
    )
    params = init_params(k_param, CFG)

    fwd = jax.jit(functools.partial(accomm_classifier_forward, cfg=CFG))
    logits = fwd(params, images)
    logits = jax.block_until_ready(logits)

    assert logits.shape == (2, CFG["n_classes"])
    assert bool(jnp.all(jnp.isfinite(logits)))
    print("KERNEL_OK")
</pallas_src>

<mosaic_0001>
module attributes {stable_mosaic.version = 11 : i64} {
  func.func @_fused_kernel(%arg0: i32, %arg1: memref<2x24x48xf32, #tpu.memory_space<vmem>>, %arg2: memref<1x24xf32, #tpu.memory_space<vmem>>, %arg3: memref<48x32xbf16, #tpu.memory_space<vmem>>, %arg4: memref<24x32xf32, #tpu.memory_space<vmem>>, %arg5: memref<1x32xf32, #tpu.memory_space<vmem>>, %arg6: memref<1x32xf32, #tpu.memory_space<vmem>>, %arg7: memref<1x1x32xf32, #tpu.memory_space<vmem>>, %arg8: memref<1x1x32xf32, #tpu.memory_space<vmem>>, %arg9: memref<1x32x96xbf16, #tpu.memory_space<vmem>>, %arg10: memref<1x1x96xf32, #tpu.memory_space<vmem>>, %arg11: memref<1x4x8x32xbf16, #tpu.memory_space<vmem>>, %arg12: memref<1x1x32xf32, #tpu.memory_space<vmem>>, %arg13: memref<1x1x32xf32, #tpu.memory_space<vmem>>, %arg14: memref<1x1x32xf32, #tpu.memory_space<vmem>>, %arg15: memref<1x32x128xbf16, #tpu.memory_space<vmem>>, %arg16: memref<1x1x128xf32, #tpu.memory_space<vmem>>, %arg17: memref<1x128x32xbf16, #tpu.memory_space<vmem>>, %arg18: memref<1x1x32xf32, #tpu.memory_space<vmem>>, %arg19: memref<1x32xf32, #tpu.memory_space<vmem>>, %arg20: memref<1x32xf32, #tpu.memory_space<vmem>>, %arg21: memref<32x512xbf16, #tpu.memory_space<vmem>>, %arg22: memref<1x512xf32, #tpu.memory_space<vmem>>, %arg23: memref<512x128xbf16, #tpu.memory_space<vmem>>, %arg24: memref<1x128xf32, #tpu.memory_space<vmem>>, %arg25: memref<2x128xf32, #tpu.memory_space<vmem>>, %arg26: memref<2x24x32xf32, #tpu.memory_space<vmem>>) attributes {dimension_semantics = [#tpu.dimension_semantics<arbitrary>], iteration_bounds = array<i64: 2>, scalar_prefetch = 0 : i64, scratch_operands = 1 : i64, tpu.core_type = #tpu.core_type<tc>, window_params = [{pipeline_mode = #tpu.pipeline_mode<synchronous>, transform_indices = @transform_0, window_bounds = array<i64: 2, 24, 48>}, {pipeline_mode = #tpu.pipeline_mode<synchronous>, transform_indices = @transform_1, window_bounds = array<i64: 1, 24>}, {pipeline_mode = #tpu.pipeline_mode<synchronous>, transform_indices = @transform_2, window_bounds = array<i64: 48, 32>}, {pipeline_mode = #tpu.pipeline_mode<synchronous>, transform_indices = @transform_3, window_bounds = array<i64: 24, 32>}, {pipeline_mode = #tpu.pipeline_mode<synchronous>, transform_indices = @transform_4, window_bounds = array<i64: 1, 32>}, {pipeline_mode = #tpu.pipeline_mode<synchronous>, transform_indices = @transform_5, window_bounds = array<i64: 1, 32>}, {transform_indices = @transform_6, window_bounds = array<i64: 1, 1, 32>}, {transform_indices = @transform_7, window_bounds = array<i64: 1, 1, 32>}, {transform_indices = @transform_8, window_bounds = array<i64: 1, 32, 96>}, {transform_indices = @transform_9, window_bounds = array<i64: 1, 1, 96>}, {transform_indices = @transform_10, window_bounds = array<i64: 1, 4, 8, 32>}, {transform_indices = @transform_11, window_bounds = array<i64: 1, 1, 32>}, {transform_indices = @transform_12, window_bounds = array<i64: 1, 1, 32>}, {transform_indices = @transform_13, window_bounds = array<i64: 1, 1, 32>}, {transform_indices = @transform_14, window_bounds = array<i64: 1, 32, 128>}, {transform_indices = @transform_15, window_bounds = array<i64: 1, 1, 128>}, {transform_indices = @transform_16, window_bounds = array<i64: 1, 128, 32>}, {transform_indices = @transform_17, window_bounds = array<i64: 1, 1, 32>}, {pipeline_mode = #tpu.pipeline_mode<synchronous>, transform_indices = @transform_18, window_bounds = array<i64: 1, 32>}, {pipeline_mode = #tpu.pipeline_mode<synchronous>, transform_indices = @transform_19, window_bounds = array<i64: 1, 32>}, {pipeline_mode = #tpu.pipeline_mode<synchronous>, transform_indices = @transform_20, window_bounds = array<i64: 32, 512>}, {pipeline_mode = #tpu.pipeline_mode<synchronous>, transform_indices = @transform_21, window_bounds = array<i64: 1, 512>}, {pipeline_mode = #tpu.pipeline_mode<synchronous>, transform_indices = @transform_22, window_bounds = array<i64: 512, 128>}, {pipeline_mode = #tpu.pipeline_mode<synchronous>, transform_indices = @transform_23, window_bounds = array<i64: 1, 128>}, {pipeline_mode = #tpu.pipeline_mode<synchronous>, transform_indices = @transform_24, window_bounds = array<i64: 2, 128>}]} {
    %c0_i32 = arith.constant 0 : i32
    %0 = arith.cmpi eq, %arg0, %c0_i32 : i32
    %1 = arith.extui %0 : i1 to i32
    %c0_i32_0 = arith.constant 0 : i32
    %2 = arith.cmpi ne, %1, %c0_i32_0 : i32
    scf.if %2 {
      %c0_94 = arith.constant 0 : index
      %c0_95 = arith.constant 0 : index
      %c0_96 = arith.constant 0 : index
      %215 = vector.load %arg1[%c0_94, %c0_95, %c0_96] : memref<2x24x48xf32, #tpu.memory_space<vmem>>, vector<2x24x48xf32>
      %216 = vector.shape_cast %215 : vector<2x24x48xf32> to vector<48x48xf32>
      %217 = arith.truncf %216 : vector<48x48xf32> to vector<48x48xbf16>
      %c0_97 = arith.constant 0 : index
      %c0_98 = arith.constant 0 : index
      %218 = vector.load %arg3[%c0_97, %c0_98] : memref<48x32xbf16, #tpu.memory_space<vmem>>, vector<48x32xbf16>
      %cst_99 = arith.constant dense<0.000000e+00> : vector<48x32xf32>
      %219 = tpu.matmul %217, %218, %cst_99 {dimension_numbers = #tpu.dot_dimension_numbers<[1], [0], [0], [1], [0, 0, 1, 1], [], []>} : vector<48x48xbf16>, vector<48x32xbf16>, vector<48x32xf32> -> vector<48x32xf32>
      %220 = vector.shape_cast %219 : vector<48x32xf32> to vector<2x24x32xf32>
      %c0_100 = arith.constant 0 : index
      %c0_101 = arith.constant 0 : index
      %221 = vector.load %arg4[%c0_100, %c0_101] : memref<24x32xf32, #tpu.memory_space<vmem>>, vector<24x32xf32>
      %222 = vector.shape_cast %221 : vector<24x32xf32> to vector<1x24x32xf32>
      %223 = vector.broadcast %222 : vector<1x24x32xf32> to vector<2x24x32xf32>
      %224 = arith.addf %220, %223 : vector<2x24x32xf32>
      %225 = vector.shape_cast %224 : vector<2x24x32xf32> to vector<48x32xf32>
      %c0_102 = arith.constant 0 : index
      %c0_103 = arith.constant 0 : index
      %226 = vector.load %arg5[%c0_102, %c0_103] : memref<1x32xf32, #tpu.memory_space<vmem>>, vector<1x32xf32>
      %c0_104 = arith.constant 0 : index
      %c0_105 = arith.constant 0 : index
      %227 = vector.load %arg6[%c0_104, %c0_105] : memref<1x32xf32, #tpu.memory_space<vmem>>, vector<1x32xf32>
      %cst_106 = arith.constant dense<0.000000e+00> : vector<48xf32>
      %228 = vector.multi_reduction <add>, %225, %cst_106 [1] : vector<48x32xf32> to vector<48xf32>
      %229 = vector.shape_cast %228 : vector<48xf32> to vector<48x1xf32>
      %cst_107 = arith.constant 3.200000e+01 : f32
      %230 = vector.broadcast %cst_107 : f32 to vector<48x1xf32>
      %231 = arith.divf %229, %230 : vector<48x1xf32>
      %232 = vector.broadcast %231 : vector<48x1xf32> to vector<48x32xf32>
      %233 = arith.subf %225, %232 : vector<48x32xf32>
      %234 = arith.mulf %233, %233 : vector<48x32xf32>
      %cst_108 = arith.constant dense<0.000000e+00> : vector<48xf32>
      %235 = vector.multi_reduction <add>, %234, %cst_108 [1] : vector<48x32xf32> to vector<48xf32>
      %236 = vector.shape_cast %235 : vector<48xf32> to vector<48x1xf32>
      %cst_109 = arith.constant 3.200000e+01 : f32
      %237 = vector.broadcast %cst_109 : f32 to vector<48x1xf32>
      %238 = arith.divf %236, %237 : vector<48x1xf32>
      %cst_110 = arith.constant 9.99999974E-6 : f32
      %239 = vector.broadcast %cst_110 : f32 to vector<48x1xf32>
      %240 = arith.addf %238, %239 : vector<48x1xf32>
      %241 = math.rsqrt %240 : vector<48x1xf32>
      %242 = vector.broadcast %241 : vector<48x1xf32> to vector<48x32xf32>
      %243 = arith.mulf %233, %242 : vector<48x32xf32>
      %244 = vector.broadcast %226 : vector<1x32xf32> to vector<48x32xf32>
      %245 = arith.mulf %243, %244 : vector<48x32xf32>
      %246 = vector.broadcast %227 : vector<1x32xf32> to vector<48x32xf32>
      %247 = arith.addf %245, %246 : vector<48x32xf32>
      %248 = vector.shape_cast %247 : vector<48x32xf32> to vector<2x24x32xf32>
      %c0_111 = arith.constant 0 : index
      %c0_112 = arith.constant 0 : index
      %c0_113 = arith.constant 0 : index
      %249 = vector.load %arg26[%c0_111, %c0_112, %c0_113] : memref<2x24x32xf32, #tpu.memory_space<vmem>>, vector<2x24x32xf32>
      tpu.vector_store %arg26[%c0_111, %c0_112, %c0_113], %248 {strides = array<i32>} : memref<2x24x32xf32, #tpu.memory_space<vmem>>, vector<2x24x32xf32>,
    } else {
    }
    %c0 = arith.constant 0 : index
    %c0_1 = arith.constant 0 : index
    %c0_2 = arith.constant 0 : index
    %3 = vector.load %arg26[%c0, %c0_1, %c0_2] : memref<2x24x32xf32, #tpu.memory_space<vmem>>, vector<2x24x32xf32>
    %4 = vector.shape_cast %3 : vector<2x24x32xf32> to vector<48x32xf32>
    %c0_3 = arith.constant 0 : index
    %c0_4 = arith.constant 0 : index
    %c0_5 = arith.constant 0 : index
    %5 = vector.load %arg7[%c0_3, %c0_4, %c0_5] : memref<1x1x32xf32, #tpu.memory_space<vmem>>, vector<1x1x32xf32>
    %6 = vector.shape_cast %5 : vector<1x1x32xf32> to vector<1x32xf32>
    %c0_6 = arith.constant 0 : index
    %c0_7 = arith.constant 0 : index
    %c0_8 = arith.constant 0 : index
    %7 = vector.load %arg8[%c0_6, %c0_7, %c0_8] : memref<1x1x32xf32, #tpu.memory_space<vmem>>, vector<1x1x32xf32>
    %8 = vector.shape_cast %7 : vector<1x1x32xf32> to vector<1x32xf32>
    %cst = arith.constant dense<0.000000e+00> : vector<48xf32>
    %9 = vector.multi_reduction <add>, %4, %cst [1] : vector<48x32xf32> to vector<48xf32>
    %10 = vector.shape_cast %9 : vector<48xf32> to vector<48x1xf32>
    %cst_9 = arith.constant 3.200000e+01 : f32
    %11 = vector.broadcast %cst_9 : f32 to vector<48x1xf32>
    %12 = arith.divf %10, %11 : vector<48x1xf32>
    %13 = vector.broadcast %12 : vector<48x1xf32> to vector<48x32xf32>
    %14 = arith.subf %4, %13 : vector<48x32xf32>
    %15 = arith.mulf %14, %14 : vector<48x32xf32>
    %cst_10 = arith.constant dense<0.000000e+00> : vector<48xf32>
    %16 = vector.multi_reduction <add>, %15, %cst_10 [1] : vector<48x32xf32> to vector<48xf32>
    %17 = vector.shape_cast %16 : vector<48xf32> to vector<48x1xf32>
    %cst_11 = arith.constant 3.200000e+01 : f32
    %18 = vector.broadcast %cst_11 : f32 to vector<48x1xf32>
    %19 = arith.divf %17, %18 : vector<48x1xf32>
    %cst_12 = arith.constant 9.99999974E-6 : f32
    %20 = vector.broadcast %cst_12 : f32 to vector<48x1xf32>
    %21 = arith.addf %19, %20 : vector<48x1xf32>
    %22 = math.rsqrt %21 : vector<48x1xf32>
    %23 = vector.broadcast %22 : vector<48x1xf32> to vector<48x32xf32>
    %24 = arith.mulf %14, %23 : vector<48x32xf32>
    %25 = vector.broadcast %6 : vector<1x32xf32> to vector<48x32xf32>
    %26 = arith.mulf %24, %25 : vector<48x32xf32>
    %27 = vector.broadcast %8 : vector<1x32xf32> to vector<48x32xf32>
    %28 = arith.addf %26, %27 : vector<48x32xf32>
    %29 = arith.truncf %28 : vector<48x32xf32> to vector<48x32xbf16>
    %c0_13 = arith.constant 0 : index
    %c0_14 = arith.constant 0 : index
    %c0_15 = arith.constant 0 : index
    %30 = vector.load %arg9[%c0_13, %c0_14, %c0_15] : memref<1x32x96xbf16, #tpu.memory_space<vmem>>, vector<1x32x96xbf16>
    %31 = vector.shape_cast %30 : vector<1x32x96xbf16> to vector<32x96xbf16>
    %cst_16 = arith.constant dense<0.000000e+00> : vector<48x96xf32>
    %32 = tpu.matmul %29, %31, %cst_16 {dimension_numbers = #tpu.dot_dimension_numbers<[1], [0], [0], [1], [0, 0, 1, 1], [], []>} : vector<48x32xbf16>, vector<32x96xbf16>, vector<48x96xf32> -> vector<48x96xf32>
    %c0_17 = arith.constant 0 : index
    %c0_18 = arith.constant 0 : index
    %c0_19 = arith.constant 0 : index
    %33 = vector.load %arg10[%c0_17, %c0_18, %c0_19] : memref<1x1x96xf32, #tpu.memory_space<vmem>>, vector<1x1x96xf32>
    %34 = vector.shape_cast %33 : vector<1x1x96xf32> to vector<1x96xf32>
    %35 = vector.broadcast %34 : vector<1x96xf32> to vector<48x96xf32>
    %36 = arith.addf %32, %35 : vector<48x96xf32>
    %37 = vector.shape_cast %36 : vector<48x96xf32> to vector<2x24x96xf32>
    %c0_20 = arith.constant 0 : index
    %c0_21 = arith.constant 0 : index
    %38 = vector.load %arg2[%c0_20, %c0_21] : memref<1x24xf32, #tpu.memory_space<vmem>>, vector<1x24xf32>
    %cst_22 = arith.constant 0.000000e+00 : f32
    %39 = vector.broadcast %cst_22 : f32 to vector<48x32xf32>
    %40 = vector.extract_strided_slice %37 {offsets = [0, 0, 0], sizes = [2, 24, 8], strides = [1, 1, 1]} : vector<2x24x96xf32> to vector<2x24x8xf32>
    %41 = arith.truncf %40 : vector<2x24x8xf32> to vector<2x24x8xbf16>
    %42 = vector.extract_strided_slice %37 {offsets = [0, 0, 32], sizes = [2, 24, 8], strides = [1, 1, 1]} : vector<2x24x96xf32> to vector<2x24x8xf32>
    %43 = arith.truncf %42 : vector<2x24x8xf32> to vector<2x24x8xbf16>
    %44 = vector.extract_strided_slice %37 {offsets = [0, 0, 64], sizes = [2, 24, 8], strides = [1, 1, 1]} : vector<2x24x96xf32> to vector<2x24x8xf32>
    %45 = arith.truncf %44 : vector<2x24x8xf32> to vector<2x24x8xbf16>
    "tpu.trace_start"() <{level = 10 : i32, message = "bqd,bkd->bqk"}> : () -> ()
    %cst_23 = arith.constant dense<0.000000e+00> : vector<2x24x24xf32>
    %46 = tpu.matmul %41, %43, %cst_23 {dimension_numbers = #tpu.dot_dimension_numbers<[2], [2], [1], [1], [0, 0, 0, 1, 1, 1], [0], [0]>} : vector<2x24x8xbf16>, vector<2x24x8xbf16>, vector<2x24x24xf32> -> vector<2x24x24xf32>
    "tpu.trace_stop"() : () -> ()
    %cst_24 = arith.constant 0.353553385 : f32
    %47 = vector.broadcast %cst_24 : f32 to vector<2x24x24xf32>
    %48 = arith.mulf %46, %47 : vector<2x24x24xf32>
    %49 = vector.shape_cast %38 : vector<1x24xf32> to vector<1x1x24xf32>
    %50 = vector.broadcast %49 : vector<1x1x24xf32> to vector<2x24x24xf32>
    %51 = arith.addf %48, %50 : vector<2x24x24xf32>
    %cst_25 = arith.constant dense<0xFF800000> : vector<2x24xf32>
    %52 = vector.multi_reduction <maximumf>, %51, %cst_25 [2] : vector<2x24x24xf32> to vector<2x24xf32>
    %53 = vector.shape_cast %52 : vector<2x24xf32> to vector<2x24x1xf32>
    %54 = vector.broadcast %53 : vector<2x24x1xf32> to vector<2x24x24xf32>
    %55 = arith.subf %51, %54 : vector<2x24x24xf32>
    %56 = math.exp %55 : vector<2x24x24xf32>
    %cst_26 = arith.constant dense<0.000000e+00> : vector<2x24xf32>
    %57 = vector.multi_reduction <add>, %56, %cst_26 [2] : vector<2x24x24xf32> to vector<2x24xf32>
    %58 = vector.shape_cast %57 : vector<2x24xf32> to vector<2x24x1xf32>
    %59 = vector.broadcast %58 : vector<2x24x1xf32> to vector<2x24x24xf32>
    %60 = arith.divf %56, %59 : vector<2x24x24xf32>
    %61 = arith.truncf %60 : vector<2x24x24xf32> to vector<2x24x24xbf16>
    "tpu.trace_start"() <{level = 10 : i32, message = "bqk,bkd->bqd"}> : () -> ()
    %cst_27 = arith.constant dense<0.000000e+00> : vector<2x24x8xf32>
    %62 = tpu.matmul %61, %45, %cst_27 {dimension_numbers = #tpu.dot_dimension_numbers<[2], [1], [1], [2], [0, 0, 0, 1, 1, 2], [0], [0]>} : vector<2x24x24xbf16>, vector<2x24x8xbf16>, vector<2x24x8xf32> -> vector<2x24x8xf32>
    "tpu.trace_stop"() : () -> ()
    %63 = vector.shape_cast %62 : vector<2x24x8xf32> to vector<48x8xf32>
    %64 = arith.truncf %63 : vector<48x8xf32> to vector<48x8xbf16>
    %c0_28 = arith.constant 0 : index
    %c0_29 = arith.constant 0 : index
    %c0_30 = arith.constant 0 : index
    %c0_31 = arith.constant 0 : index
    %65 = vector.load %arg11[%c0_28, %c0_29, %c0_30, %c0_31] : memref<1x4x8x32xbf16, #tpu.memory_space<vmem>>, vector<1x1x8x32xbf16>
    %66 = vector.shape_cast %65 : vector<1x1x8x32xbf16> to vector<8x32xbf16>
    %cst_32 = arith.constant dense<0.000000e+00> : vector<48x32xf32>
    %67 = tpu.matmul %64, %66, %cst_32 {dimension_numbers = #tpu.dot_dimension_numbers<[1], [0], [0], [1], [0, 0, 1, 1], [], []>} : vector<48x8xbf16>, vector<8x32xbf16>, vector<48x32xf32> -> vector<48x32xf32>
    %68 = arith.addf %39, %67 : vector<48x32xf32>
    %69 = vector.extract_strided_slice %37 {offsets = [0, 0, 8], sizes = [2, 24, 8], strides = [1, 1, 1]} : vector<2x24x96xf32> to vector<2x24x8xf32>
    %70 = arith.truncf %69 : vector<2x24x8xf32> to vector<2x24x8xbf16>
    %71 = vector.extract_strided_slice %37 {offsets = [0, 0, 40], sizes = [2, 24, 8], strides = [1, 1, 1]} : vector<2x24x96xf32> to vector<2x24x8xf32>
    %72 = arith.truncf %71 : vector<2x24x8xf32> to vector<2x24x8xbf16>
    %73 = vector.extract_strided_slice %37 {offsets = [0, 0, 72], sizes = [2, 24, 8], strides = [1, 1, 1]} : vector<2x24x96xf32> to vector<2x24x8xf32>
    %74 = arith.truncf %73 : vector<2x24x8xf32> to vector<2x24x8xbf16>
    "tpu.trace_start"() <{level = 10 : i32, message = "bqd,bkd->bqk"}> : () -> ()
    %cst_33 = arith.constant dense<0.000000e+00> : vector<2x24x24xf32>
    %75 = tpu.matmul %70, %72, %cst_33 {dimension_numbers = #tpu.dot_dimension_numbers<[2], [2], [1], [1], [0, 0, 0, 1, 1, 1], [0], [0]>} : vector<2x24x8xbf16>, vector<2x24x8xbf16>, vector<2x24x24xf32> -> vector<2x24x24xf32>
    "tpu.trace_stop"() : () -> ()
    %cst_34 = arith.constant 0.353553385 : f32
    %76 = vector.broadcast %cst_34 : f32 to vector<2x24x24xf32>
    %77 = arith.mulf %75, %76 : vector<2x24x24xf32>
    %78 = vector.shape_cast %38 : vector<1x24xf32> to vector<1x1x24xf32>
    %79 = vector.broadcast %78 : vector<1x1x24xf32> to vector<2x24x24xf32>
    %80 = arith.addf %77, %79 : vector<2x24x24xf32>
    %cst_35 = arith.constant dense<0xFF800000> : vector<2x24xf32>
    %81 = vector.multi_reduction <maximumf>, %80, %cst_35 [2] : vector<2x24x24xf32> to vector<2x24xf32>
    %82 = vector.shape_cast %81 : vector<2x24xf32> to vector<2x24x1xf32>
    %83 = vector.broadcast %82 : vector<2x24x1xf32> to vector<2x24x24xf32>
    %84 = arith.subf %80, %83 : vector<2x24x24xf32>
    %85 = math.exp %84 : vector<2x24x24xf32>
    %cst_36 = arith.constant dense<0.000000e+00> : vector<2x24xf32>
    %86 = vector.multi_reduction <add>, %85, %cst_36 [2] : vector<2x24x24xf32> to vector<2x24xf32>
    %87 = vector.shape_cast %86 : vector<2x24xf32> to vector<2x24x1xf32>
    %88 = vector.broadcast %87 : vector<2x24x1xf32> to vector<2x24x24xf32>
    %89 = arith.divf %85, %88 : vector<2x24x24xf32>
    %90 = arith.truncf %89 : vector<2x24x24xf32> to vector<2x24x24xbf16>
    "tpu.trace_start"() <{level = 10 : i32, message = "bqk,bkd->bqd"}> : () -> ()
    %cst_37 = arith.constant dense<0.000000e+00> : vector<2x24x8xf32>
    %91 = tpu.matmul %90, %74, %cst_37 {dimension_numbers = #tpu.dot_dimension_numbers<[2], [1], [1], [2], [0, 0, 0, 1, 1, 2], [0], [0]>} : vector<2x24x24xbf16>, vector<2x24x8xbf16>, vector<2x24x8xf32> -> vector<2x24x8xf32>
    "tpu.trace_stop"() : () -> ()
    %92 = vector.shape_cast %91 : vector<2x24x8xf32> to vector<48x8xf32>
    %93 = arith.truncf %92 : vector<48x8xf32> to vector<48x8xbf16>
    %c0_38 = arith.constant 0 : index
    %c1 = arith.constant 1 : index
    %c0_39 = arith.constant 0 : index
    %c0_40 = arith.constant 0 : index
    %94 = vector.load %arg11[%c0_38, %c1, %c0_39, %c0_40] : memref<1x4x8x32xbf16, #tpu.memory_space<vmem>>, vector<1x1x8x32xbf16>
    %95 = vector.shape_cast %94 : vector<1x1x8x32xbf16> to vector<8x32xbf16>
    %cst_41 = arith.constant dense<0.000000e+00> : vector<48x32xf32>
    %96 = tpu.matmul %93, %95, %cst_41 {dimension_numbers = #tpu.dot_dimension_numbers<[1], [0], [0], [1], [0, 0, 1, 1], [], []>} : vector<48x8xbf16>, vector<8x32xbf16>, vector<48x32xf32> -> vector<48x32xf32>
    %97 = arith.addf %68, %96 : vector<48x32xf32>
    %98 = vector.extract_strided_slice %37 {offsets = [0, 0, 16], sizes = [2, 24, 8], strides = [1, 1, 1]} : vector<2x24x96xf32> to vector<2x24x8xf32>
    %99 = arith.truncf %98 : vector<2x24x8xf32> to vector<2x24x8xbf16>
    %100 = vector.extract_strided_slice %37 {offsets = [0, 0, 48], sizes = [2, 24, 8], strides = [1, 1, 1]} : vector<2x24x96xf32> to vector<2x24x8xf32>
    %101 = arith.truncf %100 : vector<2x24x8xf32> to vector<2x24x8xbf16>
    %102 = vector.extract_strided_slice %37 {offsets = [0, 0, 80], sizes = [2, 24, 8], strides = [1, 1, 1]} : vector<2x24x96xf32> to vector<2x24x8xf32>
    %103 = arith.truncf %102 : vector<2x24x8xf32> to vector<2x24x8xbf16>
    "tpu.trace_start"() <{level = 10 : i32, message = "bqd,bkd->bqk"}> : () -> ()
    %cst_42 = arith.constant dense<0.000000e+00> : vector<2x24x24xf32>
    %104 = tpu.matmul %99, %101, %cst_42 {dimension_numbers = #tpu.dot_dimension_numbers<[2], [2], [1], [1], [0, 0, 0, 1, 1, 1], [0], [0]>} : vector<2x24x8xbf16>, vector<2x24x8xbf16>, vector<2x24x24xf32> -> vector<2x24x24xf32>
    "tpu.trace_stop"() : () -> ()
    %cst_43 = arith.constant 0.353553385 : f32
    %105 = vector.broadcast %cst_43 : f32 to vector<2x24x24xf32>
    %106 = arith.mulf %104, %105 : vector<2x24x24xf32>
    %107 = vector.shape_cast %38 : vector<1x24xf32> to vector<1x1x24xf32>
    %108 = vector.broadcast %107 : vector<1x1x24xf32> to vector<2x24x24xf32>
    %109 = arith.addf %106, %108 : vector<2x24x24xf32>
    %cst_44 = arith.constant dense<0xFF800000> : vector<2x24xf32>
    %110 = vector.multi_reduction <maximumf>, %109, %cst_44 [2] : vector<2x24x24xf32> to vector<2x24xf32>
    %111 = vector.shape_cast %110 : vector<2x24xf32> to vector<2x24x1xf32>
    %112 = vector.broadcast %111 : vector<2x24x1xf32> to vector<2x24x24xf32>
    %113 = arith.subf %109, %112 : vector<2x24x24xf32>
    %114 = math.exp %113 : vector<2x24x24xf32>
    %cst_45 = arith.constant dense<0.000000e+00> : vector<2x24xf32>
    %115 = vector.multi_reduction <add>, %114, %cst_45 [2] : vector<2x24x24xf32> to vector<2x24xf32>
    %116 = vector.shape_cast %115 : vector<2x24xf32> to vector<2x24x1xf32>
    %117 = vector.broadcast %116 : vector<2x24x1xf32> to vector<2x24x24xf32>
    %118 = arith.divf %114, %117 : vector<2x24x24xf32>
    %119 = arith.truncf %118 : vector<2x24x24xf32> to vector<2x24x24xbf16>
    "tpu.trace_start"() <{level = 10 : i32, message = "bqk,bkd->bqd"}> : () -> ()
    %cst_46 = arith.constant dense<0.000000e+00> : vector<2x24x8xf32>
    %120 = tpu.matmul %119, %103, %cst_46 {dimension_numbers = #tpu.dot_dimension_numbers<[2], [1], [1], [2], [0, 0, 0, 1, 1, 2], [0], [0]>} : vector<2x24x24xbf16>, vector<2x24x8xbf16>, vector<2x24x8xf32> -> vector<2x24x8xf32>
    "tpu.trace_stop"() : () -> ()
    %121 = vector.shape_cast %120 : vector<2x24x8xf32> to vector<48x8xf32>
    %122 = arith.truncf %121 : vector<48x8xf32> to vector<48x8xbf16>
    %c0_47 = arith.constant 0 : index
    %c2 = arith.constant 2 : index
    %c0_48 = arith.constant 0 : index
    %c0_49 = arith.constant 0 : index
    %123 = vector.load %arg11[%c0_47, %c2, %c0_48, %c0_49] : memref<1x4x8x32xbf16, #tpu.memory_space<vmem>>, vector<1x1x8x32xbf16>
    %124 = vector.shape_cast %123 : vector<1x1x8x32xbf16> to vector<8x32xbf16>
    %cst_50 = arith.constant dense<0.000000e+00> : vector<48x32xf32>
    %125 = tpu.matmul %122, %124, %cst_50 {dimension_numbers = #tpu.dot_dimension_numbers<[1], [0], [0], [1], [0, 0, 1, 1], [], []>} : vector<48x8xbf16>, vector<8x32xbf16>, vector<48x32xf32> -> vector<48x32xf32>
    %126 = arith.addf %97, %125 : vector<48x32xf32>
    %127 = vector.extract_strided_slice %37 {offsets = [0, 0, 24], sizes = [2, 24, 8], strides = [1, 1, 1]} : vector<2x24x96xf32> to vector<2x24x8xf32>
    %128 = arith.truncf %127 : vector<2x24x8xf32> to vector<2x24x8xbf16>
    %129 = vector.extract_strided_slice %37 {offsets = [0, 0, 56], sizes = [2, 24, 8], strides = [1, 1, 1]} : vector<2x24x96xf32> to vector<2x24x8xf32>
    %130 = arith.truncf %129 : vector<2x24x8xf32> to vector<2x24x8xbf16>
    %131 = vector.extract_strided_slice %37 {offsets = [0, 0, 88], sizes = [2, 24, 8], strides = [1, 1, 1]} : vector<2x24x96xf32> to vector<2x24x8xf32>
    %132 = arith.truncf %131 : vector<2x24x8xf32> to vector<2x24x8xbf16>
    "tpu.trace_start"() <{level = 10 : i32, message = "bqd,bkd->bqk"}> : () -> ()
    %cst_51 = arith.constant dense<0.000000e+00> : vector<2x24x24xf32>
    %133 = tpu.matmul %128, %130, %cst_51 {dimension_numbers = #tpu.dot_dimension_numbers<[2], [2], [1], [1], [0, 0, 0, 1, 1, 1], [0], [0]>} : vector<2x24x8xbf16>, vector<2x24x8xbf16>, vector<2x24x24xf32> -> vector<2x24x24xf32>
    "tpu.trace_stop"() : () -> ()
    %cst_52 = arith.constant 0.353553385 : f32
    %134 = vector.broadcast %cst_52 : f32 to vector<2x24x24xf32>
    %135 = arith.mulf %133, %134 : vector<2x24x24xf32>
    %136 = vector.shape_cast %38 : vector<1x24xf32> to vector<1x1x24xf32>
    %137 = vector.broadcast %136 : vector<1x1x24xf32> to vector<2x24x24xf32>
    %138 = arith.addf %135, %137 : vector<2x24x24xf32>
    %cst_53 = arith.constant dense<0xFF800000> : vector<2x24xf32>
    %139 = vector.multi_reduction <maximumf>, %138, %cst_53 [2] : vector<2x24x24xf32> to vector<2x24xf32>
    %140 = vector.shape_cast %139 : vector<2x24xf32> to vector<2x24x1xf32>
    %141 = vector.broadcast %140 : vector<2x24x1xf32> to vector<2x24x24xf32>
    %142 = arith.subf %138, %141 : vector<2x24x24xf32>
    %143 = math.exp %142 : vector<2x24x24xf32>
    %cst_54 = arith.constant dense<0.000000e+00> : vector<2x24xf32>
    %144 = vector.multi_reduction <add>, %143, %cst_54 [2] : vector<2x24x24xf32> to vector<2x24xf32>
    %145 = vector.shape_cast %144 : vector<2x24xf32> to vector<2x24x1xf32>
    %146 = vector.broadcast %145 : vector<2x24x1xf32> to vector<2x24x24xf32>
    %147 = arith.divf %143, %146 : vector<2x24x24xf32>
    %148 = arith.truncf %147 : vector<2x24x24xf32> to vector<2x24x24xbf16>
    "tpu.trace_start"() <{level = 10 : i32, message = "bqk,bkd->bqd"}> : () -> ()
    %cst_55 = arith.constant dense<0.000000e+00> : vector<2x24x8xf32>
    %149 = tpu.matmul %148, %132, %cst_55 {dimension_numbers = #tpu.dot_dimension_numbers<[2], [1], [1], [2], [0, 0, 0, 1, 1, 2], [0], [0]>} : vector<2x24x24xbf16>, vector<2x24x8xbf16>, vector<2x24x8xf32> -> vector<2x24x8xf32>
    "tpu.trace_stop"() : () -> ()
    %150 = vector.shape_cast %149 : vector<2x24x8xf32> to vector<48x8xf32>
    %151 = arith.truncf %150 : vector<48x8xf32> to vector<48x8xbf16>
    %c0_56 = arith.constant 0 : index
    %c3 = arith.constant 3 : index
    %c0_57 = arith.constant 0 : index
    %c0_58 = arith.constant 0 : index
    %152 = vector.load %arg11[%c0_56, %c3, %c0_57, %c0_58] : memref<1x4x8x32xbf16, #tpu.memory_space<vmem>>, vector<1x1x8x32xbf16>
    %153 = vector.shape_cast %152 : vector<1x1x8x32xbf16> to vector<8x32xbf16>
    %cst_59 = arith.constant dense<0.000000e+00> : vector<48x32xf32>
    %154 = tpu.matmul %151, %153, %cst_59 {dimension_numbers = #tpu.dot_dimension_numbers<[1], [0], [0], [1], [0, 0, 1, 1], [], []>} : vector<48x8xbf16>, vector<8x32xbf16>, vector<48x32xf32> -> vector<48x32xf32>
    %155 = arith.addf %126, %154 : vector<48x32xf32>
    %156 = arith.addf %4, %155 : vector<48x32xf32>
    %c0_60 = arith.constant 0 : index
    %c0_61 = arith.constant 0 : index
    %c0_62 = arith.constant 0 : index
    %157 = vector.load %arg12[%c0_60, %c0_61, %c0_62] : memref<1x1x32xf32, #tpu.memory_space<vmem>>, vector<1x1x32xf32>
    %158 = vector.shape_cast %157 : vector<1x1x32xf32> to vector<1x32xf32>
    %159 = vector.broadcast %158 : vector<1x32xf32> to vector<48x32xf32>
    %160 = arith.addf %156, %159 : vector<48x32xf32>
    %c0_63 = arith.constant 0 : index
    %c0_64 = arith.constant 0 : index
    %c0_65 = arith.constant 0 : index
    %161 = vector.load %arg13[%c0_63, %c0_64, %c0_65] : memref<1x1x32xf32, #tpu.memory_space<vmem>>, vector<1x1x32xf32>
    %162 = vector.shape_cast %161 : vector<1x1x32xf32> to vector<1x32xf32>
    %c0_66 = arith.constant 0 : index
    %c0_67 = arith.constant 0 : index
    %c0_68 = arith.constant 0 : index
    %163 = vector.load %arg14[%c0_66, %c0_67, %c0_68] : memref<1x1x32xf32, #tpu.memory_space<vmem>>, vector<1x1x32xf32>
    %164 = vector.shape_cast %163 : vector<1x1x32xf32> to vector<1x32xf32>
    %cst_69 = arith.constant dense<0.000000e+00> : vector<48xf32>
    %165 = vector.multi_reduction <add>, %160, %cst_69 [1] : vector<48x32xf32> to vector<48xf32>
    %166 = vector.shape_cast %165 : vector<48xf32> to vector<48x1xf32>
    %cst_70 = arith.constant 3.200000e+01 : f32
    %167 = vector.broadcast %cst_70 : f32 to vector<48x1xf32>
    %168 = arith.divf %166, %167 : vector<48x1xf32>
    %169 = vector.broadcast %168 : vector<48x1xf32> to vector<48x32xf32>
    %170 = arith.subf %160, %169 : vector<48x32xf32>
    %171 = arith.mulf %170, %170 : vector<48x32xf32>
    %cst_71 = arith.constant dense<0.000000e+00> : vector<48xf32>
    %172 = vector.multi_reduction <add>, %171, %cst_71 [1] : vector<48x32xf32> to vector<48xf32>
    %173 = vector.shape_cast %172 : vector<48xf32> to vector<48x1xf32>
    %cst_72 = arith.constant 3.200000e+01 : f32
    %174 = vector.broadcast %cst_72 : f32 to vector<48x1xf32>
    %175 = arith.divf %173, %174 : vector<48x1xf32>
    %cst_73 = arith.constant 9.99999974E-6 : f32
    %176 = vector.broadcast %cst_73 : f32 to vector<48x1xf32>
    %177 = arith.addf %175, %176 : vector<48x1xf32>
    %178 = math.rsqrt %177 : vector<48x1xf32>
    %179 = vector.broadcast %178 : vector<48x1xf32> to vector<48x32xf32>
    %180 = arith.mulf %170, %179 : vector<48x32xf32>
    %181 = vector.broadcast %162 : vector<1x32xf32> to vector<48x32xf32>
    %182 = arith.mulf %180, %181 : vector<48x32xf32>
    %183 = vector.broadcast %164 : vector<1x32xf32> to vector<48x32xf32>
    %184 = arith.addf %182, %183 : vector<48x32xf32>
    %185 = arith.truncf %184 : vector<48x32xf32> to vector<48x32xbf16>
    %c0_74 = arith.constant 0 : index
    %c0_75 = arith.constant 0 : index
    %c0_76 = arith.constant 0 : index
    %186 = vector.load %arg15[%c0_74, %c0_75, %c0_76] : memref<1x32x128xbf16, #tpu.memory_space<vmem>>, vector<1x32x128xbf16>
    %187 = vector.shape_cast %186 : vector<1x32x128xbf16> to vector<32x128xbf16>
    %cst_77 = arith.constant dense<0.000000e+00> : vector<48x128xf32>
    %188 = tpu.matmul %185, %187, %cst_77 {dimension_numbers = #tpu.dot_dimension_numbers<[1], [0], [0], [1], [0, 0, 1, 1], [], []>} : vector<48x32xbf16>, vector<32x128xbf16>, vector<48x128xf32> -> vector<48x128xf32>
    %c0_78 = arith.constant 0 : index
    %c0_79 = arith.constant 0 : index
    %c0_80 = arith.constant 0 : index
    %189 = vector.load %arg16[%c0_78, %c0_79, %c0_80] : memref<1x1x128xf32, #tpu.memory_space<vmem>>, vector<1x1x128xf32>
    %190 = vector.shape_cast %189 : vector<1x1x128xf32> to vector<1x128xf32>
    %191 = vector.broadcast %190 : vector<1x128xf32> to vector<48x128xf32>
    %192 = arith.addf %188, %191 : vector<48x128xf32>
    %cst_81 = arith.constant 1.702000e+00 : f32
    %193 = vector.broadcast %cst_81 : f32 to vector<48x128xf32>
    %194 = arith.mulf %193, %192 : vector<48x128xf32>
    %195 = arith.negf %194 : vector<48x128xf32>
    %196 = math.exp %195 : vector<48x128xf32>
    %cst_82 = arith.constant 1.000000e+00 : f32
    %197 = vector.broadcast %cst_82 : f32 to vector<48x128xf32>
    %198 = arith.addf %197, %196 : vector<48x128xf32>
    %199 = arith.divf %197, %198 : vector<48x128xf32>
    %200 = arith.mulf %192, %199 : vector<48x128xf32>
    %201 = arith.truncf %200 : vector<48x128xf32> to vector<48x128xbf16>
    %c0_83 = arith.constant 0 : index
    %c0_84 = arith.constant 0 : index
    %c0_85 = arith.constant 0 : index
    %202 = vector.load %arg17[%c0_83, %c0_84, %c0_85] : memref<1x128x32xbf16, #tpu.memory_space<vmem>>, vector<1x128x32xbf16>
    %203 = vector.shape_cast %202 : vector<1x128x32xbf16> to vector<128x32xbf16>
    %cst_86 = arith.constant dense<0.000000e+00> : vector<48x32xf32>
    %204 = tpu.matmul %201, %203, %cst_86 {dimension_numbers = #tpu.dot_dimension_numbers<[1], [0], [0], [1], [0, 0, 1, 1], [], []>} : vector<48x128xbf16>, vector<128x32xbf16>, vector<48x32xf32> -> vector<48x32xf32>
    %c0_87 = arith.constant 0 : index
    %c0_88 = arith.constant 0 : index
    %c0_89 = arith.constant 0 : index
    %205 = vector.load %arg18[%c0_87, %c0_88, %c0_89] : memref<1x1x32xf32, #tpu.memory_space<vmem>>, vector<1x1x32xf32>
    %206 = vector.shape_cast %205 : vector<1x1x32xf32> to vector<1x32xf32>
    %207 = vector.broadcast %206 : vector<1x32xf32> to vector<48x32xf32>
    %208 = arith.addf %204, %207 : vector<48x32xf32>
    %209 = arith.addf %160, %208 : vector<48x32xf32>
    %210 = vector.shape_cast %209 : vector<48x32xf32> to vector<2x24x32xf32>
    %c0_90 = arith.constant 0 : index
    %c0_91 = arith.constant 0 : index
    %c0_92 = arith.constant 0 : index
    %211 = vector.load %arg26[%c0_90, %c0_91, %c0_92] : memref<2x24x32xf32, #tpu.memory_space<vmem>>, vector<2x24x32xf32>
    tpu.vector_store %arg26[%c0_90, %c0_91, %c0_92], %210 {strides = array<i32>} : memref<2x24x32xf32, #tpu.memory_space<vmem>>, vector<2x24x32xf32>,
    %c1_i32 = arith.constant 1 : i32
    %212 = arith.cmpi eq, %arg0, %c1_i32 : i32
    %213 = arith.extui %212 : i1 to i32
    %c0_i32_93 = arith.constant 0 : i32
    %214 = arith.cmpi ne, %213, %c0_i32_93 : i32
    scf.if %214 {
      %215 = vector.shape_cast %209 : vector<48x32xf32> to vector<2x24x32xf32>
      %216 = vector.extract_strided_slice %215 {offsets = [0, 0, 0], sizes = [2, 1, 32], strides = [1, 1, 1]} : vector<2x24x32xf32> to vector<2x1x32xf32>
      %217 = vector.shape_cast %216 : vector<2x1x32xf32> to vector<2x32xf32>
      %c0_94 = arith.constant 0 : index
      %c0_95 = arith.constant 0 : index
      %218 = vector.load %arg19[%c0_94, %c0_95] : memref<1x32xf32, #tpu.memory_space<vmem>>, vector<1x32xf32>
      %c0_96 = arith.constant 0 : index
      %c0_97 = arith.constant 0 : index
      %219 = vector.load %arg20[%c0_96, %c0_97] : memref<1x32xf32, #tpu.memory_space<vmem>>, vector<1x32xf32>
      %cst_98 = arith.constant dense<0.000000e+00> : vector<2xf32>
      %220 = vector.multi_reduction <add>, %217, %cst_98 [1] : vector<2x32xf32> to vector<2xf32>
      %221 = vector.shape_cast %220 : vector<2xf32> to vector<2x1xf32>
      %cst_99 = arith.constant 3.200000e+01 : f32
      %222 = vector.broadcast %cst_99 : f32 to vector<2x1xf32>
      %223 = arith.divf %221, %222 : vector<2x1xf32>
      %224 = vector.broadcast %223 : vector<2x1xf32> to vector<2x32xf32>
      %225 = arith.subf %217, %224 : vector<2x32xf32>
      %226 = arith.mulf %225, %225 : vector<2x32xf32>
      %cst_100 = arith.constant dense<0.000000e+00> : vector<2xf32>
      %227 = vector.multi_reduction <add>, %226, %cst_100 [1] : vector<2x32xf32> to vector<2xf32>
      %228 = vector.shape_cast %227 : vector<2xf32> to vector<2x1xf32>
      %cst_101 = arith.constant 3.200000e+01 : f32
      %229 = vector.broadcast %cst_101 : f32 to vector<2x1xf32>
      %230 = arith.divf %228, %229 : vector<2x1xf32>
      %cst_102 = arith.constant 9.99999974E-6 : f32
      %231 = vector.broadcast %cst_102 : f32 to vector<2x1xf32>
      %232 = arith.addf %230, %231 : vector<2x1xf32>
      %233 = math.rsqrt %232 : vector<2x1xf32>
      %234 = vector.broadcast %233 : vector<2x1xf32> to vector<2x32xf32>
      %235 = arith.mulf %225, %234 : vector<2x32xf32>
      %236 = vector.broadcast %218 : vector<1x32xf32> to vector<2x32xf32>
      %237 = arith.mulf %235, %236 : vector<2x32xf32>
      %238 = vector.broadcast %219 : vector<1x32xf32> to vector<2x32xf32>
      %239 = arith.addf %237, %238 : vector<2x32xf32>
      %240 = arith.truncf %239 : vector<2x32xf32> to vector<2x32xbf16>
      %c0_103 = arith.constant 0 : index
      %c0_104 = arith.constant 0 : index
      %241 = vector.load %arg21[%c0_103, %c0_104] : memref<32x512xbf16, #tpu.memory_space<vmem>>, vector<32x512xbf16>
      %cst_105 = arith.constant dense<0.000000e+00> : vector<2x512xf32>
      %242 = tpu.matmul %240, %241, %cst_105 {dimension_numbers = #tpu.dot_dimension_numbers<[1], [0], [0], [1], [0, 0, 1, 1], [], []>} : vector<2x32xbf16>, vector<32x512xbf16>, vector<2x512xf32> -> vector<2x512xf32>
      %c0_106 = arith.constant 0 : index
      %c0_107 = arith.constant 0 : index
      %243 = vector.load %arg22[%c0_106, %c0_107] : memref<1x512xf32, #tpu.memory_space<vmem>>, vector<1x512xf32>
      %244 = vector.broadcast %243 : vector<1x512xf32> to vector<2x512xf32>
      %245 = arith.addf %242, %244 : vector<2x512xf32>
      %cst_108 = arith.constant 0.000000e+00 : f32
      %246 = vector.broadcast %cst_108 : f32 to vector<2x512xf32>
      %247 = arith.maximumf %245, %246 : vector<2x512xf32>
      %248 = arith.truncf %247 : vector<2x512xf32> to vector<2x512xbf16>
      %c0_109 = arith.constant 0 : index
      %c0_110 = arith.constant 0 : index
      %249 = vector.load %arg23[%c0_109, %c0_110] : memref<512x128xbf16, #tpu.memory_space<vmem>>, vector<512x128xbf16>
      %cst_111 = arith.constant dense<0.000000e+00> : vector<2x128xf32>
      %250 = tpu.matmul %248, %249, %cst_111 {dimension_numbers = #tpu.dot_dimension_numbers<[1], [0], [0], [1], [0, 0, 1, 1], [], []>} : vector<2x512xbf16>, vector<512x128xbf16>, vector<2x128xf32> -> vector<2x128xf32>
      %c0_112 = arith.constant 0 : index
      %c0_113 = arith.constant 0 : index
      %251 = vector.load %arg24[%c0_112, %c0_113] : memref<1x128xf32, #tpu.memory_space<vmem>>, vector<1x128xf32>
      %252 = vector.broadcast %251 : vector<1x128xf32> to vector<2x128xf32>
      %253 = arith.addf %250, %252 : vector<2x128xf32>
      %c0_114 = arith.constant 0 : index
      %c0_115 = arith.constant 0 : index
      %254 = vector.load %arg25[%c0_114, %c0_115] : memref<2x128xf32, #tpu.memory_space<vmem>>, vector<2x128xf32>
      tpu.vector_store %arg25[%c0_114, %c0_115], %253 {strides = array<i32>} : memref<2x128xf32, #tpu.memory_space<vmem>>, vector<2x128xf32>,
    } else {
    }
    return
  }
  func.func @transform_0(%arg0: i32) -> (i32, i32, i32) {
    %c0_i32 = arith.constant 0 : i32
    %c0_i32_0 = arith.constant 0 : i32
    %c0_i32_1 = arith.constant 0 : i32
    %c0_i32_2 = arith.constant 0 : i32
    return %c0_i32, %c0_i32_0, %c0_i32_1 : i32, i32, i32
  }
  func.func @transform_1(%arg0: i32) -> (i32, i32) {
    %c0_i32 = arith.constant 0 : i32
    %c0_i32_0 = arith.constant 0 : i32
    %c0_i32_1 = arith.constant 0 : i32
    return %c0_i32, %c0_i32_0 : i32, i32
  }
  func.func @transform_2(%arg0: i32) -> (i32, i32) {
    %c0_i32 = arith.constant 0 : i32
    %c0_i32_0 = arith.constant 0 : i32
    %c0_i32_1 = arith.constant 0 : i32
    return %c0_i32, %c0_i32_0 : i32, i32
  }
  func.func @transform_3(%arg0: i32) -> (i32, i32) {
    %c0_i32 = arith.constant 0 : i32
    %c0_i32_0 = arith.constant 0 : i32
    %c0_i32_1 = arith.constant 0 : i32
    return %c0_i32, %c0_i32_0 : i32, i32
  }
  func.func @transform_4(%arg0: i32) -> (i32, i32) {
    %c0_i32 = arith.constant 0 : i32
    %c0_i32_0 = arith.constant 0 : i32
    %c0_i32_1 = arith.constant 0 : i32
    return %c0_i32, %c0_i32_0 : i32, i32
  }
  func.func @transform_5(%arg0: i32) -> (i32, i32) {
    %c0_i32 = arith.constant 0 : i32
    %c0_i32_0 = arith.constant 0 : i32
    %c0_i32_1 = arith.constant 0 : i32
    return %c0_i32, %c0_i32_0 : i32, i32
  }
  func.func @transform_6(%arg0: i32) -> (i32, i32, i32) {
    %c0_i32 = arith.constant 0 : i32
    %c0_i32_0 = arith.constant 0 : i32
    %c0_i32_1 = arith.constant 0 : i32
    return %arg0, %c0_i32, %c0_i32_0 : i32, i32, i32
  }
  func.func @transform_7(%arg0: i32) -> (i32, i32, i32) {
    %c0_i32 = arith.constant 0 : i32
    %c0_i32_0 = arith.constant 0 : i32
    %c0_i32_1 = arith.constant 0 : i32
    return %arg0, %c0_i32, %c0_i32_0 : i32, i32, i32
  }
  func.func @transform_8(%arg0: i32) -> (i32, i32, i32) {
    %c0_i32 = arith.constant 0 : i32
    %c0_i32_0 = arith.constant 0 : i32
    %c0_i32_1 = arith.constant 0 : i32
    return %arg0, %c0_i32, %c0_i32_0 : i32, i32, i32
  }
  func.func @transform_9(%arg0: i32) -> (i32, i32, i32) {
    %c0_i32 = arith.constant 0 : i32
    %c0_i32_0 = arith.constant 0 : i32
    %c0_i32_1 = arith.constant 0 : i32
    return %arg0, %c0_i32, %c0_i32_0 : i32, i32, i32
  }
  func.func @transform_10(%arg0: i32) -> (i32, i32, i32, i32) {
    %c0_i32 = arith.constant 0 : i32
    %c0_i32_0 = arith.constant 0 : i32
    %c0_i32_1 = arith.constant 0 : i32
    %c0_i32_2 = arith.constant 0 : i32
    return %arg0, %c0_i32, %c0_i32_0, %c0_i32_1 : i32, i32, i32, i32
  }
  func.func @transform_11(%arg0: i32) -> (i32, i32, i32) {
    %c0_i32 = arith.constant 0 : i32
    %c0_i32_0 = arith.constant 0 : i32
    %c0_i32_1 = arith.constant 0 : i32
    return %arg0, %c0_i32, %c0_i32_0 : i32, i32, i32
  }
  func.func @transform_12(%arg0: i32) -> (i32, i32, i32) {
    %c0_i32 = arith.constant 0 : i32
    %c0_i32_0 = arith.constant 0 : i32
    %c0_i32_1 = arith.constant 0 : i32
    return %arg0, %c0_i32, %c0_i32_0 : i32, i32, i32
  }
  func.func @transform_13(%arg0: i32) -> (i32, i32, i32) {
    %c0_i32 = arith.constant 0 : i32
    %c0_i32_0 = arith.constant 0 : i32
    %c0_i32_1 = arith.constant 0 : i32
    return %arg0, %c0_i32, %c0_i32_0 : i32, i32, i32
  }
  func.func @transform_14(%arg0: i32) -> (i32, i32, i32) {
    %c0_i32 = arith.constant 0 : i32
    %c0_i32_0 = arith.constant 0 : i32
    %c0_i32_1 = arith.constant 0 : i32
    return %arg0, %c0_i32, %c0_i32_0 : i32, i32, i32
  }
  func.func @transform_15(%arg0: i32) -> (i32, i32, i32) {
    %c0_i32 = arith.constant 0 : i32
    %c0_i32_0 = arith.constant 0 : i32
    %c0_i32_1 = arith.constant 0 : i32
    return %arg0, %c0_i32, %c0_i32_0 : i32, i32, i32
  }
  func.func @transform_16(%arg0: i32) -> (i32, i32, i32) {
    %c0_i32 = arith.constant 0 : i32
    %c0_i32_0 = arith.constant 0 : i32
    %c0_i32_1 = arith.constant 0 : i32
    return %arg0, %c0_i32, %c0_i32_0 : i32, i32, i32
  }
  func.func @transform_17(%arg0: i32) -> (i32, i32, i32) {
    %c0_i32 = arith.constant 0 : i32
    %c0_i32_0 = arith.constant 0 : i32
    %c0_i32_1 = arith.constant 0 : i32
    return %arg0, %c0_i32, %c0_i32_0 : i32, i32, i32
  }
  func.func @transform_18(%arg0: i32) -> (i32, i32) {
    %c0_i32 = arith.constant 0 : i32
    %c0_i32_0 = arith.constant 0 : i32
    %c0_i32_1 = arith.constant 0 : i32
    return %c0_i32, %c0_i32_0 : i32, i32
  }
  func.func @transform_19(%arg0: i32) -> (i32, i32) {
    %c0_i32 = arith.constant 0 : i32
    %c0_i32_0 = arith.constant 0 : i32
    %c0_i32_1 = arith.constant 0 : i32
    return %c0_i32, %c0_i32_0 : i32, i32
  }
  func.func @transform_20(%arg0: i32) -> (i32, i32) {
    %c0_i32 = arith.constant 0 : i32
    %c0_i32_0 = arith.constant 0 : i32
    %c0_i32_1 = arith.constant 0 : i32
    return %c0_i32, %c0_i32_0 : i32, i32
  }
  func.func @transform_21(%arg0: i32) -> (i32, i32) {
    %c0_i32 = arith.constant 0 : i32
    %c0_i32_0 = arith.constant 0 : i32
    %c0_i32_1 = arith.constant 0 : i32
    return %c0_i32, %c0_i32_0 : i32, i32
  }
  func.func @transform_22(%arg0: i32) -> (i32, i32) {
    %c0_i32 = arith.constant 0 : i32
    %c0_i32_0 = arith.constant 0 : i32
    %c0_i32_1 = arith.constant 0 : i32
    return %c0_i32, %c0_i32_0 : i32, i32
  }
  func.func @transform_23(%arg0: i32) -> (i32, i32) {
    %c0_i32 = arith.constant 0 : i32
    %c0_i32_0 = arith.constant 0 : i32
    %c0_i32_1 = arith.constant 0 : i32
    return %c0_i32, %c0_i32_0 : i32, i32
  }
  func.func @transform_24(%arg0: i32) -> (i32, i32) {
    %c0_i32 = arith.constant 0 : i32
    %c0_i32_0 = arith.constant 0 : i32
    %c0_i32_1 = arith.constant 0 : i32
    return %c0_i32, %c0_i32_0 : i32, i32
  }
}

</mosaic_0001>

<bundles_post_ra>
// kernel: accomm_classifier_forward.1
= control target key start
LH: loop header
LB: loop body
LE: loop exit
PB: predicated region body
PF: predicated region fallthrough
CT: control target
= control target key end

     0   :  { %s6041_s0 = inlined_call_operand.vmem [shape: f32[2,24,48], index: 0, kind: input, shape index: {}]   ;;  %s6042_s1 = inlined_call_operand.vmem [shape: f32[1,24], index: 1, kind: input, shape index: {}]   ;;  %s6043_s2 = inlined_call_operand.vmem [shape: bf16[48,32], index: 2, kind: input, shape index: {}]   ;;  %s6044_s3 = inlined_call_operand.vmem [shape: f32[24,32], index: 3, kind: input, shape index: {}]   ;;  %s6045_s4 = inlined_call_operand.vmem [shape: f32[1,32], index: 4, kind: input, shape index: {}]   ;;  %s6046_s5 = inlined_call_operand.vmem [shape: f32[1,32], index: 5, kind: input, shape index: {}]   ;;  %s6047_s6 = inlined_call_operand.vmem [shape: f32[2,1,32], index: 6, kind: input, shape index: {}]   ;;  %s6048_s7 = inlined_call_operand.vmem [shape: f32[2,1,32], index: 7, kind: input, shape index: {}]   ;;  %s6049_s8 = inlined_call_operand.vmem [shape: bf16[2,32,96], index: 8, kind: input, shape index: {}]   ;;  %s6050_s9 = inlined_call_operand.vmem [shape: f32[2,1,96], index: 9, kind: input, shape index: {}]   ;;  %s6051_s10 = inlined_call_operand.vmem [shape: bf16[2,4,8,32], index: 10, kind: input, shape index: {}]   ;;  %s6052_s11 = inlined_call_operand.vmem [shape: f32[2,1,32], index: 11, kind: input, shape index: {}]   ;;  %s6053_s12 = inlined_call_operand.vmem [shape: f32[2,1,32], index: 12, kind: input, shape index: {}]   ;;  %s6054_s13 = inlined_call_operand.vmem [shape: f32[2,1,32], index: 13, kind: input, shape index: {}]   ;;  %s6055_s14 = inlined_call_operand.vmem [shape: bf16[2,32,128], index: 14, kind: input, shape index: {}]   ;;  %s6056_s15 = inlined_call_operand.vmem [shape: f32[2,1,128], index: 15, kind: input, shape index: {}]   ;;  %s6057_s16 = inlined_call_operand.vmem [shape: bf16[2,128,32], index: 16, kind: input, shape index: {}]   ;;  %s6058_s17 = inlined_call_operand.vmem [shape: f32[2,1,32], index: 17, kind: input, shape index: {}]   ;;  %s6059_s18 = inlined_call_operand.vmem [shape: f32[1,32], index: 18, kind: input, shape index: {}]   ;;  %s6060_s19 = inlined_call_operand.vmem [shape: f32[1,32], index: 19, kind: input, shape index: {}]   ;;  %s6061_s20 = inlined_call_operand.vmem [shape: bf16[32,512], index: 20, kind: input, shape index: {}]   ;;  %s6062_s21 = inlined_call_operand.vmem [shape: f32[1,512], index: 21, kind: input, shape index: {}]   ;;  %s6063_s22 = inlined_call_operand.vmem [shape: bf16[512,128], index: 22, kind: input, shape index: {}]   ;;  %s6064_s23 = inlined_call_operand.vmem [shape: f32[1,128], index: 23, kind: input, shape index: {}]   ;;  %s6065_s24 = inlined_call_operand.hbm [shape: f32[2,128], index: 24, kind: output, shape index: {}]  }
   0x1   :  { %6071 = sst [smem:[#allocation7_spill]] %s6041_s0 }
   0x2   :  { %6072 = sst [smem:[#allocation8_spill]] %s6042_s1 }
   0x3   :  { %6073 = sst [smem:[#allocation9_spill]] %s6043_s2 }
   0x4   :  { %6074 = sst [smem:[#allocation10_spill]] %s6044_s3 }
   0x5   :  { %6075 = sst [smem:[#allocation11_spill]] %s6045_s4 }
   0x6   :  { %6076 = sst [smem:[#allocation12_spill]] %s6046_s5 }
   0x7   :  { %6077 = sst [smem:[#allocation13_spill]] %s6047_s6 }
   0x8   :  { %6078 = sst [smem:[#allocation14_spill]] %s6048_s7 }
   0x9   :  { %6079 = sst [smem:[#allocation15_spill]] %s6049_s8 }
   0xa   :  { %6080 = sst [smem:[#allocation16_spill]] %s6051_s10 }
   0xb   :  { %6081 = sst [smem:[#allocation17_spill]] %s6059_s18 }
   0xc   :  { %6082 = sst [smem:[#allocation18_spill]] %s6060_s19 }
   0xd   :  { %6083 = sst [smem:[#allocation19_spill]] %s6062_s21 }
   0xe   :  { %6084 = sst [smem:[#allocation20_spill]] %s6064_s23 }
   0xf   :  { %6085 = sst [smem:[#allocation21_spill]] %s6065_s24 }
  0x10   :  { %29 = vsyncpa [#allocation4], 0  ;;  %s5176_s5 = smov 0  }
  0x11 LB: > { %6086 = sst [smem:[#allocation6_spill]] %s5032_s5  ;;  %s5182_s26 = sadd.s32 4294967295, %s5032_s5   ;;  %s5032_s5 = sphi %s5176_s5, %s35_s5  }
  0x12   : > { %p4148_p0 = scmp.ge.s32.totalorder %s5032_s5, 1  ;;  %p752_p1 = scmp.lt.s32.totalorder %s5032_s5, 3 }
  0x14   : > { %p753_p2 = pnand %p4148_p0, %p752_p1 }
  0x15   : > { %p852_p3 = scmp.lt.s32.totalorder (!%p753_p2), %s5182_s26, 1  ;;  %s6089_s5 = sld [smem:[#allocation15_spill]] (!%p753_p2) }
  0x16   : > { %756 = sbr.rel (%p753_p2) target bundleno = 5782 (0x1696), region = 116  ;;  %s6090_s10 = sld [smem:[#allocation16_spill]] (!%p753_p2) }
  0x17   : > { %p4157_p4 = scmp.ne.s32.totalorder (!%p753_p2), %s5182_s26, 0 }
  0x1b   : > { %s5188_s27 = scalar_select %p852_p3, %s5182_s26, 1 }
  0x1c   : > { %s6091_s28 = sld [smem:[#allocation9_spill]] (!%p4157_p4) }
  0x1d   : > { %s4296_s25 = sshll.u32 %s5188_s27, 4  ;;  %s876_s3 = scalar_lea.vmem %s6053_s12, %s5188_s27 }
  0x1e   : > { %s5206_s24 = scalar_lea.vmem %s6089_s5, %s4296_s25  ;;  %s5211_s19 = scalar_lea.vmem %s6090_s10, %s4296_s25 }
  0x1f   : > { %s879_s1 = scalar_lea.vmem %s6054_s13, %s5188_s27  ;;  %s5228_s6 = scalar_lea.vmem %s6055_s14, %s4296_s25 }
  0x20   : > { %s887_s10 = scalar_lea.vmem %s6056_s15, %s5188_s27  ;;  %s4299_s18 = sshll.u32 %s5188_s27, 6 }
  0x21   : > { %s5238_s0 = scalar_lea.vmem %s6057_s16, %s4299_s18  ;;  %900 = sbr.rel (%p4157_p4) target bundleno = 567 (0x237), region = 120 }
  0x22   : > { %s6092_s7 = sld [smem:[#allocation7_spill]] (!%p4157_p4) }
  0x23   : > { %s6093_s4 = sld [smem:[#allocation10_spill]] (!%p4157_p4) }
  0x24   : > { %s6094_s2 = sld [smem:[#allocation11_spill]] (!%p4157_p4) }
  0x25   : > { %s6095_s25 = sld [smem:[#allocation12_spill]] (!%p4157_p4) }
  0x26   : > { %v4774_v0 = vld [vmem:[%s6091_s28 + $0x10] sm:$0xff]   ;;  %v5034_v1 = vmov 0.0   ;;  %v4775_v2 = vld [vmem:[%s6091_s28 + $0x8] sm:$0xff]   ;;  %vm5035_vm0 = vmmov 0   ;;  %v4776_v3 = vld [vmem:[%s6091_s28] sm:$0xff]   ;;  %vm934_vm1 = vcmask 392192  }
  0x27   : > { %4451 = vmatprep.subr.bf16.mxu0 %v5034_v1  ;;  %4713 = vmatprep.subr.bf16.mxu1 %v5034_v1  ;;  %vm1012_vm2 = vcmask 261120  }
  0x28   : > { %4452 = vmatpush3.bf16.msra.mxu0 %v4774_v0  ;;  %4716 = vmatpush3.bf16.msra.mxu1 %v4774_v0  ;;  %v901_v4 = vld [vmem:[%s6092_s7] sm:$0xff]  ;;  %v902_v5 = vld [vmem:[%s6092_s7 + $0x8] sm:$0xff]  ;;  %v903_v6 = vld [vmem:[%s6092_s7 + $0x10] sm:$0xff] }
  0x29   : > { %4453 = vmatprep.subr.bf16.mxu0 %v5034_v1  ;;  %4714 = vmatprep.subr.bf16.mxu1 %v5034_v1  ;;  %v904_v7 = vld [vmem:[%s6092_s7 + $0x18] sm:$0xff]  ;;  %v907_v8 = vpack.c.bf16 %v902_v5, %v901_v4  ;;  %v905_v10 = vld [vmem:[%s6092_s7 + $0x20] sm:$0xff]  ;;  %v906_v11 = vld [vmem:[%s6092_s7 + $0x28] sm:$0xff] }
  0x2a   : > { %4457 = vmatprep.mubr.msk.bf16.mxu0 %vm5035_vm0, %v5034_v1  ;;  %4461 = vmatprep.mubr.msk.bf16.mxu1 %vm5035_vm0, %v5034_v1  ;;  %v908_v9 = vpack.c.bf16 %v904_v7, %v903_v6  ;;  %v909_v12 = vpack.c.bf16 %v906_v11, %v905_v10  ;;  %v1001_v13 = vld [vmem:[%s6093_s4] sm:$0xff]  ;;  %v1003_v14 = vld [vmem:[%s6093_s4 + $0x10] sm:$0xff]  ;;  %v1002_v21 = vld [vmem:[%s6093_s4 + $0x8] sm:$0xff] }
  0x2c   : > { %4454 = vmatpush3.bf16.msra.mxu0 %v4775_v2  ;;  %4717 = vmatpush3.bf16.msra.mxu1 %v4775_v2 }
  0x2d   : > { %4455 = vmatprep.subr.bf16.mxu0 %v5034_v1  ;;  %4715 = vmatprep.subr.bf16.mxu1 %v5034_v1 }
  0x30   : > { %4456 = vmatpush3.bf16.msra.mxu0 %v4776_v3  ;;  %4718 = vmatpush3.bf16.msra.mxu1 %v4776_v3 }
  0x33   : > { %4458 = vmatmul.mubr.msk.bf16.vlgmr.msra.gmra.mxu0 %vm934_vm1, %v907_v8  ;;  %4462 = vmatmul.mubr.msk.bf16.vlgmr.msra.gmra.mxu1 %vm934_vm1, %v908_v9 }
  0x34   : > { %4465 = vmatprep.mubr.msk.bf16.mxu1 %vm5035_vm0, %v5034_v1 }
  0x3b   : > { %4466 = vmatmul.mubr.msk.bf16.gmra.mxu1 %vm934_vm1, %v909_v12 }
  0xf3   : > { %v978_v15 = vpop.f32.mrf.mxu0  ;;  %v986_v16 = vpop.f32.mrf.mxu1 }
  0xf4   : > { %v1004_v17 = vadd.f32 %v1001_v13, %v978_v15  ;;  %v1006_v18 = vadd.f32 %v1003_v14, %v986_v16 }
  0xf5   : > { %v4459_v19 = vpop.f32.mrf.mxu0  ;;  %v4463_v20 = vpop.f32.mrf.mxu1 }
  0xf6   : > { %v1019_v22 = vsel %vm1012_vm2, %v1006_v18, 0.0  ;;  %v1013_v23 = vsel %vm1012_vm2, %v1004_v17, 0.0 }
  0xf7   : > { %1020 = vadd.xlane.f32.xlu1 %v1019_v22  ;;  %v989_v24 = vpop.f32.mrf.mxu1  ;;  %1014 = vadd.xlane.f32.xlu0 %v1013_v23  ;;  %v981_v25 = vpop.f32.mrf.mxu0 }
  0xf8   : > { %v1007_v26 = vadd.f32 %v1001_v13, %v989_v24  ;;  %v1005_v27 = vadd.f32 %v1002_v21, %v981_v25  ;;  %v4164_v25 = vld [vmem:[%s6094_s2] ss:$0 sm:$0xff] }
  0xf9   : > { %v4460_v28 = vpop.f32.mrf.mxu0  ;;  %v4464_v29 = vpop.f32.mrf.mxu1 }
  0xfa   : > { %v1022_v30 = vsel %vm1012_vm2, %v1007_v26, 0.0  ;;  %v1016_v31 = vsel %vm1012_vm2, %v1005_v27, 0.0 }
  0xfb   : > { %1023 = vadd.xlane.f32.xlu1 %v1022_v30  ;;  %v994_v32 = vpop.f32.mrf.mxu1  ;;  %1017 = vadd.xlane.f32.xlu0 %v1016_v31 }
  0xfc   : > { %v1008_v33 = vadd.f32 %v1002_v21, %v994_v32 }
  0xfd   : > { %v4467_v34 = vpop.f32.mrf.mxu1 }
  0xfe   : > { %v1025_v35 = vsel %vm1012_vm2, %v1008_v33, 0.0 }
  0xff   : > { %v997_v36 = vpop.f32.mrf.mxu1  ;;  %1026 = vadd.xlane.f32.xlu0 %v1025_v35 }
 0x100   : > { %v1009_v37 = vadd.f32 %v1003_v14, %v997_v36 }
 0x101   : > { %v4468_v38 = vpop.f32.mrf.mxu1 }
 0x102   : > { %v1028_v39 = vsel %vm1012_vm2, %v1009_v37, 0.0 }
 0x103   : > { %1029 = vadd.xlane.f32.xlu1 %v1028_v39 }
 0x180   : > { %v1021_v40 = vpop.xlane.xlu1 %1020  ;;  %v1015_v41 = vpop.xlane.xlu0 %1014 }
 0x181   : > { %v1034_v42 = vmul.f32 0.03125, %v1021_v40  ;;  %v1032_v43 = vmul.f32 0.03125, %v1015_v41 }
 0x183   : > { %v5290_v44 = vsub.f32 %v1006_v18, %v1034_v42  ;;  %v1038_v45 = vsub.f32 %v1004_v17, %v1032_v43 }
 0x184   : > { %v1024_v46 = vpop.xlane.xlu1 %1023  ;;  %v1018_v47 = vpop.xlane.xlu0 %1017 }
 0x185   : > { %v1035_v48 = vmul.f32 0.03125, %v1024_v46  ;;  %v1033_v49 = vmul.f32 0.03125, %v1018_v47  ;;  %v1044_v50 = vmul.f32 %v1038_v45, %v1038_v45  ;;  %v1046_v54 = vmul.f32 %v5290_v44, %v5290_v44 }
 0x187   : > { %v5292_v51 = vsub.f32 %v1007_v26, %v1035_v48  ;;  %v1039_v52 = vsub.f32 %v1005_v27, %v1033_v49  ;;  %v1050_v53 = vsel %vm1012_vm2, %v1044_v50, 0.0  ;;  %v1056_v59 = vsel %vm1012_vm2, %v1046_v54, 0.0  ;;  %v4165_v27 = vld [vmem:[%s6095_s25] ss:$0 sm:$0xff] }
 0x188   : > { %1051 = vadd.xlane.f32.xlu0 %v1050_v53  ;;  %v1027_v55 = vpop.xlane.xlu0 %1026 }
 0x189   : > { %v1036_v56 = vmul.f32 0.03125, %v1027_v55  ;;  %v1045_v57 = vmul.f32 %v1039_v52, %v1039_v52  ;;  %v1047_v61 = vmul.f32 %v5292_v51, %v5292_v51 }
 0x18b   : > { %v1042_v58 = vsub.f32 %v1008_v33, %v1036_v56  ;;  %v1053_v60 = vsel %vm1012_vm2, %v1045_v57, 0.0  ;;  %v1059_v2 = vsel %vm1012_vm2, %v1047_v61, 0.0 }
 0x18c   : > { %v1030_v62 = vpop.xlane.xlu1 %1029  ;;  %1057 = vadd.xlane.f32.xlu0 %v1056_v59  ;;  %1054 = vadd.xlane.f32.xlu1 %v1053_v60 }
 0x18d   : > { %v1037_v63 = vmul.f32 0.03125, %v1030_v62  ;;  %v1048_v0 = vmul.f32 %v1042_v58, %v1042_v58 }
 0x18f   : > { %v1043_v1 = vsub.f32 %v1009_v37, %v1037_v63  ;;  %v1062_v3 = vsel %vm1012_vm2, %v1048_v0, 0.0 }
 0x190   : > { %1060 = vadd.xlane.f32.xlu1 %v1059_v2  ;;  %1063 = vadd.xlane.f32.xlu0 %v1062_v3 }
 0x191   : > { %v1049_v4 = vmul.f32 %v1043_v1, %v1043_v1 }
 0x193   : > { %v1065_v5 = vsel %vm1012_vm2, %v1049_v4, 0.0 }
 0x194   : > { %1066 = vadd.xlane.f32.xlu1 %v1065_v5 }
 0x211   : > { %v1052_v6 = vpop.xlane.xlu0 %1051 }
 0x212   : > { %v1068_v7 = vmul.f32 0.03125, %v1052_v6 }
 0x214   : > { %v1074_v8 = vadd.f32 1e-05, %v1068_v7 }
 0x215   : > { %v1055_v9 = vpop.xlane.xlu1 %1054  ;;  %v1058_v10 = vpop.xlane.xlu0 %1057 }
 0x216   : > { %4777 = vrsqrt.f32 %v1074_v8  ;;  %v1069_v11 = vmul.f32 0.03125, %v1055_v9  ;;  %v1070_v12 = vmul.f32 0.03125, %v1058_v10 }
 0x218   : > { %v1075_v13 = vadd.f32 1e-05, %v1069_v11  ;;  %v1076_v14 = vadd.f32 1e-05, %v1070_v12 }
 0x219   : > { %v1061_v15 = vpop.xlane.xlu1 %1060  ;;  %v1064_v16 = vpop.xlane.xlu0 %1063 }
 0x21a   : > { %4779 = vrsqrt.f32 %v1075_v13  ;;  %v1071_v17 = vmul.f32 0.03125, %v1061_v15  ;;  %v1072_v18 = vmul.f32 0.03125, %v1064_v16 }
 0x21b   : > { %4781 = vrsqrt.f32 %v1076_v14 }
 0x21c   : > { %v1077_v19 = vadd.f32 1e-05, %v1071_v17  ;;  %v1078_v20 = vadd.f32 1e-05, %v1072_v18 }
 0x21d   : > { %v1067_v21 = vpop.xlane.xlu1 %1066 }
 0x21e   : > { %4783 = vrsqrt.f32 %v1077_v19  ;;  %v1073_v22 = vmul.f32 0.03125, %v1067_v21 }
 0x21f   : > { %4785 = vrsqrt.f32 %v1078_v20 }
 0x220   : > { %v1079_v23 = vadd.f32 1e-05, %v1073_v22 }
 0x222   : > { %4787 = vrsqrt.f32 %v1079_v23 }
 0x223   : > { %v4778_v24 = vpop.eup %4777 }
 0x224   : > { %v1086_v26 = vmul.f32 %v4778_v24, %v1038_v45 }
 0x226   : > { %v1098_v28 = vmul.f32 %v4164_v25, %v1086_v26 }
 0x227   : > { %v4780_v29 = vpop.eup %4779 }
 0x228   : > { %v4782_v30 = vpop.eup %4781  ;;  %v1110_v31 = vadd.f32 %v4165_v27, %v1098_v28  ;;  %v1087_v32 = vmul.f32 %v4780_v29, %v1039_v52 }
 0x229   : > { %v1088_v33 = vmul.f32 %v4782_v30, %v5290_v44 }
 0x22a   : > { %1116 = vst.msk [vmem:[#allocation2] sm:$0xff] %vm1012_vm2, %v1110_v31  ;;  %v1099_v34 = vmul.f32 %v4164_v25, %v1087_v32 }
 0x22b   : > { %v4784_v35 = vpop.eup %4783  ;;  %v1100_v36 = vmul.f32 %v4164_v25, %v1088_v33 }
 0x22c   : > { %v4786_v37 = vpop.eup %4785  ;;  %v1111_v38 = vadd.f32 %v4165_v27, %v1099_v34  ;;  %v1089_v39 = vmul.f32 %v4784_v35, %v5292_v51 }
 0x22d   : > { %v1112_v40 = vadd.f32 %v4165_v27, %v1100_v36  ;;  %v1090_v41 = vmul.f32 %v4786_v37, %v1042_v58 }
 0x22e   : > { %1117 = vst.msk [vmem:[#allocation2 + $0x8] sm:$0xff] %vm1012_vm2, %v1111_v38  ;;  %v1101_v42 = vmul.f32 %v4164_v25, %v1089_v39 }
 0x22f   : > { %v4788_v43 = vpop.eup %4787  ;;  %1118 = vst.msk [vmem:[#allocation2 + $0x10] sm:$0xff] %vm1012_vm2, %v1112_v40  ;;  %v1102_v45 = vmul.f32 %v4164_v25, %v1090_v41 }
 0x230   : > { %v1113_v46 = vadd.f32 %v4165_v27, %v1101_v42  ;;  %v1091_v44 = vmul.f32 %v4788_v43, %v1043_v1 }
 0x231   : > { %v1114_v47 = vadd.f32 %v4165_v27, %v1102_v45 }
 0x232   : > { %1119 = vst.msk [vmem:[#allocation2 + $0x18] sm:$0xff] %vm1012_vm2, %v1113_v46  ;;  %v1103_v48 = vmul.f32 %v4164_v25, %v1091_v44 }
 0x233   : > { %1120 = vst.msk [vmem:[#allocation2 + $0x20] sm:$0xff] %vm1012_vm2, %v1114_v47 }
 0x234   : > { %v1115_v49 = vadd.f32 %v4165_v27, %v1103_v48 }
 0x236   : > { %1121 = vst.msk [vmem:[#allocation2 + $0x28] sm:$0xff] %vm1012_vm2, %v1115_v49 }
 0x237 PF: > { %v1122_v50 = vld [vmem:[#allocation2] sm:$0xff]  ;;  %vm1130_vm3 = vcmask 261120   ;;  %v1124_v51 = vld [vmem:[#allocation2 + $0x10] sm:$0xff]  ;;  %v1123_v52 = vld [vmem:[#allocation2 + $0x8] sm:$0xff]  ;;  %v5036_v29 = vmov 0.0   ;;  %vm5037_vm4 = vmmov 0  }
 0x238   : > { %v1131_v53 = vsel %vm1130_vm3, %v1122_v50, 0.0  ;;  %v1137_v54 = vsel %vm1130_vm3, %v1124_v51, 0.0  ;;  %v1134_v58 = vsel %vm1130_vm3, %v1123_v52, 0.0  ;;  %v4789_v28 = vld [vmem:[%s5206_s24 + $0x8] sm:$0xff]   ;;  %4469 = vmatprep.subr.bf16.mxu1 %v5036_v29  ;;  %4473 = vmatprep.mubr.msk.bf16.mxu1 %vm5037_vm4, %v5036_v29  ;;  %v4790_v30 = vld [vmem:[%s5206_s24] sm:$0xff]   ;;  %s6096_s21 = sld [smem:[#allocation13_spill]]  ;;  %s6100_s24 = scalar_lea.vmem %s6050_s9, %s5188_s27 }
 0x239   : > { %v1125_v55 = vld [vmem:[#allocation2 + $0x18] sm:$0xff]  ;;  %1132 = vadd.xlane.f32.xlu0 %v1131_v53  ;;  %1138 = vadd.xlane.f32.xlu1 %v1137_v54  ;;  %s6098_s2 = sld [smem:[#allocation14_spill]]  ;;  %vm1337_vm5 = vcmask 64512   ;;  %s5038_s5 = smov 96   ;;  %vm1482_vm6 = vcmask 195584   ;;  %vm1564_vm7 = vcmask 1043456  }
 0x23a   : > { %v1126_v56 = vld [vmem:[#allocation2 + $0x20] sm:$0xff]  ;;  %v1140_v59 = vsel %vm1130_vm3, %v1125_v55, 0.0  ;;  %4470 = vmatpush3.bf16.msra.mxu1 %v4789_v28  ;;  %s6101_s23 = sld [smem:[#allocation8_spill]]  ;;  %s5039_s29 = smov 64  }
 0x23b   : > { %v1143_v60 = vsel %vm1130_vm3, %v1126_v56, 0.0  ;;  %4471 = vmatprep.subr.bf16.mxu1 %v5036_v29  ;;  %s5042_s30 = smov 56   ;;  %s5043_s25 = smov 80  }
 0x23c   : > { %p4246_p5 = scmp.ne.s32.totalorder %s5182_s26, 1 }
 0x23d   : > { %v1127_v57 = vld [vmem:[#allocation2 + $0x28] sm:$0xff]  ;;  %1135 = vadd.xlane.f32.xlu0 %v1134_v58  ;;  %1141 = vadd.xlane.f32.xlu1 %v1140_v59 }
 0x23e   : > { %v1146_v61 = vsel %vm1130_vm3, %v1127_v57, 0.0  ;;  %4472 = vmatpush3.bf16.msra.mxu1 %v4790_v30  ;;  %s6097_s18 = scalar_lea.vmem %s6096_s21, %s5188_s27  ;;  %s5046_s21 = smov 72  }
 0x23f   : > { %s6099_s8 = scalar_lea.vmem %s6098_s2, %s5188_s27  ;;  %s5040_s2 = smov 88  }
 0x241   : > { %1144 = vadd.xlane.f32.xlu0 %v1143_v60  ;;  %1147 = vadd.xlane.f32.xlu1 %v1146_v61 }
 0x2c2   : > { %v1133_v62 = vpop.xlane.xlu0 %1132  ;;  %v1139_v63 = vpop.xlane.xlu1 %1138 }
 0x2c3   : > { %v1150_v0 = vmul.f32 0.03125, %v1133_v62  ;;  %v1152_v1 = vmul.f32 0.03125, %v1139_v63 }
 0x2c5   : > { %v5324_v2 = vsub.f32 %v1122_v50, %v1150_v0  ;;  %v5326_v3 = vsub.f32 %v1124_v51, %v1152_v1  ;;  %v4166_v51 = vld [vmem:[%s6097_s18] ss:$0 sm:$0xff]  ;;  %s5047_s18 = smov 104  }
 0x2c6   : > { %v1136_v4 = vpop.xlane.xlu0 %1135  ;;  %v1142_v5 = vpop.xlane.xlu1 %1141 }
 0x2c7   : > { %v1151_v6 = vmul.f32 0.03125, %v1136_v4  ;;  %v1153_v7 = vmul.f32 0.03125, %v1142_v5  ;;  %v1162_v8 = vmul.f32 %v5324_v2, %v5324_v2  ;;  %v1164_v9 = vmul.f32 %v5326_v3, %v5326_v3 }
 0x2c9   : > { %v1157_v10 = vsub.f32 %v1123_v52, %v1151_v6  ;;  %v5332_v11 = vsub.f32 %v1125_v55, %v1153_v7  ;;  %v1168_v12 = vsel %vm1130_vm3, %v1162_v8, 0.0  ;;  %v1174_v15 = vsel %vm1130_vm3, %v1164_v9, 0.0 }
 0x2ca   : > { %1169 = vadd.xlane.f32.xlu0 %v1168_v12  ;;  %v1145_v13 = vpop.xlane.xlu0 %1144  ;;  %v1148_v14 = vpop.xlane.xlu1 %1147 }
 0x2cb   : > { %v1154_v16 = vmul.f32 0.03125, %v1145_v13  ;;  %v1155_v17 = vmul.f32 0.03125, %v1148_v14  ;;  %v1163_v18 = vmul.f32 %v1157_v10, %v1157_v10  ;;  %v1165_v19 = vmul.f32 %v5332_v11, %v5332_v11 }
 0x2cd   : > { %v5338_v20 = vsub.f32 %v1126_v56, %v1154_v16  ;;  %v5340_v21 = vsub.f32 %v1127_v57, %v1155_v17  ;;  %v1171_v22 = vsel %vm1130_vm3, %v1163_v18, 0.0  ;;  %v1177_v23 = vsel %vm1130_vm3, %v1165_v19, 0.0  ;;  %v4167_v56 = vld [vmem:[%s6099_s8] ss:$0 sm:$0xff]  ;;  %s5041_s8 = smov 120  }
 0x2ce   : > { %1175 = vadd.xlane.f32.xlu0 %v1174_v15  ;;  %1172 = vadd.xlane.f32.xlu1 %v1171_v22  ;;  %v4168_v15 = vld [vmem:[%s6100_s24] ss:$0 sm:$0xff]  ;;  %s5044_s24 = smov 112  }
 0x2cf   : > { %v1166_v24 = vmul.f32 %v5338_v20, %v5338_v20  ;;  %v1167_v25 = vmul.f32 %v5340_v21, %v5340_v21 }
 0x2d1   : > { %v1180_v26 = vsel %vm1130_vm3, %v1166_v24, 0.0  ;;  %v1183_v27 = vsel %vm1130_vm3, %v1167_v25, 0.0 }
 0x2d2   : > { %1178 = vadd.xlane.f32.xlu1 %v1177_v23  ;;  %1181 = vadd.xlane.f32.xlu0 %v1180_v26 }
 0x2d6   : > { %1184 = vadd.xlane.f32.xlu1 %v1183_v27 }
 0x353   : > { %v1170_v31 = vpop.xlane.xlu0 %1169 }
 0x354   : > { %v1186_v32 = vmul.f32 0.03125, %v1170_v31 }
 0x356   : > { %v1192_v33 = vadd.f32 1e-05, %v1186_v32 }
 0x357   : > { %v1173_v34 = vpop.xlane.xlu1 %1172  ;;  %v1176_v35 = vpop.xlane.xlu0 %1175 }
 0x358   : > { %4801 = vrsqrt.f32 %v1192_v33  ;;  %v1187_v36 = vmul.f32 0.03125, %v1173_v34  ;;  %v1188_v37 = vmul.f32 0.03125, %v1176_v35 }
 0x35a   : > { %v1193_v38 = vadd.f32 1e-05, %v1187_v36  ;;  %v1194_v39 = vadd.f32 1e-05, %v1188_v37 }
 0x35b   : > { %v1179_v40 = vpop.xlane.xlu1 %1178  ;;  %v1182_v41 = vpop.xlane.xlu0 %1181 }
 0x35c   : > { %4803 = vrsqrt.f32 %v1193_v38  ;;  %v1189_v42 = vmul.f32 0.03125, %v1179_v40  ;;  %v1190_v45 = vmul.f32 0.03125, %v1182_v41 }
 0x35d   : > { %4805 = vrsqrt.f32 %v1194_v39 }
 0x35e   : > { %v1195_v43 = vadd.f32 1e-05, %v1189_v42  ;;  %v1196_v47 = vadd.f32 1e-05, %v1190_v45 }
 0x35f   : > { %v1185_v46 = vpop.xlane.xlu1 %1184 }
 0x360   : > { %4807 = vrsqrt.f32 %v1195_v43  ;;  %v1191_v44 = vmul.f32 0.03125, %v1185_v46 }
 0x362   : > { %v1197_v48 = vadd.f32 1e-05, %v1191_v44 }
 0x364   : > { %4809 = vrsqrt.f32 %v1197_v48 }
 0x365   : > { %v4802_v49 = vpop.eup %4801  ;;  %4811 = vrsqrt.f32 %v1196_v47 }
 0x366   : > { %v1204_v50 = vmul.f32 %v4802_v49, %v5324_v2 }
 0x368   : > { %v1216_v54 = vmul.f32 %v4166_v51, %v1204_v50 }
 0x369   : > { %v4804_v52 = vpop.eup %4803 }
 0x36a   : > { %v1205_v53 = vmul.f32 %v4804_v52, %v1157_v10  ;;  %v4806_v55 = vpop.eup %4805  ;;  %v1228_v59 = vadd.f32 %v4167_v56, %v1216_v54 }
 0x36b   : > { %v1206_v61 = vmul.f32 %v4806_v55, %v5326_v3 }
 0x36c   : > { %v1217_v57 = vmul.f32 %v4166_v51, %v1205_v53 }
 0x36d   : > { %v4808_v58 = vpop.eup %4807  ;;  %v1218_v2 = vmul.f32 %v4166_v51, %v1206_v61 }
 0x36e   : > { %v1229_v60 = vadd.f32 %v4167_v56, %v1217_v57  ;;  %v1207_v62 = vmul.f32 %v4808_v58, %v5332_v11 }
 0x36f   : > { %v1230_v7 = vadd.f32 %v4167_v56, %v1218_v2 }
 0x370   : > { %v1234_v63 = vpack.c.bf16 %v1229_v60, %v1228_v59  ;;  %v1219_v0 = vmul.f32 %v4166_v51, %v1207_v62 }
 0x371   : > { %v4810_v1 = vpop.eup %4809 }
 0x372   : > { %4474 = vmatmul.mubr.msk.bf16.vlgmr.msra.gmra.mxu1 %vm1130_vm3, %v1234_v63  ;;  %v4812_v4 = vpop.eup %4811  ;;  %v1231_v5 = vadd.f32 %v4167_v56, %v1219_v0  ;;  %v1209_v6 = vmul.f32 %v4810_v1, %v5340_v21 }
 0x373   : > { %4477 = vmatprep.mubr.msk.bf16.mxu1 %vm5037_vm4, %v5036_v29  ;;  %v1208_v8 = vmul.f32 %v4812_v4, %v5338_v20 }
 0x374   : > { %v1235_v3 = vpack.c.bf16 %v1231_v5, %v1230_v7  ;;  %v1221_v9 = vmul.f32 %v4166_v51, %v1209_v6 }
 0x375   : > { %v1220_v10 = vmul.f32 %v4166_v51, %v1208_v8  ;;  %v5414_v51 = vld [vmem:[%s6101_s23] ss:$0 sm:$0xff] }
 0x376   : > { %v1233_v11 = vadd.f32 %v4167_v56, %v1221_v9 }
 0x377   : > { %v1232_v12 = vadd.f32 %v4167_v56, %v1220_v10 }
 0x379   : > { %v1236_v13 = vpack.c.bf16 %v1233_v11, %v1232_v12 }
 0x37a   : > { %4478 = vmatmul.mubr.msk.bf16.gmra.mxu1 %vm1130_vm3, %v1235_v3 }
 0x37b   : > { %4481 = vmatprep.mubr.msk.bf16.mxu1 %vm5037_vm4, %v5036_v29 }
 0x382   : > { %4482 = vmatmul.mubr.msk.bf16.gmra.mxu1 %vm1130_vm3, %v1236_v13 }
 0x432   : > { %v1303_v14 = vpop.f32.mrf.mxu1 }
 0x433   : > { %v1304_v18 = vadd.f32 %v4168_v15, %v1303_v14 }
 0x434   : > { %v4475_v16 = vpop.f32.mrf.mxu1 }
 0x436   : > { %v1306_v17 = vpop.f32.mrf.mxu1 }
 0x437   : > { %v1307_v19 = vadd.f32 %v4168_v15, %v1306_v17 }
 0x438   : > { %v4476_v20 = vpop.f32.mrf.mxu1 }
 0x439   : > { %v5383_v21 = vpack.c.bf16 %v1307_v19, %v1304_v18 }
 0x43a   : > { %v1311_v22 = vpop.f32.mrf.mxu1 }
 0x43b   : > { %v1312_v23 = vadd.f32 %v4168_v15, %v1311_v22  ;;  %1333 = vrot.lane.b32.xlu1 %v5383_v21, %s5038_s5  ;;  %4489 = vmatprep.mubr.msk.bf16.mxu1 %vm1337_vm5, %v5383_v21 }
 0x43c   : > { %v4479_v24 = vpop.f32.mrf.mxu1 }
 0x43d   : > { %v5388_v25 = vpack.c.bf16 %v1312_v23, %v1312_v23 }
 0x43e   : > { %v1314_v26 = vpop.f32.mrf.mxu1 }
 0x43f   : > { %1335 = vrot.lane.b32.xlu0 %v5388_v25, %s5038_s5  ;;  %v1315_v30 = vadd.f32 %v4168_v15, %v1314_v26 }
 0x440   : > { %v4480_v27 = vpop.f32.mrf.mxu1 }
 0x442   : > { %v1319_v28 = vpop.f32.mrf.mxu1 }
 0x443   : > { %v1320_v31 = vadd.f32 %v4168_v15, %v1319_v28 }
 0x444   : > { %v4483_v32 = vpop.f32.mrf.mxu1 }
 0x445   : > { %v5391_v33 = vpack.c.bf16 %v1320_v31, %v1315_v30 }
 0x446   : > { %v1322_v34 = vpop.f32.mrf.mxu1 }
 0x447   : > { %v1323_v35 = vadd.f32 %v4168_v15, %v1322_v34  ;;  %4497 = vmatprep.mubr.msk.bf16.mxu0 %vm1337_vm5, %v5391_v33 }
 0x448   : > { %v4484_v36 = vpop.f32.mrf.mxu1 }
 0x449   : > { %v5395_v37 = vpack.c.bf16 %v1323_v35, %v1323_v35 }
 0x44b   : > { %1402 = vrot.lane.b32.xlu1 %v5395_v37, %s5038_s5 }
 0x44f   : > { %1400 = vrot.lane.b32.xlu1 %v5391_v33, %s5038_s5  ;;  %s5045_s5 = smov 48  }
 0x4ad   : > { %v1334_v40 = vpop.permute.xlu1 %1333 }
 0x4ae   : > { %v1345_v41 = vsel %vm1337_vm5, %v1334_v40, 0 }
 0x4b1   : > { %v1336_v38 = vpop.permute.xlu0 %1335 }
 0x4b2   : > { %4719 = vmatprep.subr.msk.bf16.mxu1 %vm1337_vm5, %v1336_v38  ;;  %v1348_v39 = vsel %vm1337_vm5, %v1336_v38, 0 }
 0x4b3   : > { %4486 = vmatpush3.bf16.xpose.msra.mxu1 %v1348_v39 }
 0x4b4   : > { %4720 = vmatprep.subr.msk.bf16.mxu1 %vm1337_vm5, %v1334_v40 }
 0x4bb   : > { %4488 = vmatpush3.bf16.xpose.msra.mxu1 %v1345_v41 }
 0x4bd   : > { %v1403_v42 = vpop.permute.xlu1 %1402 }
 0x4be   : > { %4721 = vmatprep.subr.msk.bf16.mxu0 %vm1337_vm5, %v1403_v42  ;;  %v1414_v43 = vsel %vm1337_vm5, %v1403_v42, 0 }
 0x4bf   : > { %4494 = vmatpush3.bf16.xpose.msra.mxu0 %v1414_v43 }
 0x4c1   : > { %v1401_v45 = vpop.permute.xlu1 %1400 }
 0x4c2   : > { %4490 = vmatmul.mubr.msk.bf16.vlgmr.msra.gmra.mxu1 %vm1337_vm5, %v5388_v25  ;;  %4722 = vmatprep.subr.msk.bf16.mxu0 %vm1337_vm5, %v1401_v45  ;;  %v1411_v46 = vsel %vm1337_vm5, %v1401_v45, 0 }
 0x4c7   : > { %4496 = vmatpush3.bf16.xpose.msra.mxu0 %v1411_v46 }
 0x4ce   : > { %4498 = vmatmul.mubr.msk.bf16.vlgmr.msra.gmra.mxu0 %vm1337_vm5, %v5395_v37 }
 0x582   : > { %v4491_v44 = vpop.f32.mrf.mxu1 }
 0x583   : > { %v1466_v48 = vmul.f32 0.35355338, %v4491_v44 }
 0x584   : > { %v1384_v47 = vpop.f32.mrf.mxu1 }
 0x585   : > { %v1464_v49 = vmul.f32 0.35355338, %v1384_v47  ;;  %v1478_v56 = vadd.f32 %v5414_v51, %v1466_v48 }
 0x586   : > { %v4492_v50 = vpop.f32.mrf.mxu1 }
 0x587   : > { %v1476_v52 = vadd.f32 %v5414_v51, %v1464_v49  ;;  %v1489_v58 = vsel %vm1482_vm6, %v1478_v56, -inf }
 0x588   : > { %v1387_v53 = vpop.f32.mrf.mxu1 }
 0x589   : > { %v1465_v54 = vmul.f32 0.35355338, %v1387_v53  ;;  %v1483_v55 = vsel %vm1482_vm6, %v1476_v52, -inf }
 0x58a   : > { %1484 = vmax.xlane.f32.xlu0 %v1483_v55 }
 0x58b   : > { %v1477_v57 = vadd.f32 %v5414_v51, %v1465_v54 }
 0x58d   : > { %v1486_v59 = vsel %vm1482_vm6, %v1477_v57, -inf }
 0x58e   : > { %v4499_v60 = vpop.f32.mrf.mxu0  ;;  %1490 = vmax.xlane.f32.xlu0 %v1489_v58  ;;  %1487 = vmax.xlane.f32.xlu1 %v1486_v59 }
 0x58f   : > { %v1469_v61 = vmul.f32 0.35355338, %v4499_v60 }
 0x590   : > { %v1450_v62 = vpop.f32.mrf.mxu0 }
 0x591   : > { %v1467_v63 = vmul.f32 0.35355338, %v1450_v62  ;;  %v1481_v0 = vadd.f32 %v5414_v51, %v1469_v61 }
 0x592   : > { %v4500_v1 = vpop.f32.mrf.mxu0 }
 0x593   : > { %v1498_v2 = vsel %vm1482_vm6, %v1481_v0, -inf  ;;  %v1479_v4 = vadd.f32 %v5414_v51, %v1467_v63 }
 0x594   : > { %v1453_v5 = vpop.f32.mrf.mxu0  ;;  %1499 = vmax.xlane.f32.xlu1 %v1498_v2 }
 0x595   : > { %v1468_v6 = vmul.f32 0.35355338, %v1453_v5  ;;  %v1492_v7 = vsel %vm1482_vm6, %v1479_v4, -inf }
 0x596   : > { %1493 = vmax.xlane.f32.xlu0 %v1492_v7 }
 0x597   : > { %v5427_v8 = vadd.f32 %v5414_v51, %v1468_v6 }
 0x599   : > { %v1495_v3 = vsel %vm1482_vm6, %v5427_v8, -inf }
 0x59a   : > { %1496 = vmax.xlane.f32.xlu0 %v1495_v3 }
 0x5a5   : > { %1553 = vrot.lane.b32.xlu1 %v5383_v21, %s5039_s29 }
 0x5a9   : > { %1688 = vrot.lane.b32.xlu1 %v5388_v25, %s5040_s2 }
 0x5ad   : > { %1618 = vrot.lane.b32.xlu1 %v5395_v37, %s5039_s29 }
 0x5b0   : > { %1555 = vrot.lane.b32.xlu0 %v5388_v25, %s5039_s29 }
 0x5b1   : > { %1686 = vrot.lane.b32.xlu1 %v5383_v21, %s5040_s2 }
 0x613   : > { %v1485_v9 = vpop.xlane.xlu0 %1484 }
 0x614   : > { %v1501_v10 = vsub.f32 %v1476_v52, %v1485_v9 }
 0x616   : > { %v1507_v15 = vmul.f32 1.442695, %v1501_v10 }
 0x617   : > { %v1491_v11 = vpop.xlane.xlu0 %1490  ;;  %v1488_v12 = vpop.xlane.xlu1 %1487 }
 0x618   : > { %v1503_v13 = vsub.f32 %v1478_v56, %v1491_v11  ;;  %v1502_v14 = vsub.f32 %v1477_v57, %v1488_v12 }
 0x61a   : > { %v1511_v16 = vmul.f32 1.442695, %v1503_v13  ;;  %v1509_v17 = vmul.f32 1.442695, %v1502_v14 }
 0x61c   : > { %4813 = vpow2.f32 %v1511_v16 }
 0x61d   : > { %4815 = vpow2.f32 %v1509_v17  ;;  %v1500_v18 = vpop.xlane.xlu1 %1499 }
 0x61e   : > { %4817 = vpow2.f32 %v1507_v15  ;;  %v1506_v19 = vsub.f32 %v1481_v0, %v1500_v18 }
 0x61f   : > { %v1494_v20 = vpop.xlane.xlu0 %1493 }
 0x620   : > { %v1517_v22 = vmul.f32 1.442695, %v1506_v19  ;;  %v1504_v23 = vsub.f32 %v1479_v4, %v1494_v20 }
 0x621   : > { %v1554_v24 = vpop.permute.xlu1 %1553 }
 0x622   : > { %4819 = vpow2.f32 %v1517_v22  ;;  %v1513_v26 = vmul.f32 1.442695, %v1504_v23 }
 0x623   : > { %v1497_v27 = vpop.xlane.xlu0 %1496 }
 0x624   : > { %4821 = vpow2.f32 %v1513_v26  ;;  %v1505_v48 = vsub.f32 %v5427_v8, %v1497_v27 }
 0x625   : > { %v1689_v28 = vpop.permute.xlu1 %1688 }
 0x626   : > { %v1700_v30 = vsel %vm1337_vm5, %v1689_v28, 0  ;;  %4725 = vmatprep.subr.msk.bf16.mxu0 %vm1337_vm5, %v1689_v28  ;;  %v1515_v49 = vmul.f32 1.442695, %v1505_v48 }
 0x627   : > { %v1556_v31 = vpop.permute.xlu0 %1555  ;;  %4518 = vmatpush3.bf16.xpose.msra.mxu0 %v1700_v30 }
 0x628   : > { %v1566_v32 = vsel %vm1564_vm7, %v1556_v31, 0  ;;  %4723 = vmatprep.subr.msk.bf16.mxu1 %vm1564_vm7, %v1556_v31  ;;  %4823 = vpow2.f32 %v1515_v49 }
 0x629   : > { %v4814_v34 = vpop.eup %4813  ;;  %4502 = vmatpush3.bf16.msra.mxu1 %v1566_v32  ;;  %v1619_v35 = vpop.permute.xlu1 %1618 }
 0x62a   : > { %v4816_v36 = vpop.eup %4815  ;;  %4503 = vmatprep.subr.bf16.mxu1 %v1554_v24  ;;  %v1525_v38 = vsel %vm1482_vm6, %v4814_v34, 0.0  ;;  %v1628_v4 = vsel %vm1564_vm7, %v1619_v35, 0 }
 0x62b   : > { %v4818_v39 = vpop.eup %4817  ;;  %1526 = vadd.xlane.f32.xlu0 %v1525_v38  ;;  %v1522_v40 = vsel %vm1482_vm6, %v4816_v36, 0.0 }
 0x62c   : > { %1523 = vadd.xlane.f32.xlu1 %v1522_v40  ;;  %v1519_v43 = vsel %vm1482_vm6, %v4818_v39, 0.0 }
 0x62d   : > { %4504 = vmatpush3.bf16.msra.mxu1 %v1554_v24  ;;  %v1687_v41 = vpop.permute.xlu1 %1686 }
 0x62e   : > { %v1697_v42 = vsel %vm1337_vm5, %v1687_v41, 0  ;;  %4724 = vmatprep.subr.msk.bf16.mxu1 %vm1564_vm7, %v1619_v35  ;;  %4726 = vmatprep.subr.msk.bf16.mxu0 %vm1337_vm5, %v1687_v41 }
 0x62f   : > { %v4820_v45 = vpop.eup %4819  ;;  %1520 = vadd.xlane.f32.xlu0 %v1519_v43  ;;  %4520 = vmatpush3.bf16.xpose.msra.mxu0 %v1697_v42 }
 0x630   : > { %v1534_v46 = vsel %vm1482_vm6, %v4820_v45, 0.0 }
 0x631   : > { %v4822_v44 = vpop.eup %4821  ;;  %1535 = vadd.xlane.f32.xlu1 %v1534_v46 }
 0x632   : > { %v1528_v47 = vsel %vm1482_vm6, %v4822_v44, 0.0 }
 0x635   : > { %1529 = vadd.xlane.f32.xlu1 %v1528_v47  ;;  %v4824_v50 = vpop.eup %4823 }
 0x636   : > { %v1531_v52 = vsel %vm1482_vm6, %v4824_v50, 0.0 }
 0x645   : > { %1616 = vrot.lane.b32.xlu0 %v5391_v33, %s5039_s29 }
 0x646   : > { %1682 = vrot.lane.b32.xlu1 %v5383_v21, %s5041_s8 }
 0x64a   : > { %1754 = vrot.lane.b32.xlu1 %v5391_v33, %s5040_s2 }
 0x64e   : > { %1752 = vrot.lane.b32.xlu1 %v5395_v37, %s5041_s8 }
 0x664   : > { %1532 = vadd.xlane.f32.xlu0 %v1531_v52 }
 0x67a   : > { %1756 = vrot.lane.b32.xlu0 %v5395_v37, %s5040_s2 }
 0x67e   : > { %1684 = vrot.lane.b32.xlu0 %v5388_v25, %s5041_s8 }
 0x682   : > { %1750 = vrot.lane.b32.xlu0 %v5391_v33, %s5041_s8  ;;  %s5048_s8 = smov 40  }
 0x6b4   : > { %v1527_v53 = vpop.xlane.xlu0 %1526 }
 0x6b5   : > { %v1524_v54 = vpop.xlane.xlu1 %1523  ;;  %4825 = vrcp.f32 %v1527_v53 }
 0x6b6   : > { %4827 = vrcp.f32 %v1524_v54 }
 0x6b8   : > { %v1521_v55 = vpop.xlane.xlu0 %1520 }
 0x6b9   : > { %4829 = vrcp.f32 %v1521_v55 }
 0x6ba   : > { %v1536_v56 = vpop.xlane.xlu1 %1535 }
 0x6bb   : > { %4831 = vrcp.f32 %v1536_v56 }
 0x6bc   : > { %v1617_v5 = vpop.permute.xlu0 %1616 }
 0x6be   : > { %v1530_v57 = vpop.xlane.xlu1 %1529 }
 0x6bf   : > { %4833 = vrcp.f32 %v1530_v57 }
 0x6c2   : > { %v1683_v58 = vpop.permute.xlu1 %1682  ;;  %v4826_v59 = vpop.eup %4825 }
 0x6c3   : > { %4521 = vmatprep.mubr.msk.bf16.mxu0 %vm1337_vm5, %v1683_v58  ;;  %v4828_v60 = vpop.eup %4827  ;;  %v1542_v62 = vmul.f32 %v4826_v59, %v4814_v34 }
 0x6c4   : > { %v1540_v0 = vmul.f32 %v4828_v60, %v4816_v36 }
 0x6c5   : > { %v1550_v2 = vpack.c.bf16 %v1542_v62, %v1542_v62 }
 0x6c6   : > { %v4830_v61 = vpop.eup %4829  ;;  %v1755_v18 = vpop.permute.xlu1 %1754 }
 0x6c7   : > { %v1538_v63 = vmul.f32 %v4830_v61, %v4818_v39  ;;  %v1765_v19 = vsel %vm1337_vm5, %v1755_v18, 0 }
 0x6c8   : > { %v4832_v3 = vpop.eup %4831 }
 0x6c9   : > { %v1549_v1 = vpack.c.bf16 %v1540_v0, %v1538_v63  ;;  %v1548_v11 = vmul.f32 %v4832_v3, %v4820_v45 }
 0x6ca   : > { %v1753_v20 = vpop.permute.xlu1 %1752 }
 0x6cb   : > { %4505 = vmatprep.mubr.msk.bf16.mxu1 %vm1482_vm6, %v1549_v1  ;;  %v1552_v15 = vpack.c.bf16 %v1548_v11, %v1548_v11 }
 0x6cc   : > { %4506 = vmatmul.mubr.msk.bf16.vlgmr.msra.gmra.mxu1 %vm1482_vm6, %v1550_v2  ;;  %v4834_v9 = vpop.eup %4833 }
 0x6cd   : > { %4510 = vmatpush3.bf16.msra.mxu1 %v1628_v4  ;;  %v1544_v12 = vmul.f32 %v4834_v9, %v4822_v44 }
 0x6ce   : > { %4511 = vmatprep.subr.bf16.mxu1 %v1617_v5 }
 0x6d1   : > { %4512 = vmatpush3.bf16.msra.mxu1 %v1617_v5 }
 0x6ed   : > { %v1533_v6 = vpop.xlane.xlu0 %1532 }
 0x6ee   : > { %4835 = vrcp.f32 %v1533_v6 }
 0x6f1   : > { %v1757_v7 = vpop.permute.xlu0 %1756 }
 0x6f2   : > { %4727 = vmatprep.subr.msk.bf16.mxu1 %vm1337_vm5, %v1757_v7  ;;  %v1768_v16 = vsel %vm1337_vm5, %v1757_v7, 0 }
 0x6f5   : > { %v1685_v8 = vpop.permute.xlu0 %1684 }
 0x6f6   : > { %4522 = vmatmul.mubr.msk.bf16.vlgmr.msra.gmra.mxu0 %vm1337_vm5, %v1685_v8 }
 0x6f9   : > { %v1751_v17 = vpop.permute.xlu0 %1750 }
 0x6fb   : > { %v4836_v10 = vpop.eup %4835 }
 0x6fc   : > { %v1546_v13 = vmul.f32 %v4836_v10, %v4824_v50 }
 0x6fe   : > { %v1551_v14 = vpack.c.bf16 %v1546_v13, %v1544_v12 }
 0x700   : > { %4513 = vmatprep.mubr.msk.bf16.mxu1 %vm1482_vm6, %v1551_v14 }
 0x701   : > { %4514 = vmatmul.mubr.msk.bf16.vlgmr.msra.gmra.mxu1 %vm1482_vm6, %v1552_v15 }
 0x702   : > { %4526 = vmatpush3.bf16.xpose.msra.mxu1 %v1768_v16  ;;  %4529 = vmatprep.mubr.msk.bf16.mxu1 %vm1337_vm5, %v1751_v17 }
 0x703   : > { %4728 = vmatprep.subr.msk.bf16.mxu1 %vm1337_vm5, %v1755_v18 }
 0x70a   : > { %4528 = vmatpush3.bf16.xpose.msra.mxu1 %v1765_v19 }
 0x711   : > { %4530 = vmatmul.mubr.msk.bf16.vlgmr.msra.gmra.mxu1 %vm1337_vm5, %v1753_v20 }
 0x78c   : > { %v5478_v22 = vpop.f32.mrf.mxu1 }
 0x78e   : > { %v5480_v23 = vpop.f32.mrf.mxu1 }
 0x790   : > { %v4508_v24 = vpop.f32.mrf.mxu1 }
 0x792   : > { %v5482_v26 = vpop.f32.mrf.mxu1 }
 0x793   : > { %v1678_v27 = vpack.c.bf16 %v5482_v26, %v5480_v23 }
 0x7b6   : > { %v4523_v28 = vpop.f32.mrf.mxu0 }
 0x7b7   : > { %v1820_v31 = vmul.f32 0.35355338, %v4523_v28 }
 0x7b8   : > { %v1736_v30 = vpop.f32.mrf.mxu0 }
 0x7b9   : > { %v1818_v32 = vmul.f32 0.35355338, %v1736_v30  ;;  %v1826_v40 = vadd.f32 %v5414_v51, %v1820_v31 }
 0x7ba   : > { %v4524_v34 = vpop.f32.mrf.mxu0 }
 0x7bb   : > { %v1824_v35 = vadd.f32 %v5414_v51, %v1818_v32  ;;  %v1836_v43 = vsel %vm1482_vm6, %v1826_v40, -inf }
 0x7bc   : > { %v1739_v36 = vpop.f32.mrf.mxu0 }
 0x7bd   : > { %v1819_v38 = vmul.f32 0.35355338, %v1739_v36  ;;  %v1830_v39 = vsel %vm1482_vm6, %v1824_v35, -inf }
 0x7be   : > { %1831 = vmax.xlane.f32.xlu0 %v1830_v39 }
 0x7bf   : > { %v1825_v41 = vadd.f32 %v5414_v51, %v1819_v38 }
 0x7c1   : > { %v5490_v42 = vpop.f32.mrf.mxu1  ;;  %v1833_v45 = vsel %vm1482_vm6, %v1825_v41, -inf }
 0x7c2   : > { %1837 = vmax.xlane.f32.xlu0 %v1836_v43  ;;  %1834 = vmax.xlane.f32.xlu1 %v1833_v45 }
 0x7c3   : > { %v5494_v46 = vpop.f32.mrf.mxu1 }
 0x7c4   : > { %v1679_v44 = vpack.c.bf16 %v5494_v46, %v5478_v22 }
 0x7c5   : > { %v4516_v47 = vpop.f32.mrf.mxu1 }
 0x7c7   : > { %v5498_v48 = vpop.f32.mrf.mxu1 }
 0x7c8   : > { %v1680_v49 = vpack.c.bf16 %v5490_v42, %v5498_v48 }
 0x7d1   : > { %v4531_v50 = vpop.f32.mrf.mxu1 }
 0x7d2   : > { %v1823_v52 = vmul.f32 0.35355338, %v4531_v50 }
 0x7d3   : > { %v1804_v53 = vpop.f32.mrf.mxu1 }
 0x7d4   : > { %v1821_v54 = vmul.f32 0.35355338, %v1804_v53  ;;  %v1829_v55 = vadd.f32 %v5414_v51, %v1823_v52 }
 0x7d5   : > { %v4532_v56 = vpop.f32.mrf.mxu1 }
 0x7d6   : > { %v1845_v57 = vsel %vm1482_vm6, %v1829_v55, -inf  ;;  %v1827_v58 = vadd.f32 %v5414_v51, %v1821_v54 }
 0x7d7   : > { %1846 = vmax.xlane.f32.xlu1 %v1845_v57  ;;  %v1807_v59 = vpop.f32.mrf.mxu1 }
 0x7d8   : > { %v1822_v60 = vmul.f32 0.35355338, %v1807_v59  ;;  %v1839_v61 = vsel %vm1482_vm6, %v1827_v58, -inf }
 0x7d9   : > { %1840 = vmax.xlane.f32.xlu0 %v1839_v61 }
 0x7da   : > { %v1828_v62 = vadd.f32 %v5414_v51, %v1822_v60 }
 0x7dc   : > { %v1842_v63 = vsel %vm1482_vm6, %v1828_v62, -inf }
 0x7dd   : > { %1843 = vmax.xlane.f32.xlu0 %v1842_v63  ;;  %v4191_v63 = vld [vmem:[%s5211_s19 + $0x4] sm:$0xf] }
 0x847   : > { %v1832_v0 = vpop.xlane.xlu0 %1831 }
 0x848   : > { %v1848_v1 = vsub.f32 %v1824_v35, %v1832_v0 }
 0x84a   : > { %v1854_v2 = vmul.f32 1.442695, %v1848_v1 }
 0x84b   : > { %v1838_v4 = vpop.xlane.xlu0 %1837  ;;  %v1835_v5 = vpop.xlane.xlu1 %1834 }
 0x84c   : > { %4837 = vpow2.f32 %v1854_v2  ;;  %v1850_v6 = vsub.f32 %v1826_v40, %v1838_v4  ;;  %v1849_v7 = vsub.f32 %v1825_v41, %v1835_v5  ;;  %v2039_v4 = vsel %vm1564_vm7, %v4191_v63, 0 }
 0x84e   : > { %v1858_v8 = vmul.f32 1.442695, %v1850_v6  ;;  %v1856_v3 = vmul.f32 1.442695, %v1849_v7 }
 0x850   : > { %4839 = vpow2.f32 %v1858_v8 }
 0x851   : > { %4841 = vpow2.f32 %v1856_v3 }
 0x859   : > { %v4838_v9 = vpop.eup %4837 }
 0x85a   : > { %v1866_v10 = vsel %vm1482_vm6, %v4838_v9, 0.0 }
 0x85b   : > { %1867 = vadd.xlane.f32.xlu0 %v1866_v10  ;;  %v1681_v10 = vld [vmem:[%s5211_s19] sm:$0xf] }
 0x85d   : > { %v5509_v11 = vpop.eup %4839 }
 0x85e   : > { %v4842_v12 = vpop.eup %4841  ;;  %v1872_v13 = vsel %vm1482_vm6, %v5509_v11, 0.0 }
 0x85f   : > { %1873 = vadd.xlane.f32.xlu0 %v1872_v13  ;;  %v1869_v14 = vsel %vm1482_vm6, %v4842_v12, 0.0 }
 0x860   : > { %1870 = vadd.xlane.f32.xlu1 %v1869_v14  ;;  %v1847_v15 = vpop.xlane.xlu1 %1846  ;;  %v2108_v14 = vsel %vm1564_vm7, %v1681_v10, 0 }
 0x861   : > { %v1853_v16 = vsub.f32 %v1829_v55, %v1847_v15 }
 0x862   : > { %v1841_v17 = vpop.xlane.xlu0 %1840 }
 0x863   : > { %v1864_v18 = vmul.f32 1.442695, %v1853_v16  ;;  %v1851_v19 = vsub.f32 %v1827_v58, %v1841_v17 }
 0x865   : > { %4843 = vpow2.f32 %v1864_v18  ;;  %v1860_v20 = vmul.f32 1.442695, %v1851_v19 }
 0x866   : > { %v1844_v24 = vpop.xlane.xlu0 %1843 }
 0x867   : > { %4845 = vpow2.f32 %v1860_v20  ;;  %v1852_v28 = vsub.f32 %v1828_v62, %v1844_v24 }
 0x869   : > { %v1862_v30 = vmul.f32 1.442695, %v1852_v28 }
 0x86b   : > { %4847 = vpow2.f32 %v1862_v30 }
 0x872   : > { %v5514_v31 = vpop.eup %4843 }
 0x873   : > { %v1881_v32 = vsel %vm1482_vm6, %v5514_v31, 0.0 }
 0x874   : > { %v5518_v34 = vpop.eup %4845  ;;  %1882 = vadd.xlane.f32.xlu1 %v1881_v32 }
 0x875   : > { %v1875_v35 = vsel %vm1482_vm6, %v5518_v34, 0.0 }
 0x878   : > { %v5522_v36 = vpop.eup %4847  ;;  %1876 = vadd.xlane.f32.xlu1 %v1875_v35 }
 0x879   : > { %v1878_v38 = vsel %vm1482_vm6, %v5522_v36, 0.0 }
 0x87a   : > { %1879 = vadd.xlane.f32.xlu0 %v1878_v38 }
 0x889   : > { %1900 = vrot.lane.b32.xlu1 %v5383_v21, %s5042_s30 }
 0x88d   : > { %1964 = vrot.lane.b32.xlu1 %v5395_v37, %s5042_s30 }
 0x890   : > { %1902 = vrot.lane.b32.xlu0 %v5388_v25, %s5042_s30 }
 0x891   : > { %1962 = vrot.lane.b32.xlu1 %v5391_v33, %s5042_s30 }
 0x894   : > { %2173 = vrot.lane.b32.xlu0 %v5388_v25, %s5043_s25 }
 0x895   : > { %2171 = vrot.lane.b32.xlu1 %v5383_v21, %s5043_s25 }
 0x898   : > { %2241 = vrot.lane.b32.xlu0 %v5395_v37, %s5043_s25 }
 0x899   : > { %2167 = vrot.lane.b32.xlu1 %v5383_v21, %s5044_s24 }
 0x89c   : > { %2169 = vrot.lane.b32.xlu0 %v5388_v25, %s5044_s24 }
 0x89d   : > { %2239 = vrot.lane.b32.xlu1 %v5391_v33, %s5043_s25  ;;  %s6102_s25 = scalar_lea.vmem %s6052_s11, %s5188_s27 }
 0x8a0   : > { %2235 = vrot.lane.b32.xlu0 %v5391_v33, %s5044_s24 }
 0x8a1   : > { %2237 = vrot.lane.b32.xlu1 %v5395_v37, %s5044_s24  ;;  %s6106_s24 = sld [smem:[#allocation19_spill]] (!%p4246_p5) }
 0x8e4   : > { %v1868_v39 = vpop.xlane.xlu0 %1867 }
 0x8e5   : > { %4849 = vrcp.f32 %v1868_v39 }
 0x8e8   : > { %v1874_v45 = vpop.xlane.xlu0 %1873 }
 0x8e9   : > { %v1871_v40 = vpop.xlane.xlu1 %1870 }
 0x8ea   : > { %4851 = vrcp.f32 %v1871_v40 }
 0x8eb   : > { %4853 = vrcp.f32 %v1874_v45 }
 0x8f2   : > { %v4850_v41 = vpop.eup %4849 }
 0x8f3   : > { %v1885_v47 = vmul.f32 %v4850_v41, %v4838_v9 }
 0x8f7   : > { %v4852_v43 = vpop.eup %4851 }
 0x8f8   : > { %v1887_v50 = vmul.f32 %v4852_v43, %v4842_v12  ;;  %v4854_v57 = vpop.eup %4853 }
 0x8f9   : > { %v1889_v62 = vmul.f32 %v4854_v57, %v5509_v11 }
 0x8fa   : > { %v1896_v52 = vpack.c.bf16 %v1887_v50, %v1885_v47 }
 0x8fb   : > { %v1897_v2 = vpack.c.bf16 %v1889_v62, %v1889_v62 }
 0x8fc   : > { %4537 = vmatprep.mubr.msk.bf16.mxu0 %vm1482_vm6, %v1896_v52 }
 0x8fd   : > { %v1883_v53 = vpop.xlane.xlu1 %1882 }
 0x8fe   : > { %4855 = vrcp.f32 %v1883_v53 }
 0x901   : > { %v1877_v54 = vpop.xlane.xlu1 %1876 }
 0x902   : > { %4857 = vrcp.f32 %v1877_v54 }
 0x903   : > { %v1880_v55 = vpop.xlane.xlu0 %1879 }
 0x904   : > { %4859 = vrcp.f32 %v1880_v55 }
 0x905   : > { %v1901_v56 = vpop.permute.xlu1 %1900 }
 0x907   : > { %v1903_v58 = vpop.permute.xlu0 %1902 }
 0x908   : > { %v1912_v59 = vsel %vm1564_vm7, %v1903_v58, 0  ;;  %4729 = vmatprep.subr.msk.bf16.mxu0 %vm1564_vm7, %v1903_v58 }
 0x909   : > { %4534 = vmatpush3.bf16.msra.mxu0 %v1912_v59  ;;  %v1965_v60 = vpop.permute.xlu1 %1964 }
 0x90a   : > { %v1974_v61 = vsel %vm1564_vm7, %v1965_v60, 0  ;;  %4535 = vmatprep.subr.bf16.mxu0 %v1901_v56  ;;  %4730 = vmatprep.subr.msk.bf16.mxu1 %vm1564_vm7, %v1965_v60 }
 0x90b   : > { %4542 = vmatpush3.bf16.msra.mxu1 %v1974_v61  ;;  %v4856_v1 = vpop.eup %4855  ;;  %v2174_v7 = vpop.permute.xlu0 %2173 }
 0x90c   : > { %v1895_v8 = vmul.f32 %v4856_v1, %v5514_v31  ;;  %v2185_v30 = vsel %vm1337_vm5, %v2174_v7, 0 }
 0x90d   : > { %4536 = vmatpush3.bf16.msra.mxu0 %v1901_v56  ;;  %v1963_v0 = vpop.permute.xlu1 %1962 }
 0x90e   : > { %4543 = vmatprep.subr.bf16.mxu1 %v1963_v0  ;;  %4549 = vmatprep.subr.bf16.mxu0 %v5036_v29  ;;  %v1899_v13 = vpack.c.bf16 %v1895_v8, %v1895_v8 }
 0x90f   : > { %v4858_v5 = vpop.eup %4857  ;;  %4544 = vmatpush3.bf16.msra.mxu1 %v1963_v0  ;;  %v2242_v15 = vpop.permute.xlu0 %2241 }
 0x910   : > { %4538 = vmatmul.mubr.msk.bf16.vlgmr.msra.gmra.mxu0 %vm1482_vm6, %v1897_v2  ;;  %4563 = vmatprep.subr.bf16.mxu1 %v5036_v29  ;;  %v1891_v3 = vmul.f32 %v4858_v5, %v5518_v34  ;;  %v2253_v17 = vsel %vm1337_vm5, %v2242_v15, 0 }
 0x911   : > { %v4860_v6 = vpop.eup %4859  ;;  %4550 = vmatpush3.bf16.msra.mxu0 %v2039_v4  ;;  %4551 = vmatprep.mubr.msk.bf16.mxu0 %vm5037_vm4, %v5036_v29  ;;  %v2172_v11 = vpop.permute.xlu1 %2171 }
 0x912   : > { %4731 = vmatprep.subr.msk.bf16.mxu0 %vm1337_vm5, %v2174_v7  ;;  %v1893_v9 = vmul.f32 %v4860_v6, %v5522_v36  ;;  %v2182_v34 = vsel %vm1337_vm5, %v2172_v11, 0 }
 0x913   : > { %v2170_v23 = vpop.permute.xlu0 %2169 }
 0x914   : > { %v1898_v12 = vpack.c.bf16 %v1893_v9, %v1891_v3 }
 0x915   : > { %v2168_v16 = vpop.permute.xlu1 %2167 }
 0x916   : > { %4545 = vmatprep.mubr.msk.bf16.mxu1 %vm1482_vm6, %v1898_v12 }
 0x917   : > { %4546 = vmatmul.mubr.msk.bf16.vlgmr.msra.gmra.mxu1 %vm1482_vm6, %v1899_v13  ;;  %v2236_v26 = vpop.permute.xlu0 %2235 }
 0x918   : > { %4564 = vmatpush3.bf16.msra.mxu1 %v2108_v14  ;;  %4565 = vmatprep.mubr.msk.bf16.mxu1 %vm5037_vm4, %v5036_v29 }
 0x919   : > { %4733 = vmatprep.subr.msk.bf16.mxu1 %vm1337_vm5, %v2242_v15  ;;  %v2240_v18 = vpop.permute.xlu1 %2239 }
 0x91a   : > { %v2250_v19 = vsel %vm1337_vm5, %v2240_v18, 0 }
 0x91f   : > { %4566 = vmatmul.mubr.msk.bf16.vlgmr.msra.gmra.mxu1 %vm1337_vm5, %v1678_v27  ;;  %v2238_v27 = vpop.permute.xlu1 %2237 }
 0x920   : > { %4586 = vmatpush3.bf16.xpose.msra.mxu1 %v2253_v17  ;;  %4569 = vmatprep.mubr.msk.bf16.mxu1 %vm5037_vm4, %v5036_v29 }
 0x921   : > { %4734 = vmatprep.subr.msk.bf16.mxu1 %vm1337_vm5, %v2240_v18 }
 0x927   : > { %4570 = vmatmul.mubr.msk.bf16.gmra.mxu1 %vm1337_vm5, %v1679_v44 }
 0x928   : > { %4588 = vmatpush3.bf16.xpose.msra.mxu1 %v2250_v19  ;;  %4573 = vmatprep.mubr.msk.bf16.mxu1 %vm5037_vm4, %v5036_v29 }
 0x92f   : > { %4574 = vmatmul.mubr.msk.bf16.gmra.mxu1 %vm1337_vm5, %v1680_v49 }
 0x930   : > { %4589 = vmatprep.mubr.msk.bf16.mxu1 %vm1337_vm5, %v2236_v26 }
 0x937   : > { %4590 = vmatmul.mubr.msk.bf16.vlgmr.msra.gmra.mxu1 %vm1337_vm5, %v2238_v27 }
 0x9d0   : > { %v4539_v20 = vpop.f32.mrf.mxu0 }
 0x9d2   : > { %v1948_v22 = vpop.f32.mrf.mxu0 }
 0x9d4   : > { %v4540_v46 = vpop.f32.mrf.mxu0 }
 0x9d6   : > { %v1951_v44 = vpop.f32.mrf.mxu0 }
 0x9d7   : > { %v2024_v24 = vpack.c.bf16 %v1951_v44, %v1948_v22  ;;  %v4547_v28 = vpop.f32.mrf.mxu1 }
 0x9d9   : > { %v2010_v31 = vpop.f32.mrf.mxu1  ;;  %4552 = vmatmul.mubr.msk.bf16.vlgmr.msra.gmra.mxu0 %vm1337_vm5, %v2024_v24 }
 0x9da   : > { %4578 = vmatpush3.bf16.xpose.msra.mxu0 %v2185_v30  ;;  %4555 = vmatprep.mubr.msk.bf16.mxu0 %vm5037_vm4, %v5036_v29  ;;  %v2025_v49 = vpack.c.bf16 %v2010_v31, %v4539_v20 }
 0x9db   : > { %4732 = vmatprep.subr.msk.bf16.mxu0 %vm1337_vm5, %v2172_v11  ;;  %v4548_v42 = vpop.f32.mrf.mxu1 }
 0x9dd   : > { %v2013_v48 = vpop.f32.mrf.mxu1 }
 0x9de   : > { %v2026_v39 = vpack.c.bf16 %v4547_v28, %v2013_v48 }
 0x9df   : > { %v5588_v32 = vpop.f32.mrf.mxu1 }
 0x9e1   : > { %4556 = vmatmul.mubr.msk.bf16.gmra.mxu0 %vm1337_vm5, %v2025_v49  ;;  %v4567_v35 = vpop.f32.mrf.mxu1 }
 0x9e2   : > { %4580 = vmatpush3.bf16.xpose.msra.mxu0 %v2182_v34  ;;  %4559 = vmatprep.mubr.msk.bf16.mxu0 %vm5037_vm4, %v5036_v29 }
 0x9e3   : > { %v5594_v36 = vpop.f32.mrf.mxu1 }
 0x9e5   : > { %v4568_v38 = vpop.f32.mrf.mxu1 }
 0x9e7   : > { %v5596_v40 = vpop.f32.mrf.mxu1 }
 0x9e9   : > { %4560 = vmatmul.mubr.msk.bf16.gmra.mxu0 %vm1337_vm5, %v2026_v39  ;;  %v4571_v41 = vpop.f32.mrf.mxu1 }
 0x9ea   : > { %4581 = vmatprep.mubr.msk.bf16.mxu0 %vm1337_vm5, %v2168_v16 }
 0x9eb   : > { %v5600_v43 = vpop.f32.mrf.mxu1 }
 0x9ed   : > { %v4572_v45 = vpop.f32.mrf.mxu1 }
 0x9ef   : > { %v5602_v47 = vpop.f32.mrf.mxu1 }
 0x9f1   : > { %v4575_v50 = vpop.f32.mrf.mxu1  ;;  %4582 = vmatmul.mubr.msk.bf16.vlgmr.msra.gmra.mxu0 %vm1337_vm5, %v2170_v23 }
 0x9f3   : > { %v5605_v52 = vpop.f32.mrf.mxu1 }
 0x9f5   : > { %v4576_v53 = vpop.f32.mrf.mxu1 }
 0x9f7   : > { %v4591_v54 = vpop.f32.mrf.mxu1 }
 0x9f8   : > { %v2308_v11 = vmul.f32 0.35355338, %v4591_v54 }
 0x9f9   : > { %v2289_v55 = vpop.f32.mrf.mxu1 }
 0x9fa   : > { %v2306_v13 = vmul.f32 0.35355338, %v2289_v55  ;;  %v2314_v19 = vadd.f32 %v5414_v51, %v2308_v11 }
 0x9fb   : > { %v4592_v56 = vpop.f32.mrf.mxu1 }
 0x9fc   : > { %v2312_v20 = vadd.f32 %v5414_v51, %v2306_v13  ;;  %v2330_v22 = vsel %vm1482_vm6, %v2314_v19, -inf }
 0x9fd   : > { %v2292_v17 = vpop.f32.mrf.mxu1 }
 0x9fe   : > { %v2307_v23 = vmul.f32 0.35355338, %v2292_v17  ;;  %v2324_v46 = vsel %vm1482_vm6, %v2312_v20, -inf }
 0xa00   : > { %v2313_v44 = vadd.f32 %v5414_v51, %v2307_v23 }
 0xa02   : > { %v2327_v24 = vsel %vm1482_vm6, %v2313_v44, -inf }
 0xa99   : > { %v5607_v57 = vpop.f32.mrf.mxu0 }
 0xa9b   : > { %v4553_v58 = vpop.f32.mrf.mxu0 }
 0xa9d   : > { %v5609_v59 = vpop.f32.mrf.mxu0 }
 0xa9f   : > { %v4554_v60 = vpop.f32.mrf.mxu0 }
 0xaa1   : > { %v5611_v61 = vpop.f32.mrf.mxu0 }
 0xaa3   : > { %v4557_v62 = vpop.f32.mrf.mxu0 }
 0xaa5   : > { %v5613_v63 = vpop.f32.mrf.mxu0 }
 0xaa7   : > { %v4558_v0 = vpop.f32.mrf.mxu0 }
 0xaa9   : > { %v5615_v1 = vpop.f32.mrf.mxu0 }
 0xaab   : > { %v4561_v2 = vpop.f32.mrf.mxu0 }
 0xaad   : > { %v5617_v4 = vpop.f32.mrf.mxu0 }
 0xaaf   : > { %v4562_v5 = vpop.f32.mrf.mxu0 }
 0xab1   : > { %v4583_v6 = vpop.f32.mrf.mxu0 }
 0xab2   : > { %v2305_v8 = vmul.f32 0.35355338, %v4583_v6 }
 0xab3   : > { %v2221_v7 = vpop.f32.mrf.mxu0 }
 0xab4   : > { %v2303_v3 = vmul.f32 0.35355338, %v2221_v7  ;;  %v2311_v16 = vadd.f32 %v5414_v51, %v2305_v8 }
 0xab5   : > { %v4584_v9 = vpop.f32.mrf.mxu0 }
 0xab6   : > { %v2309_v10 = vadd.f32 %v5414_v51, %v2303_v3  ;;  %v2321_v26 = vsel %vm1482_vm6, %v2311_v16, -inf }
 0xab7   : > { %v2224_v12 = vpop.f32.mrf.mxu0 }
 0xab8   : > { %v2304_v14 = vmul.f32 0.35355338, %v2224_v12  ;;  %v2315_v15 = vsel %vm1482_vm6, %v2309_v10, -inf }
 0xab9   : > { %2316 = vmax.xlane.f32.xlu0 %v2315_v15 }
 0xaba   : > { %v2310_v18 = vadd.f32 %v5414_v51, %v2304_v14 }
 0xabc   : > { %v2318_v27 = vsel %vm1482_vm6, %v2310_v18, -inf }
 0xabd   : > { %2322 = vmax.xlane.f32.xlu0 %v2321_v26  ;;  %2319 = vmax.xlane.f32.xlu1 %v2318_v27 }
 0xac1   : > { %2331 = vmax.xlane.f32.xlu1 %v2330_v22  ;;  %2325 = vmax.xlane.f32.xlu0 %v2324_v46 }
 0xac5   : > { %2328 = vmax.xlane.f32.xlu0 %v2327_v24 }
 0xb42   : > { %v2317_v28 = vpop.xlane.xlu0 %2316 }
 0xb43   : > { %v2333_v50 = vsub.f32 %v2309_v10, %v2317_v28 }
 0xb45   : > { %v2339_v54 = vmul.f32 1.442695, %v2333_v50  ;;  %v4206_v50 = vld [vmem:[%s5211_s19 + $0x8] sm:$0xf] }
 0xb46   : > { %v2323_v30 = vpop.xlane.xlu0 %2322  ;;  %v2320_v31 = vpop.xlane.xlu1 %2319 }
 0xb47   : > { %v2335_v35 = vsub.f32 %v2311_v16, %v2323_v30  ;;  %v2334_v8 = vsub.f32 %v2310_v18, %v2320_v31 }
 0xb49   : > { %v2343_v51 = vmul.f32 1.442695, %v2335_v35  ;;  %v2341_v3 = vmul.f32 1.442695, %v2334_v8 }
 0xb4a   : > { %v2326_v42 = vpop.xlane.xlu0 %2325  ;;  %v2332_v48 = vpop.xlane.xlu1 %2331 }
 0xb4b   : > { %v2336_v49 = vsub.f32 %v2312_v20, %v2326_v42  ;;  %v2338_v34 = vsub.f32 %v2314_v19, %v2332_v48 }
 0xb4d   : > { %v2345_v38 = vmul.f32 1.442695, %v2336_v49  ;;  %v2349_v39 = vmul.f32 1.442695, %v2338_v34 }
 0xb4e   : > { %v2329_v41 = vpop.xlane.xlu0 %2328 }
 0xb4f   : > { %4861 = vpow2.f32 %v2345_v38  ;;  %v2337_v45 = vsub.f32 %v2313_v44, %v2329_v41 }
 0xb50   : > { %4863 = vpow2.f32 %v2349_v39 }
 0xb51   : > { %v2347_v53 = vmul.f32 1.442695, %v2337_v45 }
 0xb53   : > { %4865 = vpow2.f32 %v2347_v53 }
 0xb54   : > { %4867 = vpow2.f32 %v2343_v51 }
 0xb55   : > { %4869 = vpow2.f32 %v2339_v54 }
 0xb56   : > { %4871 = vpow2.f32 %v2341_v3 }
 0xb5c   : > { %v4862_v55 = vpop.eup %4861 }
 0xb5d   : > { %v2360_v56 = vsel %vm1482_vm6, %v4862_v55, 0.0  ;;  %v5632_v58 = vpop.eup %4863 }
 0xb5e   : > { %2361 = vadd.xlane.f32.xlu1 %v2360_v56  ;;  %v2366_v0 = vsel %vm1482_vm6, %v5632_v58, 0.0 }
 0xb60   : > { %v4866_v60 = vpop.eup %4865 }
 0xb61   : > { %v2363_v62 = vsel %vm1482_vm6, %v4866_v60, 0.0  ;;  %v5637_v2 = vpop.eup %4867 }
 0xb62   : > { %2364 = vadd.xlane.f32.xlu0 %v2363_v62  ;;  %2367 = vadd.xlane.f32.xlu1 %v2366_v0  ;;  %v2357_v5 = vsel %vm1482_vm6, %v5637_v2, 0.0  ;;  %v5641_v6 = vpop.eup %4869 }
 0xb63   : > { %v2351_v7 = vsel %vm1482_vm6, %v5641_v6, 0.0  ;;  %v4872_v9 = vpop.eup %4871 }
 0xb64   : > { %v2354_v10 = vsel %vm1482_vm6, %v4872_v9, 0.0 }
 0xb66   : > { %2358 = vadd.xlane.f32.xlu0 %v2357_v5 }
 0xb6a   : > { %2352 = vadd.xlane.f32.xlu0 %v2351_v7 }
 0xb73   : > { %2385 = vrot.lane.b32.xlu1 %v5383_v21, %s5045_s5 }
 0xb80   : > { %2387 = vrot.lane.b32.xlu0 %v5388_v25, %s5045_s5 }
 0xb84   : > { %2595 = vrot.lane.b32.xlu0 %v5388_v25, %s5046_s21 }
 0xb88   : > { %2663 = vrot.lane.b32.xlu0 %v5395_v37, %s5046_s21 }
 0xb8c   : > { %2591 = vrot.lane.b32.xlu0 %v5388_v25, %s5047_s18 }
 0xb90   : > { %2657 = vrot.lane.b32.xlu0 %v5391_v33, %s5047_s18 }
 0xb97   : > { %2355 = vadd.xlane.f32.xlu1 %v2354_v10 }
 0xba8   : > { %2449 = vrot.lane.b32.xlu1 %v5395_v37, %s5045_s5 }
 0xbac   : > { %2447 = vrot.lane.b32.xlu1 %v5391_v33, %s5045_s5  ;;  %s6105_s5 = sld [smem:[#allocation18_spill]] (!%p4246_p5) }
 0xbb0   : > { %2593 = vrot.lane.b32.xlu1 %v5383_v21, %s5046_s21 }
 0xbb4   : > { %2589 = vrot.lane.b32.xlu1 %v5383_v21, %s5047_s18 }
 0xbb8   : > { %2661 = vrot.lane.b32.xlu1 %v5391_v33, %s5046_s21 }
 0xbbc   : > { %2659 = vrot.lane.b32.xlu1 %v5395_v37, %s5047_s18  ;;  %s6103_s18 = scalar_lea.vmem %s6058_s17, %s5188_s27 }
 0xbe7   : > { %v2362_v11 = vpop.xlane.xlu1 %2361 }
 0xbe8   : > { %4873 = vrcp.f32 %v2362_v11 }
 0xbeb   : > { %v2365_v12 = vpop.xlane.xlu0 %2364  ;;  %v2368_v14 = vpop.xlane.xlu1 %2367 }
 0xbec   : > { %4875 = vrcp.f32 %v2365_v12 }
 0xbed   : > { %4877 = vrcp.f32 %v2368_v14 }
 0xbef   : > { %v2359_v13 = vpop.xlane.xlu0 %2358  ;;  %v2386_v23 = vpop.permute.xlu1 %2385 }
 0xbf0   : > { %4879 = vrcp.f32 %v2359_v13 }
 0xbf3   : > { %v2353_v15 = vpop.xlane.xlu0 %2352 }
 0xbf4   : > { %4881 = vrcp.f32 %v2353_v15 }
 0xbf5   : > { %v4874_v16 = vpop.eup %4873 }
 0xbf6   : > { %v2376_v26 = vmul.f32 %v4874_v16, %v4862_v55  ;;  %v2524_v55 = vsel %vm1564_vm7, %v4206_v50, 0  ;;  %v2153_v50 = vadd.f32 %v5596_v40, %v5611_v61 }
 0xbf7   : > { %v2388_v17 = vpop.permute.xlu0 %2387 }
 0xbf8   : > { %v2397_v18 = vsel %vm1564_vm7, %v2388_v17, 0  ;;  %4735 = vmatprep.subr.msk.bf16.mxu0 %vm1564_vm7, %v2388_v17  ;;  %v5689_v17 = vld [vmem:[%s6101_s23] ss:$0 sm:$0xff] }
 0xbf9   : > { %v4876_v19 = vpop.eup %4875  ;;  %4594 = vmatpush3.bf16.msra.mxu0 %v2397_v18 }
 0xbfa   : > { %4595 = vmatprep.subr.bf16.mxu0 %v2386_v23  ;;  %v2378_v27 = vmul.f32 %v4876_v19, %v4866_v60  ;;  %v4878_v46 = vpop.eup %4877 }
 0xbfb   : > { %v2380_v28 = vmul.f32 %v4878_v46, %v5632_v58  ;;  %v2596_v31 = vpop.permute.xlu0 %2595 }
 0xbfc   : > { %v2383_v20 = vpack.c.bf16 %v2378_v27, %v2376_v26  ;;  %v2607_v35 = vsel %vm1337_vm5, %v2596_v31, 0 }
 0xbfd   : > { %4596 = vmatpush3.bf16.msra.mxu0 %v2386_v23  ;;  %v4880_v42 = vpop.eup %4879  ;;  %v2384_v48 = vpack.c.bf16 %v2380_v28, %v2380_v28 }
 0xbfe   : > { %4605 = vmatprep.mubr.msk.bf16.mxu1 %vm1482_vm6, %v2383_v20  ;;  %4609 = vmatprep.subr.bf16.mxu0 %v5036_v29  ;;  %v2374_v39 = vmul.f32 %v4880_v42, %v5637_v2  ;;  %v2145_v42 = vadd.f32 %v5588_v32, %v5607_v57 }
 0xbff   : > { %v2664_v56 = vpop.permute.xlu0 %2663 }
 0xc00   : > { %v2382_v54 = vpack.c.bf16 %v2374_v39, %v2374_v39  ;;  %v2675_v10 = vsel %vm1337_vm5, %v2664_v56, 0 }
 0xc01   : > { %v4882_v49 = vpop.eup %4881 }
 0xc02   : > { %v2370_v41 = vmul.f32 %v4882_v49, %v5641_v6 }
 0xc03   : > { %v2592_v60 = vpop.permute.xlu0 %2591 }
 0xc20   : > { %v2356_v22 = vpop.xlane.xlu1 %2355 }
 0xc21   : > { %4883 = vrcp.f32 %v2356_v22 }
 0xc24   : > { %v2450_v44 = vpop.permute.xlu1 %2449 }
 0xc25   : > { %v2459_v24 = vsel %vm1564_vm7, %v2450_v44, 0  ;;  %4736 = vmatprep.subr.msk.bf16.mxu1 %vm1564_vm7, %v2450_v44 }
 0xc26   : > { %4602 = vmatpush3.bf16.msra.mxu1 %v2459_v24 }
 0xc28   : > { %v2448_v30 = vpop.permute.xlu1 %2447 }
 0xc29   : > { %4603 = vmatprep.subr.bf16.mxu1 %v2448_v30 }
 0xc2a   : > { %4604 = vmatpush3.bf16.msra.mxu1 %v2448_v30  ;;  %v2658_v30 = vpop.permute.xlu0 %2657 }
 0xc2b   : > { %4737 = vmatprep.subr.msk.bf16.mxu1 %vm1337_vm5, %v2596_v31 }
 0xc2c   : > { %v2594_v34 = vpop.permute.xlu1 %2593 }
 0xc2d   : > { %4606 = vmatmul.mubr.msk.bf16.vlgmr.msra.gmra.mxu1 %vm1482_vm6, %v2384_v48  ;;  %v2604_v58 = vsel %vm1337_vm5, %v2594_v34, 0 }
 0xc2e   : > { %v4884_v38 = vpop.eup %4883  ;;  %4624 = vmatpush3.bf16.xpose.msra.mxu1 %v2607_v35  ;;  %v2148_v35 = vadd.f32 %v5594_v36, %v5609_v59 }
 0xc2f   : > { %4738 = vmatprep.subr.msk.bf16.mxu1 %vm1337_vm5, %v2594_v34  ;;  %v2372_v45 = vmul.f32 %v4884_v38, %v4872_v9 }
 0xc30   : > { %v2590_v51 = vpop.permute.xlu1 %2589 }
 0xc31   : > { %4627 = vmatprep.mubr.msk.bf16.mxu1 %vm1337_vm5, %v2590_v51  ;;  %v2381_v53 = vpack.c.bf16 %v2372_v45, %v2370_v41 }
 0xc33   : > { %4597 = vmatprep.mubr.msk.bf16.mxu0 %vm1482_vm6, %v2381_v53 }
 0xc34   : > { %4598 = vmatmul.mubr.msk.bf16.vlgmr.msra.gmra.mxu0 %vm1482_vm6, %v2382_v54  ;;  %v2662_v12 = vpop.permute.xlu1 %2661 }
 0xc35   : > { %4610 = vmatpush3.bf16.msra.mxu0 %v2524_v55  ;;  %4611 = vmatprep.mubr.msk.bf16.mxu0 %vm5037_vm4, %v5036_v29  ;;  %v2672_v22 = vsel %vm1337_vm5, %v2662_v12, 0  ;;  %v2156_v55 = vadd.f32 %v5600_v43, %v5613_v63 }
 0xc36   : > { %4739 = vmatprep.subr.msk.bf16.mxu0 %vm1337_vm5, %v2664_v56  ;;  %4626 = vmatpush3.bf16.xpose.msra.mxu1 %v2604_v58 }
 0xc38   : > { %v2660_v31 = vpop.permute.xlu1 %2659 }
 0xc3d   : > { %4628 = vmatmul.mubr.msk.bf16.vlgmr.msra.gmra.mxu1 %vm1337_vm5, %v2592_v60  ;;  %v2161_v60 = vadd.f32 %v5602_v47, %v5615_v1 }
 0xced   : > { %v4607_v62 = vpop.f32.mrf.mxu1 }
 0xcef   : > { %v2495_v0 = vpop.f32.mrf.mxu1 }
 0xcf1   : > { %v4608_v2 = vpop.f32.mrf.mxu1 }
 0xcf3   : > { %v2498_v3 = vpop.f32.mrf.mxu1 }
 0xcf4   : > { %v4599_v5 = vpop.f32.mrf.mxu0  ;;  %v2511_v28 = vpack.c.bf16 %v4607_v62, %v2498_v3 }
 0xcf5   : > { %v2510_v19 = vpack.c.bf16 %v2495_v0, %v4599_v5  ;;  %v2164_v5 = vadd.f32 %v5605_v52, %v5617_v4 }
 0xcf6   : > { %v2433_v6 = vpop.f32.mrf.mxu0 }
 0xcf8   : > { %v4600_v7 = vpop.f32.mrf.mxu0 }
 0xcfa   : > { %v2436_v8 = vpop.f32.mrf.mxu0 }
 0xcfb   : > { %v2509_v9 = vpack.c.bf16 %v2436_v8, %v2433_v6 }
 0xcfd   : > { %4612 = vmatmul.mubr.msk.bf16.vlgmr.msra.gmra.mxu0 %vm1337_vm5, %v2509_v9  ;;  %v4629_v11 = vpop.f32.mrf.mxu1 }
 0xcfe   : > { %4632 = vmatpush3.bf16.xpose.msra.mxu0 %v2675_v10  ;;  %4615 = vmatprep.mubr.msk.bf16.mxu0 %vm5037_vm4, %v5036_v29  ;;  %v2727_v14 = vmul.f32 0.35355338, %v4629_v11 }
 0xcff   : > { %4740 = vmatprep.subr.msk.bf16.mxu0 %vm1337_vm5, %v2662_v12  ;;  %v2643_v13 = vpop.f32.mrf.mxu1 }
 0xd00   : > { %v2725_v15 = vmul.f32 0.35355338, %v2643_v13  ;;  %v2733_v20 = vadd.f32 %v5689_v17, %v2727_v14 }
 0xd01   : > { %v4630_v16 = vpop.f32.mrf.mxu1 }
 0xd02   : > { %v2731_v18 = vadd.f32 %v5689_v17, %v2725_v15  ;;  %v2743_v44 = vsel %vm1482_vm6, %v2733_v20, -inf }
 0xd03   : > { %v2646_v23 = vpop.f32.mrf.mxu1 }
 0xd04   : > { %v2726_v26 = vmul.f32 0.35355338, %v2646_v23  ;;  %v2737_v27 = vsel %vm1482_vm6, %v2731_v18, -inf }
 0xd05   : > { %4616 = vmatmul.mubr.msk.bf16.gmra.mxu0 %vm1337_vm5, %v2510_v19  ;;  %2738 = vmax.xlane.f32.xlu0 %v2737_v27 }
 0xd06   : > { %4634 = vmatpush3.bf16.xpose.msra.mxu0 %v2672_v22  ;;  %v2732_v46 = vadd.f32 %v5689_v17, %v2726_v26  ;;  %4619 = vmatprep.mubr.msk.bf16.mxu0 %vm5037_vm4, %v5036_v29 }
 0xd07   : > { %4655 = vmatprep.subr.bf16.mxu0 %v5036_v29 }
 0xd08   : > { %v2740_v24 = vsel %vm1482_vm6, %v2732_v46, -inf }
 0xd09   : > { %2744 = vmax.xlane.f32.xlu0 %v2743_v44  ;;  %2741 = vmax.xlane.f32.xlu1 %v2740_v24 }
 0xd0d   : > { %4620 = vmatmul.mubr.msk.bf16.gmra.mxu0 %vm1337_vm5, %v2511_v28 }
 0xd0e   : > { %4635 = vmatprep.mubr.msk.bf16.mxu0 %vm1337_vm5, %v2658_v30 }
 0xd15   : > { %4636 = vmatmul.mubr.msk.bf16.vlgmr.msra.gmra.mxu0 %vm1337_vm5, %v2660_v31 }
 0xd16   : > { %4657 = vmatprep.mubr.msk.bf16.mxu0 %vm5037_vm4, %v5036_v29 }
 0xd8e   : > { %v2739_v32 = vpop.xlane.xlu0 %2738 }
 0xd8f   : > { %v2755_v62 = vsub.f32 %v2731_v18, %v2739_v32 }
 0xd91   : > { %v2761_v6 = vmul.f32 1.442695, %v2755_v62 }
 0xd92   : > { %v2742_v41 = vpop.xlane.xlu1 %2741  ;;  %v2745_v0 = vpop.xlane.xlu0 %2744 }
 0xd93   : > { %v2756_v53 = vsub.f32 %v2732_v46, %v2742_v41  ;;  %v2757_v43 = vsub.f32 %v2733_v20, %v2745_v0 }
 0xd95   : > { %v2763_v58 = vmul.f32 1.442695, %v2756_v53  ;;  %v2765_v3 = vmul.f32 1.442695, %v2757_v43 }
 0xd97   : > { %4885 = vpow2.f32 %v2763_v58 }
 0xd98   : > { %4887 = vpow2.f32 %v2761_v6 }
 0xd99   : > { %4889 = vpow2.f32 %v2765_v3 }
 0xda4   : > { %v4886_v4 = vpop.eup %4885 }
 0xda5   : > { %v2776_v18 = vsel %vm1482_vm6, %v4886_v4, 0.0  ;;  %v4888_v26 = vpop.eup %4887 }
 0xda6   : > { %v2773_v27 = vsel %vm1482_vm6, %v4888_v26, 0.0  ;;  %v4890_v20 = vpop.eup %4889 }
 0xda7   : > { %v2779_v22 = vsel %vm1482_vm6, %v4890_v20, 0.0 }
 0xdbd   : > { %v2560_v48 = vpop.f32.mrf.mxu0 }
 0xdbe   : > { %v5709_v49 = vadd.f32 %v2560_v48, %v2145_v42 }
 0xdbf   : > { %v4613_v34 = vpop.f32.mrf.mxu0 }
 0xdc1   : > { %v2563_v38 = vpop.f32.mrf.mxu0 }
 0xdc2   : > { %v5713_v39 = vadd.f32 %v2563_v38, %v2148_v35 }
 0xdc3   : > { %v4614_v45 = vpop.f32.mrf.mxu0 }
 0xdc5   : > { %v2568_v51 = vpop.f32.mrf.mxu0 }
 0xdc6   : > { %v5717_v54 = vadd.f32 %v2568_v51, %v2153_v50 }
 0xdc7   : > { %v4617_v57 = vpop.f32.mrf.mxu0 }
 0xdc9   : > { %v2571_v56 = vpop.f32.mrf.mxu0 }
 0xdca   : > { %v5721_v36 = vadd.f32 %v2571_v56, %v2156_v55 }
 0xdcb   : > { %v4618_v59 = vpop.f32.mrf.mxu0 }
 0xdcd   : > { %v2576_v40 = vpop.f32.mrf.mxu0 }
 0xdce   : > { %v5725_v61 = vadd.f32 %v2576_v40, %v2161_v60 }
 0xdcf   : > { %v4621_v2 = vpop.f32.mrf.mxu0 }
 0xdd1   : > { %v2579_v63 = vpop.f32.mrf.mxu0 }
 0xdd2   : > { %v5729_v7 = vadd.f32 %v2579_v63, %v2164_v5 }
 0xdd3   : > { %v4622_v8 = vpop.f32.mrf.mxu0 }
 0xdd5   : > { %v4637_v9 = vpop.f32.mrf.mxu0 }
 0xdd6   : > { %v2730_v47 = vmul.f32 0.35355338, %v4637_v9 }
 0xdd7   : > { %v2711_v1 = vpop.f32.mrf.mxu0 }
 0xdd8   : > { %v2728_v10 = vmul.f32 0.35355338, %v2711_v1  ;;  %v2736_v11 = vadd.f32 %v5689_v17, %v2730_v47 }
 0xdd9   : > { %v4638_v12 = vpop.f32.mrf.mxu0 }
 0xdda   : > { %v2752_v13 = vsel %vm1482_vm6, %v2736_v11, -inf  ;;  %v2734_v52 = vadd.f32 %v5689_v17, %v2728_v10  ;;  %v4218_v12 = vld [vmem:[%s5211_s19 + $0xc] sm:$0xf] }
 0xddb   : > { %2753 = vmax.xlane.f32.xlu1 %v2752_v13  ;;  %v2714_v14 = vpop.f32.mrf.mxu0  ;;  %v2946_v13 = vsel %vm1564_vm7, %v4218_v12, 0 }
 0xddc   : > { %v2729_v15 = vmul.f32 0.35355338, %v2714_v14  ;;  %v2746_v16 = vsel %vm1482_vm6, %v2734_v52, -inf  ;;  %4656 = vmatpush3.bf16.msra.mxu0 %v2946_v13 }
 0xddd   : > { %2747 = vmax.xlane.f32.xlu0 %v2746_v16  ;;  %4685 = vmatprep.subr.bf16.mxu0 %v5036_v29 }
 0xdde   : > { %v2735_v19 = vadd.f32 %v5689_v17, %v2729_v15 }
 0xddf   : > { %2777 = vadd.xlane.f32.xlu1 %v2776_v18 }
 0xde0   : > { %v2749_v23 = vsel %vm1482_vm6, %v2735_v19, -inf }
 0xde1   : > { %2750 = vmax.xlane.f32.xlu0 %v2749_v23 }
 0xde5   : > { %2774 = vadd.xlane.f32.xlu0 %v2773_v27 }
 0xde9   : > { %2780 = vadd.xlane.f32.xlu0 %v2779_v22 }
 0xe64   : > { %v2754_v46 = vpop.xlane.xlu1 %2753 }
 0xe65   : > { %v2760_v44 = vsub.f32 %v2736_v11, %v2754_v46 }
 0xe66   : > { %v2748_v24 = vpop.xlane.xlu0 %2747 }
 0xe67   : > { %v2771_v28 = vmul.f32 1.442695, %v2760_v44  ;;  %v2758_v30 = vsub.f32 %v2734_v52, %v2748_v24  ;;  %v4222_v44 = vld [vmem:[%s6102_s25] ss:$0 sm:$0xff]  ;;  %s6104_s25 = sld [smem:[#allocation17_spill]] (!%p4246_p5) }
 0xe68   : > { %v2778_v42 = vpop.xlane.xlu1 %2777 }
 0xe69   : > { %4891 = vpow2.f32 %v2771_v28  ;;  %v2767_v31 = vmul.f32 1.442695, %v2758_v30  ;;  %v4946_v28 = vld [vmem:[#allocation2] sm:$0xff] }
 0xe6a   : > { %v2751_v17 = vpop.xlane.xlu0 %2750 }
 0xe6b   : > { %4893 = vpow2.f32 %v2767_v31  ;;  %v2759_v48 = vsub.f32 %v2735_v19, %v2751_v17 }
 0xe6c   : > { %4895 = vrcp.f32 %v2778_v42 }
 0xe6d   : > { %v2769_v34 = vmul.f32 1.442695, %v2759_v48 }
 0xe6e   : > { %v2775_v35 = vpop.xlane.xlu0 %2774 }
 0xe6f   : > { %4897 = vpow2.f32 %v2769_v34  ;;  %v4947_v34 = vld [vmem:[#allocation2 + $0x8] sm:$0xff] }
 0xe70   : > { %4899 = vrcp.f32 %v2775_v35 }
 0xe72   : > { %v2781_v59 = vpop.xlane.xlu0 %2780 }
 0xe73   : > { %4901 = vrcp.f32 %v2781_v59 }
 0xe76   : > { %v4892_v38 = vpop.eup %4891 }
 0xe77   : > { %v2788_v41 = vsel %vm1482_vm6, %v4892_v38, 0.0 }
 0xe78   : > { %v4894_v45 = vpop.eup %4893  ;;  %2789 = vadd.xlane.f32.xlu1 %v2788_v41 }
 0xe79   : > { %v4896_v50 = vpop.eup %4895  ;;  %v2782_v51 = vsel %vm1482_vm6, %v4894_v45, 0.0 }
 0xe7a   : > { %v2794_v56 = vmul.f32 %v4896_v50, %v4886_v4 }
 0xe7c   : > { %v4898_v53 = vpop.eup %4897  ;;  %2783 = vadd.xlane.f32.xlu1 %v2782_v51  ;;  %v4948_v51 = vld [vmem:[#allocation2 + $0x10] sm:$0xff] }
 0xe7d   : > { %v4900_v32 = vpop.eup %4899  ;;  %v2785_v57 = vsel %vm1482_vm6, %v4898_v53, 0.0 }
 0xe7e   : > { %2786 = vadd.xlane.f32.xlu0 %v2785_v57  ;;  %v2792_v55 = vmul.f32 %v4900_v32, %v4888_v26 }
 0xe80   : > { %v2803_v58 = vpack.c.bf16 %v2794_v56, %v2792_v55  ;;  %v4902_v2 = vpop.eup %4901 }
 0xe82   : > { %4643 = vmatprep.mubr.msk.bf16.mxu1 %vm1482_vm6, %v2803_v58  ;;  %v4949_v58 = vld [vmem:[#allocation2 + $0x18] sm:$0xff] }
 0xe8d   : > { %2807 = vrot.lane.b32.xlu1 %v5383_v21, %s5048_s8  ;;  %v2796_v21 = vmul.f32 %v4902_v2, %v4890_v20  ;;  %v4950_v2 = vld [vmem:[#allocation2 + $0x20] sm:$0xff] }
 0xe91   : > { %2871 = vrot.lane.b32.xlu1 %v5395_v37, %s5048_s8  ;;  %v2804_v37 = vpack.c.bf16 %v2796_v21, %v2796_v21 }
 0xe94   : > { %2809 = vrot.lane.b32.xlu0 %v5388_v25, %s5048_s8 }
 0xe95   : > { %2869 = vrot.lane.b32.xlu1 %v5391_v33, %s5048_s8 }
 0xf01   : > { %v2790_v60 = vpop.xlane.xlu1 %2789 }
 0xf02   : > { %4903 = vrcp.f32 %v2790_v60 }
 0xf05   : > { %v2784_v62 = vpop.xlane.xlu1 %2783 }
 0xf06   : > { %4905 = vrcp.f32 %v2784_v62 }
 0xf07   : > { %v2787_v0 = vpop.xlane.xlu0 %2786 }
 0xf08   : > { %4907 = vrcp.f32 %v2787_v0 }
 0xf09   : > { %v2808_v40 = vpop.permute.xlu1 %2807 }
 0xf0b   : > { %v2810_v5 = vpop.permute.xlu0 %2809 }
 0xf0c   : > { %v2819_v6 = vsel %vm1564_vm7, %v2810_v5, 0  ;;  %4741 = vmatprep.subr.msk.bf16.mxu1 %vm1564_vm7, %v2810_v5 }
 0xf0d   : > { %4640 = vmatpush3.bf16.msra.mxu1 %v2819_v6  ;;  %v2872_v25 = vpop.permute.xlu1 %2871 }
 0xf0e   : > { %4641 = vmatprep.subr.bf16.mxu1 %v2808_v40  ;;  %v2881_v63 = vsel %vm1564_vm7, %v2872_v25, 0 }
 0xf0f   : > { %v4904_v33 = vpop.eup %4903 }
 0xf10   : > { %v2802_v1 = vmul.f32 %v4904_v33, %v4892_v38 }
 0xf11   : > { %4642 = vmatpush3.bf16.msra.mxu1 %v2808_v40  ;;  %v2870_v3 = vpop.permute.xlu1 %2869 }
 0xf12   : > { %4742 = vmatprep.subr.msk.bf16.mxu1 %vm1564_vm7, %v2872_v25  ;;  %v2806_v11 = vpack.c.bf16 %v2802_v1, %v2802_v1 }
 0xf13   : > { %v4906_v43 = vpop.eup %4905 }
 0xf14   : > { %4644 = vmatmul.mubr.msk.bf16.vlgmr.msra.gmra.mxu1 %vm1482_vm6, %v2804_v37  ;;  %v2798_v9 = vmul.f32 %v4906_v43, %v4894_v45  ;;  %v4951_v37 = vld [vmem:[#allocation2 + $0x28] sm:$0xff] }
 0xf15   : > { %v4908_v8 = vpop.eup %4907  ;;  %4648 = vmatpush3.bf16.msra.mxu1 %v2881_v63 }
 0xf16   : > { %4649 = vmatprep.subr.bf16.mxu1 %v2870_v3  ;;  %v2800_v47 = vmul.f32 %v4908_v8, %v4898_v53 }
 0xf18   : > { %v2805_v10 = vpack.c.bf16 %v2800_v47, %v2798_v9 }
 0xf19   : > { %4650 = vmatpush3.bf16.msra.mxu1 %v2870_v3 }
 0xf1a   : > { %4651 = vmatprep.mubr.msk.bf16.mxu1 %vm1482_vm6, %v2805_v10  ;;  %4669 = vmatprep.subr.bf16.mxu1 %v5036_v29 }
 0xf1c   : > { %4652 = vmatmul.mubr.msk.bf16.vlgmr.msra.gmra.mxu1 %vm1482_vm6, %v2806_v11 }
 0xf1d   : > { %4673 = vmatprep.mubr.msk.bf16.mxu1 %vm5037_vm4, %v5036_v29 }
 0xfd4   : > { %v4645_v52 = vpop.f32.mrf.mxu1 }
 0xfd6   : > { %v2855_v4 = vpop.f32.mrf.mxu1 }
 0xfd8   : > { %v4646_v14 = vpop.f32.mrf.mxu1 }
 0xfda   : > { %v2858_v15 = vpop.f32.mrf.mxu1 }
 0xfdb   : > { %v2931_v16 = vpack.c.bf16 %v2858_v15, %v2855_v4 }
 0xfdc   : > { %v4653_v18 = vpop.f32.mrf.mxu1 }
 0xfdd   : > { %4658 = vmatmul.mubr.msk.bf16.vlgmr.msra.gmra.mxu0 %vm1337_vm5, %v2931_v16 }
 0xfde   : > { %v2917_v19 = vpop.f32.mrf.mxu1  ;;  %4661 = vmatprep.mubr.msk.bf16.mxu0 %vm5037_vm4, %v5036_v29 }
 0xfdf   : > { %v2932_v26 = vpack.c.bf16 %v2917_v19, %v4645_v52 }
 0xfe0   : > { %v4654_v23 = vpop.f32.mrf.mxu1 }
 0xfe2   : > { %v2920_v27 = vpop.f32.mrf.mxu1 }
 0xfe3   : > { %v2933_v20 = vpack.c.bf16 %v4653_v18, %v2920_v27 }
 0xfe5   : > { %4662 = vmatmul.mubr.msk.bf16.gmra.mxu0 %vm1337_vm5, %v2932_v26 }
 0xfe6   : > { %4665 = vmatprep.mubr.msk.bf16.mxu0 %vm5037_vm4, %v5036_v29 }
 0xfed   : > { %4666 = vmatmul.mubr.msk.bf16.gmra.mxu0 %vm1337_vm5, %v2933_v20 }
 0xfee   : > { %4701 = vmatprep.mubr.msk.bf16.mxu0 %vm5037_vm4, %v5036_v29 }
0x109d   : > { %v2982_v22 = vpop.f32.mrf.mxu0 }
0x109e   : > { %v3005_v46 = vadd.f32 %v2982_v22, %v5709_v49 }
0x109f   : > { %v4659_v24 = vpop.f32.mrf.mxu0 }
0x10a0   : > { %v3011_v30 = vadd.f32 %v4946_v28, %v3005_v46 }
0x10a1   : > { %v2985_v31 = vpop.f32.mrf.mxu0 }
0x10a2   : > { %v5776_v17 = vadd.f32 %v4222_v44, %v3011_v30  ;;  %v3006_v42 = vadd.f32 %v2985_v31, %v5713_v39 }
0x10a3   : > { %v4660_v48 = vpop.f32.mrf.mxu0 }
0x10a4   : > { %v3012_v35 = vadd.f32 %v4947_v34, %v3006_v42  ;;  %v3032_v38 = vsel %vm1130_vm3, %v5776_v17, 0.0 }
0x10a5   : > { %3033 = vadd.xlane.f32.xlu0 %v3032_v38  ;;  %v2990_v49 = vpop.f32.mrf.mxu0  ;;  %v4792_v38 = vld [vmem:[%s5228_s6] sm:$0xff]  }
0x10a6   : > { %v5781_v41 = vadd.f32 %v4222_v44, %v3012_v35  ;;  %v3007_v45 = vadd.f32 %v2990_v49, %v5717_v54  ;;  %v4791_v35 = vld [vmem:[%s5228_s6 + $0x8] sm:$0xff]  }
0x10a7   : > { %v4663_v50 = vpop.f32.mrf.mxu0  ;;  %4670 = vmatpush3.bf16.msra.mxu1 %v4791_v35  ;;  %v4225_v35 = vld [vmem:[%s887_s10] ss:$0 sm:$0xff] }
0x10a8   : > { %v3013_v53 = vadd.f32 %v4948_v51, %v3007_v45  ;;  %v3035_v32 = vsel %vm1130_vm3, %v5781_v41, 0.0  ;;  %4671 = vmatprep.subr.bf16.mxu1 %v5036_v29 }
0x10a9   : > { %3036 = vadd.xlane.f32.xlu1 %v3035_v32  ;;  %v2993_v39 = vpop.f32.mrf.mxu0 }
0x10aa   : > { %v5786_v57 = vadd.f32 %v4222_v44, %v3013_v53  ;;  %v3008_v55 = vadd.f32 %v2993_v39, %v5721_v36 }
0x10ab   : > { %v4664_v56 = vpop.f32.mrf.mxu0  ;;  %4672 = vmatpush3.bf16.msra.mxu1 %v4792_v38 }
0x10ac   : > { %v3014_v59 = vadd.f32 %v4949_v58, %v3008_v55  ;;  %v3038_v60 = vsel %vm1130_vm3, %v5786_v57, 0.0 }
0x10ad   : > { %3039 = vadd.xlane.f32.xlu0 %v3038_v60  ;;  %v2998_v54 = vpop.f32.mrf.mxu0 }
0x10ae   : > { %v5791_v62 = vadd.f32 %v4222_v44, %v3014_v59  ;;  %v3009_v0 = vadd.f32 %v2998_v54, %v5725_v61 }
0x10af   : > { %v4667_v40 = vpop.f32.mrf.mxu0 }
0x10b0   : > { %v3015_v5 = vadd.f32 %v4950_v2, %v3009_v0  ;;  %v3041_v6 = vsel %vm1130_vm3, %v5791_v62, 0.0 }
0x10b1   : > { %3042 = vadd.xlane.f32.xlu0 %v3041_v6  ;;  %v3001_v36 = vpop.f32.mrf.mxu0 }
0x10b2   : > { %v5796_v21 = vadd.f32 %v4222_v44, %v3015_v5  ;;  %v3010_v25 = vadd.f32 %v3001_v36, %v5729_v7  ;;  %v4223_v36 = vld [vmem:[%s876_s3] ss:$0 sm:$0xff]  ;;  %s6107_s3 = sld [smem:[#allocation20_spill]] (!%p4246_p5) }
0x10b3   : > { %v4668_v33 = vpop.f32.mrf.mxu0 }
0x10b4   : > { %v3016_v43 = vadd.f32 %v4951_v37, %v3010_v25  ;;  %v3044_v63 = vsel %vm1130_vm3, %v5796_v21, 0.0 }
0x10b5   : > { %3045 = vadd.xlane.f32.xlu0 %v3044_v63 }
0x10b6   : > { %v5801_v61 = vadd.f32 %v4222_v44, %v3016_v43 }
0x10b8   : > { %v3047_v8 = vsel %vm1130_vm3, %v5801_v61, 0.0 }
0x10b9   : > { %3048 = vadd.xlane.f32.xlu1 %v3047_v8  ;;  %v4224_v8 = vld [vmem:[%s879_s1] ss:$0 sm:$0xff] }
0x112e   : > { %v3034_v3 = vpop.xlane.xlu0 %3033 }
0x112f   : > { %v3050_v9 = vmul.f32 0.03125, %v3034_v3 }
0x1131   : > { %v3056_v47 = vsub.f32 %v5776_v17, %v3050_v9 }
0x1132   : > { %v3037_v1 = vpop.xlane.xlu1 %3036 }
0x1133   : > { %v3051_v10 = vmul.f32 0.03125, %v3037_v1  ;;  %v3062_v7 = vmul.f32 %v3056_v47, %v3056_v47 }
0x1135   : > { %v3057_v11 = vsub.f32 %v5781_v41, %v3051_v10  ;;  %v3068_v12 = vsel %vm1130_vm3, %v3062_v7, 0.0 }
0x1136   : > { %v3040_v13 = vpop.xlane.xlu0 %3039  ;;  %3069 = vadd.xlane.f32.xlu0 %v3068_v12 }
0x1137   : > { %v3052_v52 = vmul.f32 0.03125, %v3040_v13  ;;  %v3063_v4 = vmul.f32 %v3057_v11, %v3057_v11 }
0x1139   : > { %v5809_v14 = vsub.f32 %v5786_v57, %v3052_v52  ;;  %v3071_v15 = vsel %vm1130_vm3, %v3063_v4, 0.0 }
0x113a   : > { %v3043_v16 = vpop.xlane.xlu0 %3042  ;;  %3072 = vadd.xlane.f32.xlu1 %v3071_v15 }
0x113b   : > { %v3053_v18 = vmul.f32 0.03125, %v3043_v16  ;;  %v3064_v19 = vmul.f32 %v5809_v14, %v5809_v14 }
0x113d   : > { %v3059_v23 = vsub.f32 %v5791_v62, %v3053_v18  ;;  %v3074_v26 = vsel %vm1130_vm3, %v3064_v19, 0.0 }
0x113e   : > { %3075 = vadd.xlane.f32.xlu0 %v3074_v26  ;;  %v3046_v27 = vpop.xlane.xlu0 %3045 }
0x113f   : > { %v3054_v20 = vmul.f32 0.03125, %v3046_v27  ;;  %v3065_v22 = vmul.f32 %v3059_v23, %v3059_v23 }
0x1141   : > { %v5817_v46 = vsub.f32 %v5796_v21, %v3054_v20  ;;  %v3077_v44 = vsel %vm1130_vm3, %v3065_v22, 0.0 }
0x1142   : > { %3078 = vadd.xlane.f32.xlu1 %v3077_v44  ;;  %v3049_v24 = vpop.xlane.xlu1 %3048 }
0x1143   : > { %v3055_v28 = vmul.f32 0.03125, %v3049_v24  ;;  %v3066_v30 = vmul.f32 %v5817_v46, %v5817_v46  ;;  %v4794_v24 = vld [vmem:[%s5238_s0 + $0x30] sm:$0xff]  }
0x1145   : > { %v3061_v31 = vsub.f32 %v5801_v61, %v3055_v28  ;;  %v3080_v42 = vsel %vm1130_vm3, %v3066_v30, 0.0  ;;  %v4795_v28 = vld [vmem:[%s5238_s0 + $0x28] sm:$0xff]   ;;  %v4796_v30 = vld [vmem:[%s5238_s0 + $0x20] sm:$0xff]  }
0x1146   : > { %3081 = vadd.xlane.f32.xlu0 %v3080_v42  ;;  %v4798_v42 = vld [vmem:[%s5238_s0 + $0x10] sm:$0xff]  }
0x1147   : > { %v3067_v48 = vmul.f32 %v3061_v31, %v3061_v31 }
0x1149   : > { %v3083_v34 = vsel %vm1130_vm3, %v3067_v48, 0.0  ;;  %v4799_v48 = vld [vmem:[%s5238_s0 + $0x8] sm:$0xff]  }
0x114a   : > { %3084 = vadd.xlane.f32.xlu1 %v3083_v34  ;;  %v4800_v34 = vld [vmem:[%s5238_s0] sm:$0xff]  }
0x11bf   : > { %v3070_v49 = vpop.xlane.xlu0 %3069 }
0x11c0   : > { %v3086_v45 = vmul.f32 0.03125, %v3070_v49 }
0x11c2   : > { %v3092_v50 = vadd.f32 1e-05, %v3086_v45 }
0x11c3   : > { %v3073_v51 = vpop.xlane.xlu1 %3072 }
0x11c4   : > { %4909 = vrsqrt.f32 %v3092_v50  ;;  %v3087_v53 = vmul.f32 0.03125, %v3073_v51 }
0x11c6   : > { %v3093_v32 = vadd.f32 1e-05, %v3087_v53 }
0x11c7   : > { %v3076_v39 = vpop.xlane.xlu0 %3075 }
0x11c8   : > { %4911 = vrsqrt.f32 %v3093_v32  ;;  %v3088_v55 = vmul.f32 0.03125, %v3076_v39 }
0x11ca   : > { %v3094_v56 = vadd.f32 1e-05, %v3088_v55 }
0x11cb   : > { %v3079_v58 = vpop.xlane.xlu1 %3078 }
0x11cc   : > { %4913 = vrsqrt.f32 %v3094_v56  ;;  %v3089_v59 = vmul.f32 0.03125, %v3079_v58 }
0x11ce   : > { %v3095_v60 = vadd.f32 1e-05, %v3089_v59 }
0x11cf   : > { %v3082_v54 = vpop.xlane.xlu0 %3081 }
0x11d0   : > { %4915 = vrsqrt.f32 %v3095_v60  ;;  %v3090_v0 = vmul.f32 0.03125, %v3082_v54 }
0x11d1   : > { %v4910_v40 = vpop.eup %4909 }
0x11d2   : > { %v3104_v2 = vmul.f32 %v4910_v40, %v3056_v47  ;;  %v3096_v5 = vadd.f32 1e-05, %v3090_v0 }
0x11d3   : > { %v3085_v6 = vpop.xlane.xlu1 %3084 }
0x11d4   : > { %4917 = vrsqrt.f32 %v3096_v5  ;;  %v3091_v25 = vmul.f32 0.03125, %v3085_v6  ;;  %v3116_v63 = vmul.f32 %v4223_v36, %v3104_v2 }
0x11d5   : > { %v4912_v33 = vpop.eup %4911 }
0x11d6   : > { %v3105_v37 = vmul.f32 %v4912_v33, %v3057_v11  ;;  %v3097_v43 = vadd.f32 1e-05, %v3091_v25  ;;  %v3128_v47 = vadd.f32 %v4224_v8, %v3116_v63 }
0x11d8   : > { %4919 = vrsqrt.f32 %v3097_v43  ;;  %v3117_v3 = vmul.f32 %v4223_v36, %v3105_v37 }
0x11d9   : > { %v4914_v9 = vpop.eup %4913 }
0x11da   : > { %v3129_v1 = vadd.f32 %v4224_v8, %v3117_v3  ;;  %v3106_v10 = vmul.f32 %v4914_v9, %v5809_v14 }
0x11dc   : > { %v3134_v7 = vpack.c.bf16 %v3129_v1, %v3128_v47  ;;  %v3118_v11 = vmul.f32 %v4223_v36, %v3106_v10 }
0x11dd   : > { %v4916_v12 = vpop.eup %4915 }
0x11de   : > { %4674 = vmatmul.mubr.msk.bf16.vlgmr.msra.gmra.mxu1 %vm1130_vm3, %v3134_v7  ;;  %v3107_v13 = vmul.f32 %v4916_v12, %v3059_v23  ;;  %v3130_v15 = vadd.f32 %v4224_v8, %v3118_v11 }
0x11df   : > { %4677 = vmatprep.mubr.msk.bf16.mxu1 %vm5037_vm4, %v5036_v29 }
0x11e0   : > { %v3119_v52 = vmul.f32 %v4223_v36, %v3107_v13 }
0x11e1   : > { %v4918_v4 = vpop.eup %4917 }
0x11e2   : > { %v3131_v16 = vadd.f32 %v4224_v8, %v3119_v52  ;;  %v3108_v18 = vmul.f32 %v4918_v4, %v5817_v46  ;;  %v4793_v46 = vld [vmem:[%s5238_s0 + $0x38] sm:$0xff]  }
0x11e3   : > { %4686 = vmatpush3.bf16.msra.mxu0 %v4793_v46 }
0x11e4   : > { %v3135_v19 = vpack.c.bf16 %v3131_v16, %v3130_v15  ;;  %v3120_v27 = vmul.f32 %v4223_v36, %v3108_v18  ;;  %4687 = vmatprep.subr.bf16.mxu0 %v5036_v29 }
0x11e5   : > { %v4920_v26 = vpop.eup %4919 }
0x11e6   : > { %4678 = vmatmul.mubr.msk.bf16.gmra.mxu1 %vm1130_vm3, %v3135_v19  ;;  %v3109_v14 = vmul.f32 %v4920_v26, %v3061_v31  ;;  %v3132_v20 = vadd.f32 %v4224_v8, %v3120_v27  ;;  %v4797_v31 = vld [vmem:[%s5238_s0 + $0x18] sm:$0xff]  }
0x11e7   : > { %4681 = vmatprep.mubr.msk.bf16.mxu1 %vm5037_vm4, %v5036_v29  ;;  %4688 = vmatpush3.bf16.msra.mxu0 %v4794_v24 }
0x11e8   : > { %v3121_v23 = vmul.f32 %v4223_v36, %v3109_v14  ;;  %4689 = vmatprep.subr.bf16.mxu0 %v5036_v29 }
0x11ea   : > { %v3133_v22 = vadd.f32 %v4224_v8, %v3121_v23 }
0x11eb   : > { %4690 = vmatpush3.bf16.msra.mxu0 %v4795_v28 }
0x11ec   : > { %v3136_v44 = vpack.c.bf16 %v3133_v22, %v3132_v20  ;;  %4691 = vmatprep.subr.bf16.mxu0 %v5036_v29 }
0x11ee   : > { %4682 = vmatmul.mubr.msk.bf16.gmra.mxu1 %vm1130_vm3, %v3136_v44 }
0x11ef   : > { %4692 = vmatpush3.bf16.msra.mxu0 %v4796_v30 }
0x11f0   : > { %4693 = vmatprep.subr.bf16.mxu0 %v5036_v29 }
0x11f3   : > { %4694 = vmatpush3.bf16.msra.mxu0 %v4797_v31 }
0x11f4   : > { %4695 = vmatprep.subr.bf16.mxu0 %v5036_v29 }
0x11f7   : > { %4696 = vmatpush3.bf16.msra.mxu0 %v4798_v42 }
0x11f8   : > { %4697 = vmatprep.subr.bf16.mxu0 %v5036_v29 }
0x11fb   : > { %4698 = vmatpush3.bf16.msra.mxu0 %v4799_v48 }
0x11fc   : > { %4699 = vmatprep.subr.bf16.mxu0 %v5036_v29 }
0x11ff   : > { %4700 = vmatpush3.bf16.msra.mxu0 %v4800_v34 }
0x129e   : > { %v3203_v38 = vpop.f32.mrf.mxu1 }
0x129f   : > { %v3204_v49 = vadd.f32 %v4225_v35, %v3203_v38  ;;  %v4237_v38 = vld [vmem:[%s6103_s18] ss:$0 sm:$0xff] }
0x12a0   : > { %v4675_v45 = vpop.f32.mrf.mxu1 }
0x12a1   : > { %v4231_v50 = vmul.f32 -1.702, %v3204_v49 }
0x12a2   : > { %v3206_v51 = vpop.f32.mrf.mxu1 }
0x12a3   : > { %v3238_v53 = vmul.f32 1.442695, %v4231_v50  ;;  %v3207_v32 = vadd.f32 %v4225_v35, %v3206_v51 }
0x12a4   : > { %v4676_v39 = vpop.f32.mrf.mxu1 }
0x12a5   : > { %4921 = vpow2.f32 %v3238_v53  ;;  %v4232_v55 = vmul.f32 -1.702, %v3207_v32 }
0x12a6   : > { %v3211_v56 = vpop.f32.mrf.mxu1 }
0x12a7   : > { %v3240_v58 = vmul.f32 1.442695, %v4232_v55  ;;  %v3212_v59 = vadd.f32 %v4225_v35, %v3211_v56 }
0x12a8   : > { %v4679_v60 = vpop.f32.mrf.mxu1 }
0x12a9   : > { %4923 = vpow2.f32 %v3240_v58  ;;  %v4233_v54 = vmul.f32 -1.702, %v3212_v59 }
0x12aa   : > { %v3214_v0 = vpop.f32.mrf.mxu1 }
0x12ab   : > { %v3242_v40 = vmul.f32 1.442695, %v4233_v54  ;;  %v3215_v2 = vadd.f32 %v4225_v35, %v3214_v0 }
0x12ac   : > { %v4680_v5 = vpop.f32.mrf.mxu1 }
0x12ad   : > { %4925 = vpow2.f32 %v3242_v40  ;;  %v4234_v6 = vmul.f32 -1.702, %v3215_v2 }
0x12ae   : > { %v3219_v36 = vpop.f32.mrf.mxu1 }
0x12af   : > { %v3244_v25 = vmul.f32 1.442695, %v4234_v6  ;;  %v3220_v33 = vadd.f32 %v4225_v35, %v3219_v36 }
0x12b0   : > { %v4683_v37 = vpop.f32.mrf.mxu1 }
0x12b1   : > { %4927 = vpow2.f32 %v3244_v25  ;;  %v4235_v43 = vmul.f32 -1.702, %v3220_v33 }
0x12b2   : > { %v4922_v63 = vpop.eup %4921  ;;  %v3222_v8 = vpop.f32.mrf.mxu1 }
0x12b3   : > { %v3250_v3 = vadd.f32 1.0, %v4922_v63  ;;  %v3246_v9 = vmul.f32 1.442695, %v4235_v43  ;;  %v3223_v47 = vadd.f32 %v4225_v35, %v3222_v8 }
0x12b4   : > { %v4684_v1 = vpop.f32.mrf.mxu1 }
0x12b5   : > { %v4236_v10 = vmul.f32 -1.702, %v3223_v47  ;;  %4929 = vpow2.f32 %v3246_v9 }
0x12b6   : > { %v4924_v7 = vpop.eup %4923  ;;  %4931 = vrcp.f32 %v3250_v3 }
0x12b7   : > { %v3251_v12 = vadd.f32 1.0, %v4924_v7  ;;  %v3248_v13 = vmul.f32 1.442695, %v4236_v10 }
0x12b9   : > { %4933 = vrcp.f32 %v3251_v12 }
0x12ba   : > { %v4926_v11 = vpop.eup %4925  ;;  %4935 = vpow2.f32 %v3248_v13 }
0x12bb   : > { %v3252_v52 = vadd.f32 1.0, %v4926_v11 }
0x12bd   : > { %4937 = vrcp.f32 %v3252_v52 }
0x12be   : > { %v4928_v4 = vpop.eup %4927 }
0x12bf   : > { %v3253_v15 = vadd.f32 1.0, %v4928_v4 }
0x12c1   : > { %4939 = vrcp.f32 %v3253_v15 }
0x12c2   : > { %v4930_v16 = vpop.eup %4929 }
0x12c3   : > { %v4932_v18 = vpop.eup %4931  ;;  %v3254_v19 = vadd.f32 1.0, %v4930_v16 }
0x12c4   : > { %v3268_v27 = vmul.f32 %v4932_v18, %v3204_v49 }
0x12c5   : > { %4941 = vrcp.f32 %v3254_v19 }
0x12c6   : > { %v4934_v26 = vpop.eup %4933 }
0x12c7   : > { %v4936_v14 = vpop.eup %4935  ;;  %v3269_v23 = vmul.f32 %v4934_v26, %v3207_v32 }
0x12c8   : > { %v3255_v20 = vadd.f32 1.0, %v4936_v14 }
0x12c9   : > { %v3274_v22 = vpack.c.bf16 %v3269_v23, %v3268_v27 }
0x12ca   : > { %4943 = vrcp.f32 %v3255_v20  ;;  %v4938_v44 = vpop.eup %4937 }
0x12cb   : > { %4702 = vmatmul.mubr.bf16.vlgmr.msra.gmra.mxu0 %v3274_v22  ;;  %v3270_v24 = vmul.f32 %v4938_v44, %v3212_v59 }
0x12cc   : > { %4705 = vmatprep.mubr.msk.bf16.mxu0 %vm5037_vm4, %v5036_v29 }
0x12ce   : > { %v4940_v46 = vpop.eup %4939 }
0x12cf   : > { %v3271_v28 = vmul.f32 %v4940_v46, %v3215_v2 }
0x12d1   : > { %v3275_v30 = vpack.c.bf16 %v3271_v28, %v3270_v24 }
0x12d2   : > { %v4942_v31 = vpop.eup %4941 }
0x12d3   : > { %4706 = vmatmul.mubr.bf16.gmra.mxu0 %v3275_v30  ;;  %v3272_v48 = vmul.f32 %v4942_v31, %v3220_v33 }
0x12d4   : > { %4709 = vmatprep.mubr.msk.bf16.mxu0 %vm5037_vm4, %v5036_v29 }
0x12d7   : > { %v4944_v42 = vpop.eup %4943 }
0x12d8   : > { %v3273_v34 = vmul.f32 %v4944_v42, %v3223_v47 }
0x12da   : > { %v3276_v35 = vpack.c.bf16 %v3273_v34, %v3272_v48 }
0x12dc   : > { %4710 = vmatmul.mubr.bf16.gmra.mxu0 %v3276_v35 }
0x138b   : > { %v3382_v49 = vpop.f32.mrf.mxu0 }
0x138c   : > { %v3383_v45 = vadd.f32 %v4237_v38, %v3382_v49 }
0x138d   : > { %v4703_v50 = vpop.f32.mrf.mxu0 }
0x138e   : > { %v3405_v51 = vadd.f32 %v3383_v45, %v5776_v17 }
0x138f   : > { %v3385_v53 = vpop.f32.mrf.mxu0 }
0x1390   : > { %3411 = vst.msk [vmem:[#allocation2] sm:$0xff] %vm1130_vm3, %v3405_v51  ;;  %v3386_v29 = vadd.f32 %v4237_v38, %v3385_v53 }
0x1391   : > { %v4704_v32 = vpop.f32.mrf.mxu0 }
0x1392   : > { %v3406_v39 = vadd.f32 %v3386_v29, %v5781_v41 }
0x1393   : > { %v3390_v55 = vpop.f32.mrf.mxu0 }
0x1394   : > { %3412 = vst.msk [vmem:[#allocation2 + $0x8] sm:$0xff] %vm1130_vm3, %v3406_v39  ;;  %v3391_v56 = vadd.f32 %v4237_v38, %v3390_v55 }
0x1395   : > { %v4707_v58 = vpop.f32.mrf.mxu0 }
0x1396   : > { %v3407_v59 = vadd.f32 %v3391_v56, %v5786_v57 }
0x1397   : > { %v3393_v60 = vpop.f32.mrf.mxu0 }
0x1398   : > { %3413 = vst.msk [vmem:[#allocation2 + $0x10] sm:$0xff] %vm1130_vm3, %v3407_v59  ;;  %v3394_v54 = vadd.f32 %v4237_v38, %v3393_v60 }
0x1399   : > { %v4708_v0 = vpop.f32.mrf.mxu0 }
0x139a   : > { %v3408_v17 = vadd.f32 %v3394_v54, %v5791_v62 }
0x139c   : > { %3414 = vst.msk [vmem:[#allocation2 + $0x18] sm:$0xff] %vm1130_vm3, %v3408_v17  ;;  %v3398_v40 = vpop.f32.mrf.mxu0 }
0x139d   : > { %v3399_v2 = vadd.f32 %v4237_v38, %v3398_v40 }
0x139e   : > { %v4711_v5 = vpop.f32.mrf.mxu0 }
0x139f   : > { %v3409_v41 = vadd.f32 %v3399_v2, %v5796_v21 }
0x13a0   : > { %v3401_v6 = vpop.f32.mrf.mxu0 }
0x13a1   : > { %3415 = vst.msk [vmem:[#allocation2 + $0x20] sm:$0xff] %vm1130_vm3, %v3409_v41  ;;  %v3402_v36 = vadd.f32 %v4237_v38, %v3401_v6  ;;  %3420 = sbr.rel (%p4246_p5) target bundleno = 5761 (0x1681), region = 124 }
0x13a2   : > { %v4712_v25 = vpop.f32.mrf.mxu0 }
0x13a3   : > { %v3410_v57 = vadd.f32 %v3402_v36, %v5801_v61 }
0x13a5   : > { %3416 = vst.msk [vmem:[#allocation2 + $0x28] sm:$0xff] %vm1130_vm3, %v3410_v57 }
0x13a6   : > { %v3425_v62 = vrot.slane %v3408_v17, 7  ;;  %vm3426_vm8 = vcmask 1041409   ;;  %vm3429_vm9 = vcmask 254976   ;;  %v4952_v7 = vld [vmem:[%s6061_s20 + $0x24] ss:$16 sps:$4 sm:$0xff]   ;;  %v5049_v18 = vmov 0  }
0x13a7   : > { %v4954_v12 = vld [vmem:[%s6061_s20 + $0x2c] ss:$16 sps:$4 sm:$0xff]   ;;  %v4956_v13 = vld [vmem:[%s6061_s20 + $0x20] ss:$16 sps:$4 sm:$0xff]   ;;  %v4957_v11 = vld [vmem:[%s6061_s20 + $0x28] ss:$16 sps:$4 sm:$0xff]   ;;  %3569 = vmatprep.subr.bf16.mxu0 %v4952_v7  ;;  %3589 = vmatprep.mubr.bf16.mxu0 %v5049_v18 }
0x13a8   : > { %v3427_v33 = vsel %vm3426_vm8, %v3425_v62, %v3405_v51  ;;  %v4958_v52 = vld [vmem:[%s6061_s20 + $0x4] ss:$16 sps:$4 sm:$0xff]   ;;  %v4960_v4 = vld [vmem:[%s6061_s20 + $0xc] ss:$16 sps:$4 sm:$0xff]   ;;  %3610 = vmatprep.subr.bf16.mxu1 %v4954_v12  ;;  %3570 = vmatpush1.bf16.msra.mxu0 %v4956_v13  ;;  %v4962_v15 = vld [vmem:[%s6061_s20] ss:$16 sps:$4 sm:$0xff]  }
0x13a9   : > { %v3430_v37 = vsel %vm3429_vm9, %v3427_v33, 0.0  ;;  %3611 = vmatpush1.bf16.msra.mxu1 %v4957_v11  ;;  %v4963_v16 = vld [vmem:[%s6061_s20 + $0x8] ss:$16 sps:$4 sm:$0xff]   ;;  %3571 = vmatprep.subr.bf16.mxu0 %v4958_v52  ;;  %v4247_v22 = vld [vmem:[%s6104_s25] ss:$0 sm:$0xff]  ;;  %v4968_v32 = vld [vmem:[%s6063_s22 + $0x70] sm:$0xff]  }
0x13aa   : > { %3431 = vadd.xlane.f32.xlu0 %v3430_v37  ;;  %3612 = vmatprep.subr.bf16.mxu1 %v4960_v4  ;;  %v4964_v19 = vld [vmem:[%s6063_s22 + $0x78] sm:$0xff]   ;;  %v4248_v24 = vld [vmem:[%s6105_s5] ss:$0 sm:$0xff]  ;;  %v4969_v39 = vld [vmem:[%s6063_s22 + $0xf0] sm:$0xff]  }
0x13ab   : > { %3630 = vmatprep.mubr.bf16.mxu1 %v5049_v18  ;;  %v4965_v26 = vld [vmem:[%s6063_s22 + $0xf8] sm:$0xff]   ;;  %v4970_v55 = vld [vmem:[%s6063_s22 + $0x30] sm:$0xff]   ;;  %v4972_v58 = vld [vmem:[%s6063_s22 + $0x68] sm:$0xff]  }
0x13ac   : > { %3572 = vmatpush1.bf16.msra.mxu0 %v4962_v15  ;;  %v4967_v53 = vld [vmem:[%s6063_s22 + $0xb8] sm:$0xff]   ;;  %v4971_v56 = vld [vmem:[%s6063_s22 + $0xb0] sm:$0xff]   ;;  %v4973_v59 = vld [vmem:[%s6063_s22 + $0xe8] sm:$0xff]  }
0x13ad   : > { %3613 = vmatpush1.bf16.msra.mxu1 %v4963_v16  ;;  %4407 = vmatprep.subr.bf16.mxu0 %v4964_v19  ;;  %v4974_v60 = vld [vmem:[%s6063_s22 + $0x28] sm:$0xff]   ;;  %v4976_v0 = vld [vmem:[%s6063_s22 + $0x60] sm:$0xff]   ;;  %v4980_v5 = vld [vmem:[%s6063_s22 + $0x58] sm:$0xff]  }
0x13ae   : > { %4429 = vmatprep.subr.bf16.mxu1 %v4965_v26  ;;  %v4975_v54 = vld [vmem:[%s6063_s22 + $0xa8] sm:$0xff]   ;;  %v4978_v40 = vld [vmem:[%s6063_s22 + $0x20] sm:$0xff]   ;;  %v4981_v41 = vld [vmem:[%s6063_s22 + $0xd8] sm:$0xff]  }
0x13af   : > { %v4979_v2 = vld [vmem:[%s6063_s22 + $0xa0] sm:$0xff]   ;;  %v4982_v6 = vld [vmem:[%s6063_s22 + $0x18] sm:$0xff]   ;;  %v4984_v25 = vld [vmem:[%s6063_s22 + $0x50] sm:$0xff]  }
0x13b0   : > { %v4983_v36 = vld [vmem:[%s6063_s22 + $0x98] sm:$0xff]   ;;  %v4985_v57 = vld [vmem:[%s6063_s22 + $0xd0] sm:$0xff]   ;;  %v4988_v37 = vld [vmem:[%s6063_s22 + $0x48] sm:$0xff]  }
0x13b1   : > { %v4986_v62 = vld [vmem:[%s6063_s22 + $0x10] sm:$0xff]   ;;  %v3485_v12 = vld [vmem:[%s6106_s24] sm:$0xf] }
0x13b2   : > { %v4987_v33 = vld [vmem:[%s6063_s22 + $0x90] sm:$0xff]  }
0x1433   : > { %v3432_v21 = vpop.xlane.xlu0 %3431 }
0x1434   : > { %v3433_v43 = vmul.f32 0.03125, %v3432_v21  ;;  %v4989_v21 = vld [vmem:[%s6063_s22 + $0xc8] sm:$0xff]  }
0x1436   : > { %v3435_v63 = vrot.slane %v3433_v43, 1  ;;  %v3438_v8 = vsub.f32 %v3405_v51, %v3433_v43  ;;  %v4966_v51 = vld [vmem:[%s6063_s22 + $0x38] sm:$0xff]   ;;  %v4990_v43 = vld [vmem:[%s6063_s22 + $0x8] sm:$0xff]  }
0x1438   : > { %v3439_v3 = vsub.f32 %v3408_v17, %v3435_v63  ;;  %v3440_v47 = vmul.f32 %v3438_v8, %v3438_v8  ;;  %v4977_v17 = vld [vmem:[%s6063_s22 + $0xe0] sm:$0xff]   ;;  %v4991_v63 = vld [vmem:[%s6063_s22 + $0x88] sm:$0xff]  }
0x143a   : > { %v3441_v9 = vmul.f32 %v3439_v3, %v3439_v3 }
0x143c   : > { %v3444_v61 = vrot.slane %v3441_v9, 7  ;;  %v4994_v9 = vld [vmem:[%s6063_s22] sm:$0xff]  }
0x143e   : > { %v3445_v1 = vsel %vm3426_vm8, %v3444_v61, %v3440_v47  ;;  %v4995_v47 = vld [vmem:[%s6063_s22 + $0x80] sm:$0xff]   ;;  %v3487_v61 = vlaneseq }
0x143f   : > { %v3447_v10 = vsel %vm3429_vm9, %v3445_v1, 0.0 }
0x1440   : > { %3448 = vadd.xlane.f32.xlu0 %v3447_v10  ;;  %v3488_v1 = vshrl.u32 %v3487_v61, 7 }
0x1442   : > { %v3489_v10 = vsub.s32 0, %v3488_v1  ;;  %v3497_v7 = vsub.s32 2, %v3488_v1  ;;  %v3493_v13 = vsub.s32 1, %v3488_v1  ;;  %v3501_v11 = vsub.s32 3, %v3488_v1 }
0x1444   : > { %v3490_v52 = vrot.slane %v3485_v12, %v3489_v10  ;;  %v3498_v4 = vrot.slane %v3485_v12, %v3497_v7  ;;  %v3494_v15 = vrot.slane %v3485_v12, %v3493_v13  ;;  %v3502_v16 = vrot.slane %v3485_v12, %v3501_v11 }
0x14c9   : > { %v3449_v14 = vpop.xlane.xlu0 %3448 }
0x14ca   : > { %v3450_v27 = vmul.f32 0.03125, %v3449_v14 }
0x14cc   : > { %v3451_v23 = vadd.f32 1e-05, %v3450_v27 }
0x14ce   : > { %4996 = vrsqrt.f32 %v3451_v23 }
0x14db   : > { %v4997_v20 = vpop.eup %4996 }
0x14dc   : > { %v3454_v44 = vrot.slane %v4997_v20, 1  ;;  %v3457_v46 = vmul.f32 %v4997_v20, %v3438_v8  ;;  %v4992_v8 = vld [vmem:[%s6063_s22 + $0x40] sm:$0xff]  }
0x14de   : > { %v3458_v28 = vmul.f32 %v3454_v44, %v3439_v3  ;;  %v3465_v30 = vmul.f32 %v4247_v22, %v3457_v46  ;;  %v4993_v3 = vld [vmem:[%s6063_s22 + $0xc0] sm:$0xff]  }
0x14e0   : > { %v3466_v31 = vmul.f32 %v4247_v22, %v3458_v28  ;;  %v3473_v42 = vadd.f32 %v4248_v24, %v3465_v30 }
0x14e2   : > { %v3474_v48 = vadd.f32 %v4248_v24, %v3466_v31  ;;  %v3475_v34 = vpack.c.bf16 %v3473_v42, %v3473_v42 }
0x14e4   : > { %v3476_v35 = vpack.c.bf16 %v3474_v48, %v3474_v48  ;;  %v3509_v49 = vunpack.c.l.b16 %v3475_v34 }
0x14e6   : > { %v3510_v38 = vunpack.c.l.b16 %v3476_v35 }
0x14e8   : > { %v3511_v45 = vrot.slane %v3510_v38, 7 }
0x14ea   : > { %v3512_v50 = vsel %vm3426_vm8, %v3511_v45, %v3509_v49 }
0x14eb   : > { %v3513_v29 = vpack.c.b16 %v3512_v50, %v3512_v50 }
0x14ed   : > { %4257 = vmatmul.mubr.msk.bf16.vlgmr.msra.gmra.mxu0 %vm1130_vm3, %v3513_v29  ;;  %4258 = vmatmul.mubr.msk.bf16.vlgmr.msra.gmra.mxu1 %vm1130_vm3, %v3513_v29 }
0x14ee   : > { %4408 = vmatpush3.bf16.msra.mxu0 %v4966_v51  ;;  %4430 = vmatpush3.bf16.msra.mxu1 %v4967_v53  ;;  %v4259_v51 = vld [vmem:[%s6107_s3] ss:$0 sm:$0xff] }
0x14ef   : > { %4409 = vmatprep.subr.bf16.mxu0 %v4968_v32  ;;  %4431 = vmatprep.subr.bf16.mxu1 %v4969_v39 }
0x14f2   : > { %4410 = vmatpush3.bf16.msra.mxu0 %v4970_v55  ;;  %4432 = vmatpush3.bf16.msra.mxu1 %v4971_v56 }
0x14f3   : > { %4411 = vmatprep.subr.bf16.mxu0 %v4972_v58  ;;  %4433 = vmatprep.subr.bf16.mxu1 %v4973_v59 }
0x14f6   : > { %4412 = vmatpush3.bf16.msra.mxu0 %v4974_v60  ;;  %4434 = vmatpush3.bf16.msra.mxu1 %v4975_v54 }
0x14f7   : > { %4413 = vmatprep.subr.bf16.mxu0 %v4976_v0  ;;  %4435 = vmatprep.subr.bf16.mxu1 %v4977_v17 }
0x14fa   : > { %4414 = vmatpush3.bf16.msra.mxu0 %v4978_v40  ;;  %4436 = vmatpush3.bf16.msra.mxu1 %v4979_v2 }
0x14fb   : > { %4415 = vmatprep.subr.bf16.mxu0 %v4980_v5  ;;  %4437 = vmatprep.subr.bf16.mxu1 %v4981_v41 }
0x14fe   : > { %4416 = vmatpush3.bf16.msra.mxu0 %v4982_v6  ;;  %4438 = vmatpush3.bf16.msra.mxu1 %v4983_v36 }
0x14ff   : > { %4417 = vmatprep.subr.bf16.mxu0 %v4984_v25  ;;  %4439 = vmatprep.subr.bf16.mxu1 %v4985_v57 }
0x1502   : > { %4418 = vmatpush3.bf16.msra.mxu0 %v4986_v62  ;;  %4440 = vmatpush3.bf16.msra.mxu1 %v4987_v33 }
0x1503   : > { %4419 = vmatprep.subr.bf16.mxu0 %v4988_v37  ;;  %4441 = vmatprep.subr.bf16.mxu1 %v4989_v21 }
0x1506   : > { %4420 = vmatpush3.bf16.msra.mxu0 %v4990_v43  ;;  %4442 = vmatpush3.bf16.msra.mxu1 %v4991_v63 }
0x1507   : > { %4421 = vmatprep.subr.bf16.mxu0 %v4992_v8  ;;  %4443 = vmatprep.subr.bf16.mxu1 %v4993_v3 }
0x150a   : > { %4422 = vmatpush3.bf16.msra.mxu0 %v4994_v9  ;;  %4444 = vmatpush3.bf16.msra.mxu1 %v4995_v47 }
0x15ad   : > { %v3591_v18 = vpop.f32.mrf.mxu0  ;;  %v3632_v19 = vpop.f32.mrf.mxu1 }
0x15ae   : > { %v3592_v26 = vadd.f32 %v3591_v18, %v3490_v52  ;;  %v3633_v14 = vadd.f32 %v3632_v19, %v3498_v4 }
0x15af   : > { %v3593_v27 = vpop.f32.mrf.mxu0  ;;  %v3634_v23 = vpop.f32.mrf.mxu1 }
0x15b0   : > { %v3594_v20 = vadd.f32 %v3593_v27, %v3494_v15  ;;  %v3635_v22 = vadd.f32 %v3634_v23, %v3502_v16  ;;  %v3639_v44 = vmax.f32 %v3592_v26, 0.0  ;;  %v3641_v46 = vmax.f32 %v3633_v14, 0.0 }
0x15b1   : > { %v3595_v24 = vpop.f32.mrf.mxu0  ;;  %v3636_v28 = vpop.f32.mrf.mxu1 }
0x15b2   : > { %v3640_v30 = vmax.f32 %v3594_v20, 0.0  ;;  %v3642_v31 = vmax.f32 %v3635_v22, 0.0  ;;  %v3643_v38 = vpack.c.bf16 %v3639_v44, %v3639_v44  ;;  %v3645_v49 = vpack.c.bf16 %v3641_v46, %v3641_v46 }
0x15b3   : > { %v3596_v42 = vpop.f32.mrf.mxu0  ;;  %v3637_v48 = vpop.f32.mrf.mxu1 }
0x15b4   : > { %v3644_v34 = vpack.c.bf16 %v3640_v30, %v3640_v30  ;;  %v3646_v35 = vpack.c.bf16 %v3642_v31, %v3642_v31 }
0x15b6   : > { %3942 = vmatprep.mubr.bf16.mxu0 %v3644_v34  ;;  %3982 = vmatprep.mubr.bf16.mxu1 %v3646_v35 }
0x15b7   : > { %3943 = vmatmul.mubr.bf16.vlgmr.msra.gmra.mxu0 %v3643_v38  ;;  %3983 = vmatmul.mubr.bf16.vlgmr.msra.gmra.mxu1 %v3645_v49 }
0x1677   : > { %v4423_v45 = vpop.f32.mrf.mxu0  ;;  %v4445_v50 = vpop.f32.mrf.mxu1 }
0x1679   : > { %v4424_v53 = vpop.f32.mrf.mxu0  ;;  %v4446_v29 = vpop.f32.mrf.mxu1 }
0x167a   : > { %v4425_v32 = vadd.f32 %v4424_v53, %v4423_v45  ;;  %v4447_v58 = vadd.f32 %v4446_v29, %v4445_v50 }
0x167b   : > { %v4426_v39 = vpop.f32.mrf.mxu0  ;;  %v4448_v55 = vpop.f32.mrf.mxu1 }
0x167c   : > { %v3945_v56 = vadd.f32 %v4425_v32, %v4259_v51 }
0x167d   : > { %v4427_v59 = vpop.f32.mrf.mxu0  ;;  %v4449_v60 = vpop.f32.mrf.mxu1 }
0x167e   : > { %v3985_v54 = vadd.f32 %v4447_v58, %v3945_v56 }
0x1680   : > { %3990 = vst [vmem:[#allocation3] sm:$0x3] %v3985_v54 }
0x1681 PF: > { %p4747_p6 = scmp.eq.s32.totalorder %s5182_s26, 1  ;;  %s5050_s1 = smov [#allocation3]  }
0x1682   : > { %s3998_s10 = sshll.u32 %s5050_s1, 4  ;;  %s3999_s10 = int_to_ptr.vmem [resolvable:$true] %s3998_s10 }
0x1683   : > { %s4998_s0 = scalar_lea.vmem %s3999_s10, 32  ;;  %p5005_p10 = scmp.lt.s32.totalorder %s3999_s10, %s3999_s10 }
0x1684   : > { %p4999_p7 = scmp.ne.s32.totalorder %s3999_s10, %s4998_s0  ;;  %p5006_p11 = scmp.lt.s32.totalorder %s4998_s0, %s4998_s0 }
0x1686   : > { %p5000_p8 = pnand %p4999_p7, %p4747_p6  ;;  %p5007_p12 = por %p5006_p11, %p5005_p10 }
0x1688   : > { %p5001_p9 = pneg %p5000_p8 }
0x168a   : > { %p5008_p13 = pnand %p5007_p12, %p5001_p9 }
0x168c   : > { %5011 = shalt.err (!%p5008_p13)
}
0x168d   : > { %s6108_s29 = sld [smem:[#allocation21_spill]] }
0x1693   : > { %4744 = dma.vmem_to_hbm [thread:$0]  (%p4747_p6), %s3999_s10, 32, %s6108_s29, [#allocation4]  }
0x1694   : > { %5027 = dma.done.wait (%p4747_p6), [#allocation4], 32  }
0x1695   : > { %5029 = vsyncadd (%p4747_p6), [#allocation4], 4294967264 }
0x1696 PF: > { %s6109_s2 = sld [smem:[#allocation6_spill]] }
0x169c   : > { %s35_s5 = sadd.s32 1, %s6109_s2  }
0x169d   : > { %p32_p0 = scmp.ge.s32.totalorder %s35_s5, 4  }
0x169f   :  { %34 = sbr.rel (!%p32_p0) target bundleno = 17 (0x11), region = 187 }
0x16a4   :  { %4011 = vsyncpa [#allocation4], 1 }
0x16a5   :  { %4013 = vsyncpa [#allocation4 + $0x1], 1 }

</bundles_post_ra>
